<compile_context>
chip_gen: v6e
topology: v6e:2x2x1
jax: 0.10.0
libtpu: 0.0.40
codegen_flags: <defaults>
</compile_context>

<pallas_src>
import jax
import jax.numpy as jnp
from jax.experimental import pallas as pl
from jax.experimental.pallas import tpu as pltpu

BN_EPS = 1e-5


def _gph_kernel(x_ref, w1_ref, gamma_ref, beta_ref, w2_ref, b2_ref, o_ref):
    # ---- linear1 (no bias): x(B,Cin) @ w1(Cin,L), bf16 MXU, f32 acc ---------
    x_bf = x_ref[...].astype(jnp.bfloat16)
    h = jnp.dot(x_bf, w1_ref[...], preferred_element_type=jnp.float32)  # (B, L)

    # ---- BatchNorm1d (training-mode batch stats) as per-feature scale/shift -
    # Single pass over h for both moments; clamp var against f32 cancellation.
    mean = jnp.mean(h, axis=0, keepdims=True)             # (1, L)
    mean_sq = jnp.mean(h * h, axis=0, keepdims=True)      # (1, L)
    var = jnp.maximum(mean_sq - mean * mean, 0.0)         # biased batch var
    inv_std = jax.lax.rsqrt(var + BN_EPS)                 # EUP (free slot)
    scale = gamma_ref[...] * inv_std                      # (1, L)
    shift = beta_ref[...] - mean * scale                  # (1, L)

    # scale/shift + ReLU in one pass over (B, L), then cast for the MXU.
    hn = jnp.maximum(h * scale + shift, 0.0).astype(jnp.bfloat16)

    # ---- linear2: hn(B,L) @ w2(L,O), fold in the bias -----------------------
    out = jnp.dot(hn, w2_ref[...], preferred_element_type=jnp.float32)  # (B, O)
    o_ref[...] = (out + b2_ref[...]).astype(o_ref.dtype)


def prepare_params(w1, gamma, beta, w2, b2, mxu_dtype=jnp.bfloat16):
    """One-time parameter preparation ("init time"): transpose the nn.Linear
    weights into MXU-native (K, N) layout, cast to the MXU dtype, and reshape
    the 1-D vectors to lane-friendly (1, N) rows.  The transpose is a one-time
    cost; the kernel then never touches a transposed operand."""
    L = w1.shape[0]      # w1: (L, Cin) in nn.Linear layout
    O = w2.shape[0]      # w2: (O, L)  in nn.Linear layout
    return dict(
        w1=jnp.asarray(w1).T.astype(mxu_dtype),          # (Cin, L)
        gamma=gamma.reshape(1, L).astype(jnp.float32),
        beta=beta.reshape(1, L).astype(jnp.float32),
        w2=jnp.asarray(w2).T.astype(mxu_dtype),          # (L, O)
        b2=b2.reshape(1, O).astype(jnp.float32),
    )


def global_projection_head(x, params):
    """x: (B, Cin) float32; params: output of prepare_params."""
    B, Cin = x.shape
    _, L = params["w1"].shape
    _, O = params["w2"].shape

    itemsize = lambda a: a.dtype.itemsize
    cost = pl.CostEstimate(
        flops=2 * B * Cin * L + 2 * B * L * O + 8 * B * L + 2 * B * O,
        transcendentals=L,  # rsqrt per feature
        bytes_accessed=(
            x.size * itemsize(x)
            + params["w1"].size * itemsize(params["w1"])
            + params["w2"].size * itemsize(params["w2"])
            + (2 * L + O) * 4
            + B * O * itemsize(x)
        ),
    )

    vmem = pltpu.MemorySpace.VMEM
    # Single-invocation kernel (no grid): whole arrays live in VMEM, no
    # double-buffering.  At these shapes the kernel is fixed-overhead /
    # weight-DMA bound, so this is the right structure on all generations.
    # See the scaling notes at the top of the file for when/how to grid it.
    return pl.pallas_call(
        _gph_kernel,
        out_shape=jax.ShapeDtypeStruct((B, O), x.dtype),
        in_specs=[
            pl.BlockSpec(memory_space=vmem),  # x     (B, Cin)
            pl.BlockSpec(memory_space=vmem),  # w1    (Cin, L)
            pl.BlockSpec(memory_space=vmem),  # gamma (1, L)
            pl.BlockSpec(memory_space=vmem),  # beta  (1, L)
            pl.BlockSpec(memory_space=vmem),  # w2    (L, O)
            pl.BlockSpec(memory_space=vmem),  # b2    (1, O)
        ],
        out_specs=pl.BlockSpec(memory_space=vmem),
        cost_estimate=cost,
    )(x, params["w1"], params["gamma"], params["beta"],
      params["w2"], params["b2"])


# ----------------------------------------------------------------------------
# References for testing.
# ----------------------------------------------------------------------------
def _reference_f32(x, w1, gamma, beta, w2, b2):
    """Pure-f32 rendering of the PyTorch module (training-mode BN).
    Weights are in nn.Linear layout: w1 (L, Cin), w2 (O, L)."""
    h = x @ w1.T
    mean = jnp.mean(h, axis=0, keepdims=True)
    var = jnp.mean((h - mean) ** 2, axis=0, keepdims=True)
    hn = (h - mean) / jnp.sqrt(var + BN_EPS) * gamma + beta
    hn = jnp.maximum(hn, 0.0)
    return hn @ w2.T + b2


def _reference_matched(x, params):
    """Precision-matched reference: identical math (bf16 MXU operands, f32
    accumulation, single-pass clamped BN stats) evaluated with plain XLA."""
    x_bf = x.astype(jnp.bfloat16)
    h = jnp.dot(x_bf, params["w1"], preferred_element_type=jnp.float32)
    mean = jnp.mean(h, axis=0, keepdims=True)
    var = jnp.maximum(jnp.mean(h * h, axis=0, keepdims=True) - mean * mean, 0.0)
    scale = params["gamma"] * jax.lax.rsqrt(var + BN_EPS)
    shift = params["beta"] - mean * scale
    hn = jnp.maximum(h * scale + shift, 0.0).astype(jnp.bfloat16)
    out = jnp.dot(hn, params["w2"], preferred_element_type=jnp.float32)
    return (out + params["b2"]).astype(x.dtype)


if __name__ == "__main__":
    # Small shapes consistent with the module (in_channels -> latent -> out).
    # B = 256 so each matmul fills a full 256-wide MXU M-tile on v6e/v7x.
    B, Cin, L, O = 256, 32, 512, 256

    key = jax.random.PRNGKey(0)
    kx, k1, kg, kb, k2, kb2 = jax.random.split(key, 6)

    x = jax.random.normal(kx, (B, Cin), dtype=jnp.float32)
    w1 = jax.random.normal(k1, (L, Cin), dtype=jnp.float32) * (1.0 / jnp.sqrt(Cin))
    gamma = 1.0 + 0.1 * jax.random.normal(kg, (L,), dtype=jnp.float32)
    beta = 0.1 * jax.random.normal(kb, (L,), dtype=jnp.float32)
    w2 = jax.random.normal(k2, (O, L), dtype=jnp.float32) * (1.0 / jnp.sqrt(L))
    b2 = 0.1 * jax.random.normal(kb2, (O,), dtype=jnp.float32)

    params = prepare_params(w1, gamma, beta, w2, b2)

    out = global_projection_head(x, params)
    out = jax.block_until_ready(out)
    assert out.shape == (B, O)

    # 1) Exactness of the kernel logic vs. a precision-matched XLA reference.
    ref_matched = _reference_matched(x, params)
    assert jnp.allclose(out, ref_matched, atol=2e-3, rtol=2e-3), \
        "mismatch vs precision-matched reference"

    # 2) Semantic sanity vs. the pure-f32 PyTorch-module reference (looser
    #    tolerance absorbs bf16 MXU-operand rounding).
    ref_f32 = _reference_f32(x, w1, gamma, beta, w2, b2)
    assert jnp.allclose(out, ref_f32, atol=5e-2, rtol=5e-2), \
        "mismatch vs f32 module reference"

    print("KERNEL_OK")
</pallas_src>

<mosaic_0001>
module attributes {stable_mosaic.version = 11 : i64} {
  func.func @_gph_kernel(%arg0: memref<256x32xf32, #tpu.memory_space<vmem>>, %arg1: memref<32x512xbf16, #tpu.memory_space<vmem>>, %arg2: memref<1x512xf32, #tpu.memory_space<vmem>>, %arg3: memref<1x512xf32, #tpu.memory_space<vmem>>, %arg4: memref<512x256xbf16, #tpu.memory_space<vmem>>, %arg5: memref<1x256xf32, #tpu.memory_space<vmem>>, %arg6: memref<256x256xf32, #tpu.memory_space<vmem>>) attributes {dimension_semantics = [], scalar_prefetch = 0 : i64, scratch_operands = 0 : i64, tpu.core_type = #tpu.core_type<tc>} {
    %c0 = arith.constant 0 : index
    %c0_0 = arith.constant 0 : index
    %0 = vector.load %arg0[%c0, %c0_0] : memref<256x32xf32, #tpu.memory_space<vmem>>, vector<256x32xf32>
    %1 = arith.truncf %0 : vector<256x32xf32> to vector<256x32xbf16>
    %c0_1 = arith.constant 0 : index
    %c0_2 = arith.constant 0 : index
    %2 = vector.load %arg1[%c0_1, %c0_2] : memref<32x512xbf16, #tpu.memory_space<vmem>>, vector<32x512xbf16>
    %cst = arith.constant dense<0.000000e+00> : vector<256x512xf32>
    %3 = tpu.matmul %1, %2, %cst {dimension_numbers = #tpu.dot_dimension_numbers<[1], [0], [0], [1], [0, 0, 1, 1], [], []>} : vector<256x32xbf16>, vector<32x512xbf16>, vector<256x512xf32> -> vector<256x512xf32>
    %cst_3 = arith.constant dense<0.000000e+00> : vector<512xf32>
    %4 = vector.multi_reduction <add>, %3, %cst_3 [0] : vector<256x512xf32> to vector<512xf32>
    %5 = vector.shape_cast %4 : vector<512xf32> to vector<1x512xf32>
    %cst_4 = arith.constant 2.560000e+02 : f32
    %6 = vector.broadcast %cst_4 : f32 to vector<1x512xf32>
    %7 = arith.divf %5, %6 : vector<1x512xf32>
    %8 = arith.mulf %3, %3 : vector<256x512xf32>
    %cst_5 = arith.constant dense<0.000000e+00> : vector<512xf32>
    %9 = vector.multi_reduction <add>, %8, %cst_5 [0] : vector<256x512xf32> to vector<512xf32>
    %10 = vector.shape_cast %9 : vector<512xf32> to vector<1x512xf32>
    %cst_6 = arith.constant 2.560000e+02 : f32
    %11 = vector.broadcast %cst_6 : f32 to vector<1x512xf32>
    %12 = arith.divf %10, %11 : vector<1x512xf32>
    %13 = arith.mulf %7, %7 : vector<1x512xf32>
    %14 = arith.subf %12, %13 : vector<1x512xf32>
    %cst_7 = arith.constant 0.000000e+00 : f32
    %15 = vector.broadcast %cst_7 : f32 to vector<1x512xf32>
    %16 = arith.maximumf %14, %15 : vector<1x512xf32>
    %cst_8 = arith.constant 9.99999974E-6 : f32
    %17 = vector.broadcast %cst_8 : f32 to vector<1x512xf32>
    %18 = arith.addf %16, %17 : vector<1x512xf32>
    %19 = math.rsqrt %18 : vector<1x512xf32>
    %c0_9 = arith.constant 0 : index
    %c0_10 = arith.constant 0 : index
    %20 = vector.load %arg2[%c0_9, %c0_10] : memref<1x512xf32, #tpu.memory_space<vmem>>, vector<1x512xf32>
    %21 = arith.mulf %20, %19 : vector<1x512xf32>
    %c0_11 = arith.constant 0 : index
    %c0_12 = arith.constant 0 : index
    %22 = vector.load %arg3[%c0_11, %c0_12] : memref<1x512xf32, #tpu.memory_space<vmem>>, vector<1x512xf32>
    %23 = arith.mulf %7, %21 : vector<1x512xf32>
    %24 = arith.subf %22, %23 : vector<1x512xf32>
    %25 = vector.broadcast %21 : vector<1x512xf32> to vector<256x512xf32>
    %26 = arith.mulf %3, %25 : vector<256x512xf32>
    %27 = vector.broadcast %24 : vector<1x512xf32> to vector<256x512xf32>
    %28 = arith.addf %26, %27 : vector<256x512xf32>
    %cst_13 = arith.constant 0.000000e+00 : f32
    %29 = vector.broadcast %cst_13 : f32 to vector<256x512xf32>
    %30 = arith.maximumf %28, %29 : vector<256x512xf32>
    %31 = arith.truncf %30 : vector<256x512xf32> to vector<256x512xbf16>
    %c0_14 = arith.constant 0 : index
    %c0_15 = arith.constant 0 : index
    %32 = vector.load %arg4[%c0_14, %c0_15] : memref<512x256xbf16, #tpu.memory_space<vmem>>, vector<512x256xbf16>
    %cst_16 = arith.constant dense<0.000000e+00> : vector<256x256xf32>
    %33 = tpu.matmul %31, %32, %cst_16 {dimension_numbers = #tpu.dot_dimension_numbers<[1], [0], [0], [1], [0, 0, 1, 1], [], []>} : vector<256x512xbf16>, vector<512x256xbf16>, vector<256x256xf32> -> vector<256x256xf32>
    %c0_17 = arith.constant 0 : index
    %c0_18 = arith.constant 0 : index
    %34 = vector.load %arg5[%c0_17, %c0_18] : memref<1x256xf32, #tpu.memory_space<vmem>>, vector<1x256xf32>
    %35 = vector.broadcast %34 : vector<1x256xf32> to vector<256x256xf32>
    %36 = arith.addf %33, %35 : vector<256x256xf32>
    %c0_19 = arith.constant 0 : index
    %c0_20 = arith.constant 0 : index
    %37 = vector.load %arg6[%c0_19, %c0_20] : memref<256x256xf32, #tpu.memory_space<vmem>>, vector<256x256xf32>
    tpu.vector_store %arg6[%c0_19, %c0_20], %36 {strides = array<i32>} : memref<256x256xf32, #tpu.memory_space<vmem>>, vector<256x256xf32>,
    return
  }
}

</mosaic_0001>

<bundles_post_ra>
// kernel: tpu_custom_call.1
= control target key start
LH: loop header
LB: loop body
LE: loop exit
PB: predicated region body
PF: predicated region fallthrough
CT: control target
= control target key end

     0   :  { %11 = vsyncpa [#allocation3], 0  ;;  %s4609_s0 = inlined_call_operand.vmem [shape: f32[256,32], index: 0, kind: input, shape index: {}]   ;;  %s4610_s1 = inlined_call_operand.vmem [shape: bf16[32,512], index: 1, kind: input, shape index: {}]   ;;  %s4611_s2 = inlined_call_operand.vmem [shape: f32[1,512], index: 2, kind: input, shape index: {}]   ;;  %s4612_s3 = inlined_call_operand.vmem [shape: f32[1,512], index: 3, kind: input, shape index: {}]   ;;  %s4613_s4 = inlined_call_operand.hbm [shape: bf16[512,256], index: 4, kind: input, shape index: {}]   ;;  %s4614_s5 = inlined_call_operand.vmem [shape: f32[1,256], index: 5, kind: input, shape index: {}]   ;;  %s4615_s6 = inlined_call_operand.hbm [shape: f32[256,256], index: 6, kind: output, shape index: {}]  }
   0x1   :  { %12 = vsyncpa [#allocation4], 0  ;;  %s2714_s21 = smov [#allocation2]  }
   0x2   :  { %s26_s22 = sshll.u32 %s2714_s21, 4  ;;  %s27_s22 = int_to_ptr.vmem [resolvable:$true] %s26_s22 }
   0x3   :  { %s2678_s23 = scalar_lea.vmem %s27_s22, 8192  ;;  %p2683_p1 = scmp.lt.s32.totalorder %s27_s22, %s27_s22 }
   0x4   :  { %p2679_p0 = scmp.ne.s32.totalorder %s27_s22, %s2678_s23  ;;  %p2684_p2 = scmp.lt.s32.totalorder %s2678_s23, %s2678_s23 }
   0x6   :  { %p2685_p3 = por %p2684_p2, %p2683_p1 }
   0x8   :  { %p2686_p4 = pnand %p2685_p3, %p2679_p0 }
   0xa   :  { %2689 = shalt.err (!%p2686_p4)
}
   0xb   :  { %s2715_s24 = smov 128   ;;  %s2716_s25 = smov 8  }
   0xc   :  { %32 = dma.hbm_to_vmem [thread:$0]  %s4613_s4, 8192, %s27_s22, [#allocation3], %s2715_s24, %s2715_s24, %s2716_s25  }
   0xd   :  { %2710 = dma.done.wait [#allocation3], 8192  }
   0xe   :  { %2711 = vsyncadd [#allocation3], 4294959104  ;;  %v2717_v0 = vmov 0   ;;  %v2554_v1 = vld [vmem:[%s4610_s1 + $0x24] ss:$16 sps:$4 sm:$0xff]   ;;  %v40_v10 = vld [vmem:[%s4609_s0 + $0x8] sm:$0xff] }
   0xf   :  { %216 = vmatprep.mubr.bf16.mxu0 %v2717_v0  ;;  %409 = vmatprep.mubr.bf16.mxu1 %v2717_v0  ;;  %v2556_v2 = vld [vmem:[%s4610_s1 + $0x2c] ss:$16 sps:$4 sm:$0xff]   ;;  %v2558_v3 = vld [vmem:[%s4610_s1 + $0x20] ss:$16 sps:$4 sm:$0xff]   ;;  %v2559_v4 = vld [vmem:[%s4610_s1 + $0x28] ss:$16 sps:$4 sm:$0xff]  }
  0x10   :  { %196 = vmatprep.subr.bf16.mxu0 %v2554_v1  ;;  %389 = vmatprep.subr.bf16.mxu1 %v2556_v2  ;;  %v2560_v5 = vld [vmem:[%s4610_s1 + $0x4] ss:$16 sps:$4 sm:$0xff]   ;;  %v2562_v6 = vld [vmem:[%s4610_s1 + $0xc] ss:$16 sps:$4 sm:$0xff]   ;;  %v2564_v7 = vld [vmem:[%s4610_s1] ss:$16 sps:$4 sm:$0xff]  }
  0x11   :  { %197 = vmatpush1.bf16.msra.mxu0 %v2558_v3  ;;  %390 = vmatpush1.bf16.msra.mxu1 %v2559_v4  ;;  %v2565_v8 = vld [vmem:[%s4610_s1 + $0x8] ss:$16 sps:$4 sm:$0xff]   ;;  %v39_v9 = vld [vmem:[%s4609_s0] sm:$0xff]  ;;  %vm135_vm0 = vcmask 261120   ;;  %v41_v12 = vld [vmem:[%s4609_s0 + $0x10] sm:$0xff] }
  0x12   :  { %198 = vmatprep.subr.bf16.mxu0 %v2560_v5  ;;  %391 = vmatprep.subr.bf16.mxu1 %v2562_v6  ;;  %v71_v11 = vpack.c.bf16 %v40_v10, %v39_v9  ;;  %v42_v13 = vld [vmem:[%s4609_s0 + $0x18] sm:$0xff]  ;;  %v43_v15 = vld [vmem:[%s4609_s0 + $0x20] sm:$0xff]  ;;  %v44_v16 = vld [vmem:[%s4609_s0 + $0x28] sm:$0xff] }
  0x13   :  { %v72_v14 = vpack.c.bf16 %v42_v13, %v41_v12  ;;  %v73_v17 = vpack.c.bf16 %v44_v16, %v43_v15  ;;  %v45_v18 = vld [vmem:[%s4609_s0 + $0x30] sm:$0xff]  ;;  %v46_v19 = vld [vmem:[%s4609_s0 + $0x38] sm:$0xff]  ;;  %v47_v21 = vld [vmem:[%s4609_s0 + $0x40] sm:$0xff] }
  0x14   :  { %v74_v20 = vpack.c.bf16 %v46_v19, %v45_v18  ;;  %v48_v22 = vld [vmem:[%s4609_s0 + $0x48] sm:$0xff]  ;;  %v49_v24 = vld [vmem:[%s4609_s0 + $0x50] sm:$0xff]  ;;  %v50_v25 = vld [vmem:[%s4609_s0 + $0x58] sm:$0xff] }
  0x15   :  { %199 = vmatpush1.bf16.msra.mxu0 %v2564_v7  ;;  %392 = vmatpush1.bf16.msra.mxu1 %v2565_v8  ;;  %v75_v23 = vpack.c.bf16 %v48_v22, %v47_v21  ;;  %v76_v26 = vpack.c.bf16 %v50_v25, %v49_v24  ;;  %v51_v27 = vld [vmem:[%s4609_s0 + $0x60] sm:$0xff]  ;;  %v52_v28 = vld [vmem:[%s4609_s0 + $0x68] sm:$0xff]  ;;  %v53_v30 = vld [vmem:[%s4609_s0 + $0x70] sm:$0xff] }
  0x16   :  { %v77_v29 = vpack.c.bf16 %v52_v28, %v51_v27  ;;  %v54_v31 = vld [vmem:[%s4609_s0 + $0x78] sm:$0xff]  ;;  %v55_v33 = vld [vmem:[%s4609_s0 + $0x80] sm:$0xff]  ;;  %v56_v34 = vld [vmem:[%s4609_s0 + $0x88] sm:$0xff] }
  0x17   :  { %v78_v32 = vpack.c.bf16 %v54_v31, %v53_v30  ;;  %v79_v35 = vpack.c.bf16 %v56_v34, %v55_v33  ;;  %v57_v36 = vld [vmem:[%s4609_s0 + $0x90] sm:$0xff]  ;;  %v58_v37 = vld [vmem:[%s4609_s0 + $0x98] sm:$0xff]  ;;  %v59_v39 = vld [vmem:[%s4609_s0 + $0xa0] sm:$0xff] }
  0x18   :  { %2450 = vmatmul.mubr.msk.bf16.vlgmr.msra.gmra.mxu0 %vm135_vm0, %v71_v11  ;;  %2466 = vmatmul.mubr.msk.bf16.vlgmr.msra.gmra.mxu1 %vm135_vm0, %v71_v11  ;;  %v80_v38 = vpack.c.bf16 %v58_v37, %v57_v36  ;;  %v60_v40 = vld [vmem:[%s4609_s0 + $0xa8] sm:$0xff]  ;;  %v61_v42 = vld [vmem:[%s4609_s0 + $0xb0] sm:$0xff]  ;;  %v62_v43 = vld [vmem:[%s4609_s0 + $0xb8] sm:$0xff] }
  0x19   :  { %226 = vmatprep.mubr.bf16.mxu0 %v2717_v0  ;;  %419 = vmatprep.mubr.bf16.mxu1 %v2717_v0  ;;  %v81_v41 = vpack.c.bf16 %v60_v40, %v59_v39  ;;  %v82_v44 = vpack.c.bf16 %v62_v43, %v61_v42  ;;  %v63_v45 = vld [vmem:[%s4609_s0 + $0xc0] sm:$0xff]  ;;  %v64_v46 = vld [vmem:[%s4609_s0 + $0xc8] sm:$0xff]  ;;  %v65_v48 = vld [vmem:[%s4609_s0 + $0xd0] sm:$0xff] }
  0x1a   :  { %v83_v47 = vpack.c.bf16 %v64_v46, %v63_v45  ;;  %v66_v49 = vld [vmem:[%s4609_s0 + $0xd8] sm:$0xff]  ;;  %v67_v51 = vld [vmem:[%s4609_s0 + $0xe0] sm:$0xff]  ;;  %v68_v52 = vld [vmem:[%s4609_s0 + $0xe8] sm:$0xff] }
  0x1b   :  { %v84_v50 = vpack.c.bf16 %v66_v49, %v65_v48  ;;  %v85_v53 = vpack.c.bf16 %v68_v52, %v67_v51  ;;  %v69_v54 = vld [vmem:[%s4609_s0 + $0xf0] sm:$0xff]  ;;  %v70_v55 = vld [vmem:[%s4609_s0 + $0xf8] sm:$0xff]  ;;  %v2572_v61 = vld [vmem:[#allocation2 + $0x60] ss:$8 sps:$4 sm:$0xff]  }
  0x1c   :  { %v86_v56 = vpack.c.bf16 %v70_v55, %v69_v54  ;;  %v2566_v57 = vld [vmem:[#allocation2 + $0x70] ss:$8 sps:$4 sm:$0xff]   ;;  %v2568_v58 = vld [vmem:[#allocation2 + $0x74] ss:$8 sps:$4 sm:$0xff]   ;;  %v2574_v62 = vld [vmem:[#allocation2 + $0x64] ss:$8 sps:$4 sm:$0xff]  }
  0x1d   :  { %1975 = vmatprep.subr.bf16.mxu0 %v2568_v58  ;;  %v2569_v59 = vld [vmem:[#allocation2 + $0x170] ss:$8 sps:$4 sm:$0xff]   ;;  %v2571_v60 = vld [vmem:[#allocation2 + $0x174] ss:$8 sps:$4 sm:$0xff]   ;;  %v2575_v63 = vld [vmem:[#allocation2 + $0x160] ss:$8 sps:$4 sm:$0xff]  }
  0x1e   :  { %1976 = vmatpush1.bf16.msra.mxu0 %v2566_v57  ;;  %2168 = vmatprep.subr.bf16.mxu1 %v2571_v60  ;;  %v2578_v1 = vld [vmem:[#allocation2 + $0x50] ss:$8 sps:$4 sm:$0xff]   ;;  %v2580_v2 = vld [vmem:[#allocation2 + $0x54] ss:$8 sps:$4 sm:$0xff]   ;;  %v2584_v5 = vld [vmem:[#allocation2 + $0x40] ss:$8 sps:$4 sm:$0xff]  }
  0x1f   :  { %2169 = vmatpush1.bf16.msra.mxu1 %v2569_v59  ;;  %1977 = vmatprep.subr.bf16.mxu0 %v2574_v62  ;;  %v2581_v3 = vld [vmem:[#allocation2 + $0x150] ss:$8 sps:$4 sm:$0xff]   ;;  %v2583_v4 = vld [vmem:[#allocation2 + $0x154] ss:$8 sps:$4 sm:$0xff]   ;;  %v2586_v6 = vld [vmem:[#allocation2 + $0x44] ss:$8 sps:$4 sm:$0xff]  }
  0x20   :  { %2451 = vmatmul.mubr.msk.bf16.gmra.mxu0 %vm135_vm0, %v72_v14  ;;  %2467 = vmatmul.mubr.msk.bf16.gmra.mxu1 %vm135_vm0, %v72_v14  ;;  %v2587_v7 = vld [vmem:[#allocation2 + $0x140] ss:$8 sps:$4 sm:$0xff]   ;;  %v2589_v8 = vld [vmem:[#allocation2 + $0x144] ss:$8 sps:$4 sm:$0xff]   ;;  %v2590_v9 = vld [vmem:[#allocation2 + $0x30] ss:$8 sps:$4 sm:$0xff]  }
  0x21   :  { %236 = vmatprep.mubr.bf16.mxu0 %v2717_v0  ;;  %429 = vmatprep.mubr.bf16.mxu1 %v2717_v0  ;;  %v2592_v10 = vld [vmem:[#allocation2 + $0x34] ss:$8 sps:$4 sm:$0xff]   ;;  %v2593_v11 = vld [vmem:[#allocation2 + $0x130] ss:$8 sps:$4 sm:$0xff]   ;;  %v2596_v13 = vld [vmem:[#allocation2 + $0x20] ss:$8 sps:$4 sm:$0xff]  }
  0x22   :  { %1978 = vmatpush1.bf16.msra.mxu0 %v2572_v61  ;;  %v2595_v12 = vld [vmem:[#allocation2 + $0x134] ss:$8 sps:$4 sm:$0xff]   ;;  %v2598_v14 = vld [vmem:[#allocation2 + $0x24] ss:$8 sps:$4 sm:$0xff]   ;;  %v2599_v15 = vld [vmem:[#allocation2 + $0x120] ss:$8 sps:$4 sm:$0xff]  }
  0x23   :  { %1979 = vmatprep.subr.bf16.mxu0 %v2580_v2  ;;  %v2601_v16 = vld [vmem:[#allocation2 + $0x124] ss:$8 sps:$4 sm:$0xff]   ;;  %v2604_v18 = vld [vmem:[#allocation2 + $0x14] ss:$8 sps:$4 sm:$0xff]   ;;  %v2605_v19 = vld [vmem:[#allocation2 + $0x110] ss:$8 sps:$4 sm:$0xff]  }
  0x24   :  { %v2608_v45 = vld [vmem:[#allocation2] ss:$8 sps:$4 sm:$0xff]   ;;  %v2610_v46 = vld [vmem:[#allocation2 + $0x4] ss:$8 sps:$4 sm:$0xff]  }
  0x26   :  { %1980 = vmatpush1.bf16.msra.mxu0 %v2578_v1 }
  0x27   :  { %1981 = vmatprep.subr.bf16.mxu0 %v2586_v6 }
  0x28   :  { %2452 = vmatmul.mubr.msk.bf16.gmra.mxu0 %vm135_vm0, %v73_v17  ;;  %2468 = vmatmul.mubr.msk.bf16.gmra.mxu1 %vm135_vm0, %v73_v17  ;;  %v2602_v17 = vld [vmem:[#allocation2 + $0x10] ss:$8 sps:$4 sm:$0xff]  }
  0x29   :  { %246 = vmatprep.mubr.bf16.mxu0 %v2717_v0  ;;  %439 = vmatprep.mubr.bf16.mxu1 %v2717_v0 }
  0x2a   :  { %1982 = vmatpush1.bf16.msra.mxu0 %v2584_v5 }
  0x2b   :  { %1983 = vmatprep.subr.bf16.mxu0 %v2592_v10 }
  0x2e   :  { %1984 = vmatpush1.bf16.msra.mxu0 %v2590_v9 }
  0x2f   :  { %1985 = vmatprep.subr.bf16.mxu0 %v2598_v14 }
  0x30   :  { %2453 = vmatmul.mubr.msk.bf16.gmra.mxu0 %vm135_vm0, %v74_v20  ;;  %2469 = vmatmul.mubr.msk.bf16.gmra.mxu1 %vm135_vm0, %v74_v20  ;;  %v2607_v20 = vld [vmem:[#allocation2 + $0x114] ss:$8 sps:$4 sm:$0xff]  }
  0x31   :  { %256 = vmatprep.mubr.bf16.mxu0 %v2717_v0  ;;  %449 = vmatprep.mubr.bf16.mxu1 %v2717_v0 }
  0x32   :  { %1986 = vmatpush1.bf16.msra.mxu0 %v2596_v13 }
  0x33   :  { %1987 = vmatprep.subr.bf16.mxu0 %v2604_v18 }
  0x36   :  { %1988 = vmatpush1.bf16.msra.mxu0 %v2602_v17 }
  0x37   :  { %1989 = vmatprep.subr.bf16.mxu0 %v2610_v46 }
  0x38   :  { %2454 = vmatmul.mubr.msk.bf16.gmra.mxu0 %vm135_vm0, %v75_v23  ;;  %2470 = vmatmul.mubr.msk.bf16.gmra.mxu1 %vm135_vm0, %v75_v23 }
  0x39   :  { %266 = vmatprep.mubr.bf16.mxu0 %v2717_v0  ;;  %459 = vmatprep.mubr.bf16.mxu1 %v2717_v0 }
  0x3a   :  { %1990 = vmatpush1.bf16.msra.mxu0 %v2608_v45 }
  0x40   :  { %2455 = vmatmul.mubr.msk.bf16.gmra.mxu0 %vm135_vm0, %v76_v26  ;;  %2471 = vmatmul.mubr.msk.bf16.gmra.mxu1 %vm135_vm0, %v76_v26 }
  0x41   :  { %276 = vmatprep.mubr.bf16.mxu0 %v2717_v0  ;;  %469 = vmatprep.mubr.bf16.mxu1 %v2717_v0 }
  0x48   :  { %2456 = vmatmul.mubr.msk.bf16.gmra.mxu0 %vm135_vm0, %v77_v29  ;;  %2472 = vmatmul.mubr.msk.bf16.gmra.mxu1 %vm135_vm0, %v77_v29 }
  0x49   :  { %286 = vmatprep.mubr.bf16.mxu0 %v2717_v0  ;;  %479 = vmatprep.mubr.bf16.mxu1 %v2717_v0 }
  0x50   :  { %2457 = vmatmul.mubr.msk.bf16.gmra.mxu0 %vm135_vm0, %v78_v32  ;;  %2473 = vmatmul.mubr.msk.bf16.gmra.mxu1 %vm135_vm0, %v78_v32 }
  0x51   :  { %296 = vmatprep.mubr.bf16.mxu0 %v2717_v0  ;;  %489 = vmatprep.mubr.bf16.mxu1 %v2717_v0 }
  0x58   :  { %2458 = vmatmul.mubr.msk.bf16.gmra.mxu0 %vm135_vm0, %v79_v35  ;;  %2474 = vmatmul.mubr.msk.bf16.gmra.mxu1 %vm135_vm0, %v79_v35 }
  0x59   :  { %306 = vmatprep.mubr.bf16.mxu0 %v2717_v0  ;;  %499 = vmatprep.mubr.bf16.mxu1 %v2717_v0 }
  0x60   :  { %2459 = vmatmul.mubr.msk.bf16.gmra.mxu0 %vm135_vm0, %v80_v38  ;;  %2475 = vmatmul.mubr.msk.bf16.gmra.mxu1 %vm135_vm0, %v80_v38 }
  0x61   :  { %316 = vmatprep.mubr.bf16.mxu0 %v2717_v0  ;;  %509 = vmatprep.mubr.bf16.mxu1 %v2717_v0 }
  0x68   :  { %2460 = vmatmul.mubr.msk.bf16.gmra.mxu0 %vm135_vm0, %v81_v41  ;;  %2476 = vmatmul.mubr.msk.bf16.gmra.mxu1 %vm135_vm0, %v81_v41 }
  0x69   :  { %326 = vmatprep.mubr.bf16.mxu0 %v2717_v0  ;;  %519 = vmatprep.mubr.bf16.mxu1 %v2717_v0 }
  0x70   :  { %2461 = vmatmul.mubr.msk.bf16.gmra.mxu0 %vm135_vm0, %v82_v44  ;;  %2477 = vmatmul.mubr.msk.bf16.gmra.mxu1 %vm135_vm0, %v82_v44 }
  0x71   :  { %336 = vmatprep.mubr.bf16.mxu0 %v2717_v0  ;;  %529 = vmatprep.mubr.bf16.mxu1 %v2717_v0 }
  0x78   :  { %2462 = vmatmul.mubr.msk.bf16.gmra.mxu0 %vm135_vm0, %v83_v47  ;;  %2478 = vmatmul.mubr.msk.bf16.gmra.mxu1 %vm135_vm0, %v83_v47 }
  0x79   :  { %346 = vmatprep.mubr.bf16.mxu0 %v2717_v0  ;;  %539 = vmatprep.mubr.bf16.mxu1 %v2717_v0 }
  0x80   :  { %2463 = vmatmul.mubr.msk.bf16.gmra.mxu0 %vm135_vm0, %v84_v50  ;;  %2479 = vmatmul.mubr.msk.bf16.gmra.mxu1 %vm135_vm0, %v84_v50 }
  0x81   :  { %356 = vmatprep.mubr.bf16.mxu0 %v2717_v0  ;;  %549 = vmatprep.mubr.bf16.mxu1 %v2717_v0 }
  0x88   :  { %2464 = vmatmul.mubr.msk.bf16.gmra.mxu0 %vm135_vm0, %v85_v53  ;;  %2480 = vmatmul.mubr.msk.bf16.gmra.mxu1 %vm135_vm0, %v85_v53 }
  0x89   :  { %366 = vmatprep.mubr.bf16.mxu0 %v2717_v0  ;;  %559 = vmatprep.mubr.bf16.mxu1 %v2717_v0  ;;  %v2577_v0 = vld [vmem:[#allocation2 + $0x164] ss:$8 sps:$4 sm:$0xff]  }
  0x8a   :  { %2170 = vmatprep.subr.bf16.mxu1 %v2577_v0 }
  0x8b   :  { %2171 = vmatpush1.bf16.msra.mxu1 %v2575_v63 }
  0x8c   :  { %2172 = vmatprep.subr.bf16.mxu1 %v2583_v4 }
  0x8f   :  { %2173 = vmatpush1.bf16.msra.mxu1 %v2581_v3 }
  0x90   :  { %2465 = vmatmul.mubr.msk.bf16.gmra.mxu0 %vm135_vm0, %v86_v56  ;;  %2481 = vmatmul.mubr.msk.bf16.gmra.mxu1 %vm135_vm0, %v86_v56 }
  0x91   :  { %2174 = vmatprep.subr.bf16.mxu1 %v2589_v8 }
  0x93   :  { %2175 = vmatpush1.bf16.msra.mxu1 %v2587_v7 }
  0x94   :  { %2176 = vmatprep.subr.bf16.mxu1 %v2595_v12 }
  0x97   :  { %2177 = vmatpush1.bf16.msra.mxu1 %v2593_v11 }
  0x98   :  { %2178 = vmatprep.subr.bf16.mxu1 %v2601_v16 }
  0x9b   :  { %2179 = vmatpush1.bf16.msra.mxu1 %v2599_v15 }
  0x9c   :  { %2180 = vmatprep.subr.bf16.mxu1 %v2607_v20 }
  0x9f   :  { %2181 = vmatpush1.bf16.msra.mxu1 %v2605_v19 }
  0xd8   :  { %v2944_v21 = vpop.f32.mrf.mxu0  ;;  %v2946_v22 = vpop.f32.mrf.mxu1 }
  0xd9   :  { %v723_v59 = vmul.f32 %v2944_v21, %v2944_v21  ;;  %v725_v60 = vmul.f32 %v2946_v22, %v2946_v22 }
  0xda   :  { %v2948_v23 = vpop.f32.mrf.mxu0  ;;  %v2950_v24 = vpop.f32.mrf.mxu1 }
  0xdb   :  { %v724_v61 = vmul.f32 %v2948_v23, %v2948_v23  ;;  %v726_v62 = vmul.f32 %v2950_v24, %v2950_v24 }
  0xdc   :  { %v2952_v25 = vpop.f32.mrf.mxu0  ;;  %v2954_v26 = vpop.f32.mrf.mxu1 }
  0xdd   :  { %v727_v55 = vmul.f32 %v2952_v25, %v2952_v25  ;;  %v729_v56 = vmul.f32 %v2954_v26, %v2954_v26  ;;  %v570_v3 = vadd.f32 %v2952_v25, %v2944_v21  ;;  %v644_v4 = vadd.f32 %v2954_v26, %v2946_v22 }
  0xde   :  { %v2956_v27 = vpop.f32.mrf.mxu0  ;;  %v2958_v28 = vpop.f32.mrf.mxu1 }
  0xdf   :  { %v728_v63 = vmul.f32 %v2956_v27, %v2956_v27  ;;  %v730_v0 = vmul.f32 %v2958_v28, %v2958_v28  ;;  %v851_v7 = vadd.f32 %v727_v55, %v723_v59  ;;  %v925_v8 = vadd.f32 %v729_v56, %v725_v60 }
  0xe0   :  { %v2960_v29 = vpop.f32.mrf.mxu0  ;;  %v2962_v30 = vpop.f32.mrf.mxu1  ;;  %v607_v9 = vadd.f32 %v2956_v27, %v2948_v23  ;;  %v681_v15 = vadd.f32 %v2958_v28, %v2950_v24 }
  0xe1   :  { %4727 = vst [vmem:[#allocation8_spill] sm:$0xff] %v2962_v30  ;;  %v731_v5 = vmul.f32 %v2960_v29, %v2960_v29  ;;  %v733_v6 = vmul.f32 %v2962_v30, %v2962_v30  ;;  %v571_v13 = vadd.f32 %v570_v3, %v2960_v29  ;;  %v645_v14 = vadd.f32 %v644_v4, %v2962_v30 }
  0xe2   :  { %v2964_v31 = vpop.f32.mrf.mxu0  ;;  %v2966_v32 = vpop.f32.mrf.mxu1  ;;  %v888_v17 = vadd.f32 %v728_v63, %v724_v61  ;;  %v962_v18 = vadd.f32 %v730_v0, %v726_v62 }
  0xe3   :  { %v732_v10 = vmul.f32 %v2964_v31, %v2964_v31  ;;  %v734_v16 = vmul.f32 %v2966_v32, %v2966_v32  ;;  %v852_v55 = vadd.f32 %v851_v7, %v731_v5  ;;  %v926_v56 = vadd.f32 %v925_v8, %v733_v6 }
  0xe4   :  { %v2968_v33 = vpop.f32.mrf.mxu0  ;;  %v2970_v34 = vpop.f32.mrf.mxu1  ;;  %v608_v59 = vadd.f32 %v607_v9, %v2964_v31  ;;  %v682_v60 = vadd.f32 %v681_v15, %v2966_v32 }
  0xe5   :  { %4728 = vst [vmem:[#allocation9_spill] sm:$0xff] %v2968_v33  ;;  %4729 = vst [vmem:[#allocation10_spill] sm:$0xff] %v2970_v34  ;;  %v735_v19 = vmul.f32 %v2968_v33, %v2968_v33  ;;  %v737_v20 = vmul.f32 %v2970_v34, %v2970_v34  ;;  %v889_v3 = vadd.f32 %v888_v17, %v732_v10 }
  0xe6   :  { %v2972_v35 = vpop.f32.mrf.mxu0  ;;  %v2974_v36 = vpop.f32.mrf.mxu1  ;;  %v572_v61 = vadd.f32 %v571_v13, %v2968_v33  ;;  %v963_v30 = vadd.f32 %v962_v18, %v734_v16  ;;  %v646_v5 = vadd.f32 %v645_v14, %v2970_v34 }
  0xe7   :  { %4730 = vst [vmem:[#allocation11_spill] sm:$0xff] %v2972_v35  ;;  %4731 = vst [vmem:[#allocation12_spill] sm:$0xff] %v2974_v36  ;;  %v736_v62 = vmul.f32 %v2972_v35, %v2972_v35  ;;  %v738_v63 = vmul.f32 %v2974_v36, %v2974_v36  ;;  %v853_v8 = vadd.f32 %v852_v55, %v735_v19 }
  0xe8   :  { %v2976_v37 = vpop.f32.mrf.mxu0  ;;  %v2978_v38 = vpop.f32.mrf.mxu1  ;;  %v927_v9 = vadd.f32 %v926_v56, %v737_v20  ;;  %v609_v10 = vadd.f32 %v608_v59, %v2972_v35  ;;  %v683_v18 = vadd.f32 %v682_v60, %v2974_v36 }
  0xe9   :  { %4732 = vst [vmem:[#allocation13_spill] sm:$0xff] %v2976_v37  ;;  %4733 = vst [vmem:[#allocation14_spill] sm:$0xff] %v2978_v38  ;;  %v739_v6 = vmul.f32 %v2976_v37, %v2976_v37  ;;  %v741_v7 = vmul.f32 %v2978_v38, %v2978_v38  ;;  %v573_v16 = vadd.f32 %v572_v61, %v2976_v37 }
  0xea   :  { %v2980_v39 = vpop.f32.mrf.mxu0  ;;  %v2982_v40 = vpop.f32.mrf.mxu1  ;;  %v647_v14 = vadd.f32 %v646_v5, %v2978_v38  ;;  %v890_v19 = vadd.f32 %v889_v3, %v736_v62  ;;  %v964_v20 = vadd.f32 %v963_v30, %v738_v63 }
  0xeb   :  { %v740_v13 = vmul.f32 %v2980_v39, %v2980_v39  ;;  %v742_v34 = vmul.f32 %v2982_v40, %v2982_v40  ;;  %v854_v61 = vadd.f32 %v853_v8, %v739_v6  ;;  %v928_v37 = vadd.f32 %v927_v9, %v741_v7 }
  0xec   :  { %v2984_v41 = vpop.f32.mrf.mxu0  ;;  %v2986_v42 = vpop.f32.mrf.mxu1  ;;  %v610_v5 = vadd.f32 %v609_v10, %v2980_v39  ;;  %v684_v60 = vadd.f32 %v683_v18, %v2982_v40 }
  0xed   :  { %4734 = vst [vmem:[#allocation15_spill] sm:$0xff] %v2986_v42  ;;  %v743_v55 = vmul.f32 %v2984_v41, %v2984_v41  ;;  %v745_v56 = vmul.f32 %v2986_v42, %v2986_v42  ;;  %v891_v38 = vadd.f32 %v890_v19, %v740_v13  ;;  %v574_v3 = vadd.f32 %v573_v16, %v2984_v41 }
  0xee   :  { %v2988_v43 = vpop.f32.mrf.mxu0  ;;  %v2990_v44 = vpop.f32.mrf.mxu1  ;;  %v965_v33 = vadd.f32 %v964_v20, %v742_v34  ;;  %v648_v6 = vadd.f32 %v647_v14, %v2986_v42 }
  0xef   :  { %4735 = vst [vmem:[#allocation16_spill] sm:$0xff] %v2988_v43  ;;  %4736 = vst [vmem:[#allocation17_spill] sm:$0xff] %v2990_v44  ;;  %v744_v30 = vmul.f32 %v2988_v43, %v2988_v43  ;;  %v746_v62 = vmul.f32 %v2990_v44, %v2990_v44  ;;  %v855_v9 = vadd.f32 %v854_v61, %v743_v55 }
  0xf0   :  { %v2992_v47 = vpop.f32.mrf.mxu0  ;;  %v2994_v48 = vpop.f32.mrf.mxu1  ;;  %v929_v10 = vadd.f32 %v928_v37, %v745_v56  ;;  %v611_v13 = vadd.f32 %v610_v5, %v2988_v43  ;;  %v685_v20 = vadd.f32 %v684_v60, %v2990_v44 }
  0xf1   :  { %4737 = vst [vmem:[#allocation18_spill] sm:$0xff] %v2992_v47  ;;  %4738 = vst [vmem:[#allocation19_spill] sm:$0xff] %v2994_v48  ;;  %v747_v7 = vmul.f32 %v2992_v47, %v2992_v47  ;;  %v749_v8 = vmul.f32 %v2994_v48, %v2994_v48  ;;  %v575_v34 = vadd.f32 %v574_v3, %v2992_v47 }
  0xf2   :  { %v2996_v49 = vpop.f32.mrf.mxu0  ;;  %v2998_v50 = vpop.f32.mrf.mxu1  ;;  %v649_v14 = vadd.f32 %v648_v6, %v2994_v48  ;;  %v892_v55 = vadd.f32 %v891_v38, %v744_v30  ;;  %v966_v37 = vadd.f32 %v965_v33, %v746_v62 }
  0xf3   :  { %4739 = vst [vmem:[#allocation20_spill] sm:$0xff] %v2996_v49  ;;  %4740 = vst [vmem:[#allocation21_spill] sm:$0xff] %v2998_v50  ;;  %v748_v16 = vmul.f32 %v2996_v49, %v2996_v49  ;;  %v750_v42 = vmul.f32 %v2998_v50, %v2998_v50  ;;  %v856_v3 = vadd.f32 %v855_v9, %v747_v7 }
  0xf4   :  { %v3000_v51 = vpop.f32.mrf.mxu0  ;;  %v3002_v52 = vpop.f32.mrf.mxu1  ;;  %v930_v47 = vadd.f32 %v929_v10, %v749_v8  ;;  %v612_v6 = vadd.f32 %v611_v13, %v2996_v49  ;;  %v686_v60 = vadd.f32 %v685_v20, %v2998_v50 }
  0xf5   :  { %4741 = vst [vmem:[#allocation22_spill] sm:$0xff] %v3002_v52  ;;  %v751_v56 = vmul.f32 %v3000_v51, %v3000_v51  ;;  %v753_v61 = vmul.f32 %v3002_v52, %v3002_v52  ;;  %v893_v48 = vadd.f32 %v892_v55, %v748_v16  ;;  %v967_v7 = vadd.f32 %v966_v37, %v750_v42 }
  0xf6   :  { %v3004_v53 = vpop.f32.mrf.mxu0  ;;  %v3006_v54 = vpop.f32.mrf.mxu1  ;;  %v576_v8 = vadd.f32 %v575_v34, %v3000_v51  ;;  %v650_v9 = vadd.f32 %v649_v14, %v3002_v52 }
  0xf7   :  { %4742 = vst [vmem:[#allocation23_spill] sm:$0xff] %v3004_v53  ;;  %4743 = vst [vmem:[#allocation24_spill] sm:$0xff] %v3006_v54  ;;  %v752_v33 = vmul.f32 %v3004_v53, %v3004_v53  ;;  %v754_v38 = vmul.f32 %v3006_v54, %v3006_v54  ;;  %v857_v13 = vadd.f32 %v856_v3, %v751_v56 }
  0xf8   :  { %v3012_v57 = vpop.f32.mrf.mxu0  ;;  %v3014_v58 = vpop.f32.mrf.mxu1  ;;  %v931_v16 = vadd.f32 %v930_v47, %v753_v61  ;;  %v613_v20 = vadd.f32 %v612_v6, %v3004_v53  ;;  %v687_v34 = vadd.f32 %v686_v60, %v3006_v54 }
  0xf9   :  { %4744 = vst [vmem:[#allocation25_spill] sm:$0xff] %v3012_v57  ;;  %4745 = vst [vmem:[#allocation26_spill] sm:$0xff] %v3014_v58  ;;  %v755_v30 = vmul.f32 %v3012_v57, %v3012_v57  ;;  %v757_v10 = vmul.f32 %v3014_v58, %v3014_v58  ;;  %v577_v42 = vadd.f32 %v576_v8, %v3012_v57 }
  0xfa   :  { %v3028_v1 = vpop.f32.mrf.mxu0  ;;  %v3030_v2 = vpop.f32.mrf.mxu1  ;;  %v651_v56 = vadd.f32 %v650_v9, %v3014_v58  ;;  %v894_v61 = vadd.f32 %v893_v48, %v752_v33  ;;  %v968_v3 = vadd.f32 %v967_v7, %v754_v38 }
  0xfb   :  { %4746 = vst [vmem:[#allocation27_spill] sm:$0xff] %v3030_v2  ;;  %v756_v55 = vmul.f32 %v3028_v1, %v3028_v1  ;;  %v758_v14 = vmul.f32 %v3030_v2, %v3030_v2  ;;  %v858_v47 = vadd.f32 %v857_v13, %v755_v30  ;;  %v932_v53 = vadd.f32 %v931_v16, %v757_v10 }
  0xfc   :  { %v3044_v11 = vpop.f32.mrf.mxu0  ;;  %v3046_v12 = vpop.f32.mrf.mxu1  ;;  %v614_v8 = vadd.f32 %v613_v20, %v3028_v1  ;;  %v688_v30 = vadd.f32 %v687_v34, %v3030_v2 }
  0xfd   :  { %4747 = vst [vmem:[#allocation28_spill] sm:$0xff] %v3046_v12  ;;  %v759_v37 = vmul.f32 %v3044_v11, %v3044_v11  ;;  %v761_v60 = vmul.f32 %v3046_v12, %v3046_v12  ;;  %v895_v54 = vadd.f32 %v894_v61, %v756_v55  ;;  %v969_v9 = vadd.f32 %v968_v3, %v758_v14 }
  0xfe   :  { %v3058_v45 = vpop.f32.mrf.mxu0  ;;  %v3060_v46 = vpop.f32.mrf.mxu1  ;;  %v578_v10 = vadd.f32 %v577_v42, %v3044_v11  ;;  %v652_v16 = vadd.f32 %v651_v56, %v3046_v12 }
  0xff   :  { %4748 = vst [vmem:[#allocation29_spill] sm:$0xff] %v3058_v45  ;;  %4749 = vst [vmem:[#allocation30_spill] sm:$0xff] %v3060_v46  ;;  %v760_v57 = vmul.f32 %v3058_v45, %v3058_v45  ;;  %v762_v48 = vmul.f32 %v3060_v46, %v3060_v46  ;;  %v859_v13 = vadd.f32 %v858_v47, %v759_v37 }
 0x100   :  { %v3069_v0 = vpop.f32.mrf.mxu0  ;;  %v3071_v4 = vpop.f32.mrf.mxu1  ;;  %v615_v20 = vadd.f32 %v614_v8, %v3058_v45  ;;  %v689_v55 = vadd.f32 %v688_v30, %v3060_v46  ;;  %v933_v14 = vadd.f32 %v932_v53, %v761_v60 }
 0x101   :  { %4750 = vst [vmem:[#allocation31_spill] sm:$0xff] %v3071_v4  ;;  %v763_v33 = vmul.f32 %v3069_v0, %v3069_v0  ;;  %v765_v34 = vmul.f32 %v3071_v4, %v3071_v4  ;;  %v896_v3 = vadd.f32 %v895_v54, %v760_v57  ;;  %v970_v47 = vadd.f32 %v969_v9, %v762_v48 }
 0x102   :  { %v3081_v15 = vpop.f32.mrf.mxu0  ;;  %v3083_v17 = vpop.f32.mrf.mxu1  ;;  %v579_v56 = vadd.f32 %v578_v10, %v3069_v0  ;;  %v653_v30 = vadd.f32 %v652_v16, %v3071_v4 }
 0x103   :  { %4751 = vst [vmem:[#allocation32_spill] sm:$0xff] %v3081_v15  ;;  %4752 = vst [vmem:[#allocation33_spill] sm:$0xff] %v3083_v17  ;;  %v764_v61 = vmul.f32 %v3081_v15, %v3081_v15  ;;  %v766_v42 = vmul.f32 %v3083_v17, %v3083_v17  ;;  %v860_v8 = vadd.f32 %v859_v13, %v763_v33 }
 0x104   :  { %v3094_v59 = vpop.f32.mrf.mxu0  ;;  %v3096_v35 = vpop.f32.mrf.mxu1  ;;  %v616_v45 = vadd.f32 %v615_v20, %v3081_v15  ;;  %v690_v53 = vadd.f32 %v689_v55, %v3083_v17  ;;  %v934_v60 = vadd.f32 %v933_v14, %v765_v34 }
 0x105   :  { %4753 = vst [vmem:[#allocation34_spill] sm:$0xff] %v3096_v35  ;;  %v767_v37 = vmul.f32 %v3094_v59, %v3094_v59  ;;  %v769_v54 = vmul.f32 %v3096_v35, %v3096_v35  ;;  %v897_v48 = vadd.f32 %v896_v3, %v764_v61  ;;  %v971_v16 = vadd.f32 %v970_v47, %v766_v42 }
 0x106   :  { %v3105_v63 = vpop.f32.mrf.mxu0  ;;  %v3107_v36 = vpop.f32.mrf.mxu1  ;;  %v580_v20 = vadd.f32 %v579_v56, %v3094_v59  ;;  %v654_v17 = vadd.f32 %v653_v30, %v3096_v35 }
 0x107   :  { %4754 = vst [vmem:[#allocation35_spill] sm:$0xff] %v3105_v63  ;;  %4755 = vst [vmem:[#allocation36_spill] sm:$0xff] %v3107_v36  ;;  %v768_v57 = vmul.f32 %v3105_v63, %v3105_v63  ;;  %v770_v33 = vmul.f32 %v3107_v36, %v3107_v36  ;;  %v861_v55 = vadd.f32 %v860_v8, %v767_v37 }
 0x108   :  { %v3117_v18 = vpop.f32.mrf.mxu0  ;;  %v3119_v19 = vpop.f32.mrf.mxu1  ;;  %v617_v4 = vadd.f32 %v616_v45, %v3105_v63  ;;  %v691_v34 = vadd.f32 %v690_v53, %v3107_v36  ;;  %v935_v42 = vadd.f32 %v934_v60, %v769_v54 }
 0x109   :  { %4756 = vst [vmem:[#allocation37_spill] sm:$0xff] %v3119_v19  ;;  %v771_v9 = vmul.f32 %v3117_v18, %v3117_v18  ;;  %v773_v61 = vmul.f32 %v3119_v19, %v3119_v19  ;;  %v898_v47 = vadd.f32 %v897_v48, %v768_v57  ;;  %v972_v56 = vadd.f32 %v971_v16, %v770_v33 }
 0x10a   :  { %v3130_v5 = vpop.f32.mrf.mxu0  ;;  %v3132_v43 = vpop.f32.mrf.mxu1  ;;  %v581_v8 = vadd.f32 %v580_v20, %v3117_v18  ;;  %v655_v53 = vadd.f32 %v654_v17, %v3119_v19 }
 0x10b   :  { %4757 = vst [vmem:[#allocation38_spill] sm:$0xff] %v3130_v5  ;;  %4758 = vst [vmem:[#allocation39_spill] sm:$0xff] %v3132_v43  ;;  %v772_v14 = vmul.f32 %v3130_v5, %v3130_v5  ;;  %v774_v37 = vmul.f32 %v3132_v43, %v3132_v43  ;;  %v862_v30 = vadd.f32 %v861_v55, %v771_v9 }
 0x10c   :  { %v3142_v62 = vpop.f32.mrf.mxu0  ;;  %v3144_v44 = vpop.f32.mrf.mxu1  ;;  %v618_v63 = vadd.f32 %v617_v4, %v3130_v5  ;;  %v692_v54 = vadd.f32 %v691_v34, %v3132_v43  ;;  %v936_v48 = vadd.f32 %v935_v42, %v773_v61 }
 0x10d   :  { %4759 = vst [vmem:[#allocation40_spill] sm:$0xff] %v3144_v44  ;;  %v775_v45 = vmul.f32 %v3142_v62, %v3142_v62  ;;  %v777_v57 = vmul.f32 %v3144_v44, %v3144_v44  ;;  %v899_v33 = vadd.f32 %v898_v47, %v772_v14  ;;  %v973_v4 = vadd.f32 %v972_v56, %v774_v37 }
 0x10e   :  { %v3153_v50 = vpop.f32.mrf.mxu0  ;;  %v3155_v49 = vpop.f32.mrf.mxu1  ;;  %v582_v55 = vadd.f32 %v581_v8, %v3142_v62  ;;  %v656_v43 = vadd.f32 %v655_v53, %v3144_v44 }
 0x10f   :  { %4760 = vst [vmem:[#allocation41_spill] sm:$0xff] %v3153_v50  ;;  %4761 = vst [vmem:[#allocation42_spill] sm:$0xff] %v3155_v49  ;;  %v776_v60 = vmul.f32 %v3153_v50, %v3153_v50  ;;  %v778_v9 = vmul.f32 %v3155_v49, %v3155_v49  ;;  %v863_v34 = vadd.f32 %v862_v30, %v775_v45 }
 0x110   :  { %v3164_v6 = vpop.f32.mrf.mxu0  ;;  %v3166_v52 = vpop.f32.mrf.mxu1  ;;  %v619_v19 = vadd.f32 %v618_v63, %v3153_v50  ;;  %v693_v61 = vadd.f32 %v692_v54, %v3155_v49  ;;  %v937_v37 = vadd.f32 %v936_v48, %v777_v57 }
 0x111   :  { %4762 = vst [vmem:[#allocation43_spill] sm:$0xff] %v3164_v6  ;;  %4763 = vst [vmem:[#allocation44_spill] sm:$0xff] %v3166_v52  ;;  %v779_v17 = vmul.f32 %v3164_v6, %v3164_v6  ;;  %v781_v14 = vmul.f32 %v3166_v52, %v3166_v52  ;;  %v900_v56 = vadd.f32 %v899_v33, %v776_v60 }
 0x112   :  { %v3178_v38 = vpop.f32.mrf.mxu0  ;;  %v3180_v7 = vpop.f32.mrf.mxu1  ;;  %v974_v8 = vadd.f32 %v973_v4, %v778_v9  ;;  %v583_v30 = vadd.f32 %v582_v55, %v3164_v6  ;;  %v657_v54 = vadd.f32 %v656_v43, %v3166_v52 }
 0x113   :  { %4764 = vst [vmem:[#allocation45_spill] sm:$0xff] %v3180_v7  ;;  %v780_v42 = vmul.f32 %v3178_v38, %v3178_v38  ;;  %v782_v45 = vmul.f32 %v3180_v7, %v3180_v7  ;;  %v864_v53 = vadd.f32 %v863_v34, %v779_v17  ;;  %v620_v50 = vadd.f32 %v619_v19, %v3178_v38 }
 0x114   :  { %v3190_v2 = vpop.f32.mrf.mxu0  ;;  %v3192_v58 = vpop.f32.mrf.mxu1  ;;  %v694_v57 = vadd.f32 %v693_v61, %v3180_v7  ;;  %v938_v33 = vadd.f32 %v937_v37, %v781_v14 }
 0x115   :  { %4765 = vst [vmem:[#allocation46_spill] sm:$0xff] %v3190_v2  ;;  %4766 = vst [vmem:[#allocation47_spill] sm:$0xff] %v3192_v58  ;;  %v783_v63 = vmul.f32 %v3190_v2, %v3190_v2  ;;  %v785_v60 = vmul.f32 %v3192_v58, %v3192_v58  ;;  %v901_v9 = vadd.f32 %v900_v56, %v780_v42 }
 0x116   :  { %v3200_v46 = vpop.f32.mrf.mxu0  ;;  %v3202_v12 = vpop.f32.mrf.mxu1  ;;  %v975_v19 = vadd.f32 %v974_v8, %v782_v45  ;;  %v584_v34 = vadd.f32 %v583_v30, %v3190_v2  ;;  %v658_v52 = vadd.f32 %v657_v54, %v3192_v58 }
 0x117   :  { %4767 = vst [vmem:[#allocation48_spill] sm:$0xff] %v3202_v12  ;;  %v784_v48 = vmul.f32 %v3200_v46, %v3200_v46  ;;  %v786_v17 = vmul.f32 %v3202_v12, %v3202_v12  ;;  %v865_v61 = vadd.f32 %v864_v53, %v783_v63  ;;  %v621_v6 = vadd.f32 %v620_v50, %v3200_v46 }
 0x118   :  { %v3214_v10 = vpop.f32.mrf.mxu0  ;;  %v3216_v13 = vpop.f32.mrf.mxu1  ;;  %v695_v14 = vadd.f32 %v694_v57, %v3202_v12  ;;  %v939_v45 = vadd.f32 %v938_v33, %v785_v60 }
 0x119   :  { %4768 = vst [vmem:[#allocation49_spill] sm:$0xff] %v3216_v13  ;;  %v787_v43 = vmul.f32 %v3214_v10, %v3214_v10  ;;  %v789_v42 = vmul.f32 %v3216_v13, %v3216_v13  ;;  %v902_v8 = vadd.f32 %v901_v9, %v784_v48  ;;  %v976_v30 = vadd.f32 %v975_v19, %v786_v17 }
 0x11a   :  { %v3226_v3 = vpop.f32.mrf.mxu0  ;;  %v3228_v15 = vpop.f32.mrf.mxu1  ;;  %v585_v53 = vadd.f32 %v584_v34, %v3214_v10  ;;  %v659_v57 = vadd.f32 %v658_v52, %v3216_v13 }
 0x11b   :  { %4769 = vst [vmem:[#allocation50_spill] sm:$0xff] %v3226_v3  ;;  %4770 = vst [vmem:[#allocation51_spill] sm:$0xff] %v3228_v15  ;;  %v788_v37 = vmul.f32 %v3226_v3, %v3226_v3  ;;  %v790_v63 = vmul.f32 %v3228_v15, %v3228_v15  ;;  %v866_v54 = vadd.f32 %v865_v61, %v787_v43 }
 0x11c   :  { %v3236_v36 = vpop.f32.mrf.mxu0  ;;  %v3238_v35 = vpop.f32.mrf.mxu1  ;;  %v622_v12 = vadd.f32 %v621_v6, %v3226_v3  ;;  %v696_v60 = vadd.f32 %v695_v14, %v3228_v15  ;;  %v940_v9 = vadd.f32 %v939_v45, %v789_v42 }
 0x11d   :  { %4771 = vst [vmem:[#allocation52_spill] sm:$0xff] %v3236_v36  ;;  %4772 = vst [vmem:[#allocation53_spill] sm:$0xff] %v3238_v35  ;;  %v791_v50 = vmul.f32 %v3236_v36, %v3236_v36  ;;  %v793_v48 = vmul.f32 %v3238_v35, %v3238_v35  ;;  %v903_v17 = vadd.f32 %v902_v8, %v788_v37 }
 0x11e   :  { %v3250_v16 = vpop.f32.mrf.mxu0  ;;  %v3252_v20 = vpop.f32.mrf.mxu1  ;;  %v977_v6 = vadd.f32 %v976_v30, %v790_v63  ;;  %v586_v61 = vadd.f32 %v585_v53, %v3236_v36  ;;  %v660_v15 = vadd.f32 %v659_v57, %v3238_v35 }
 0x11f   :  { %4773 = vst [vmem:[#allocation54_spill] sm:$0xff] %v3250_v16  ;;  %4774 = vst [vmem:[#allocation55_spill] sm:$0xff] %v3252_v20  ;;  %v792_v33 = vmul.f32 %v3250_v16, %v3250_v16  ;;  %v794_v43 = vmul.f32 %v3252_v20, %v3252_v20  ;;  %v867_v14 = vadd.f32 %v866_v54, %v791_v50 }
 0x120   :  { %v3262_v47 = vpop.f32.mrf.mxu0  ;;  %v3264_v5 = vpop.f32.mrf.mxu1  ;;  %v623_v3 = vadd.f32 %v622_v12, %v3250_v16  ;;  %v697_v42 = vadd.f32 %v696_v60, %v3252_v20  ;;  %v941_v63 = vadd.f32 %v940_v9, %v793_v48 }
 0x121   :  { %4775 = vst [vmem:[#allocation56_spill] sm:$0xff] %v3262_v47  ;;  %4776 = vst [vmem:[#allocation57_spill] sm:$0xff] %v3264_v5  ;;  %v795_v52 = vmul.f32 %v3262_v47, %v3262_v47  ;;  %v797_v37 = vmul.f32 %v3264_v5, %v3264_v5  ;;  %v904_v30 = vadd.f32 %v903_v17, %v792_v33 }
 0x122   :  { %v3272_v49 = vpop.f32.mrf.mxu0  ;;  %v3274_v44 = vpop.f32.mrf.mxu1  ;;  %v978_v53 = vadd.f32 %v977_v6, %v794_v43  ;;  %v587_v54 = vadd.f32 %v586_v61, %v3262_v47  ;;  %v661_v60 = vadd.f32 %v660_v15, %v3264_v5 }
 0x123   :  { %4777 = vst [vmem:[#allocation58_spill] sm:$0xff] %v3272_v49  ;;  %4778 = vst [vmem:[#allocation59_spill] sm:$0xff] %v3274_v44  ;;  %v796_v45 = vmul.f32 %v3272_v49, %v3272_v49  ;;  %v798_v50 = vmul.f32 %v3274_v44, %v3274_v44  ;;  %v868_v57 = vadd.f32 %v867_v14, %v795_v52 }
 0x124   :  { %v3286_v4 = vpop.f32.mrf.mxu0  ;;  %v3288_v55 = vpop.f32.mrf.mxu1  ;;  %v624_v35 = vadd.f32 %v623_v3, %v3272_v49  ;;  %v698_v48 = vadd.f32 %v697_v42, %v3274_v44  ;;  %v942_v17 = vadd.f32 %v941_v63, %v797_v37  ;;  %v2613_v3 = vld [vmem:[#allocation2 + $0x104] ss:$8 sps:$4 sm:$0xff]   ;;  %v2611_v49 = vld [vmem:[#allocation2 + $0x100] ss:$8 sps:$4 sm:$0xff]  }
 0x125   :  { %4779 = vst [vmem:[#allocation60_spill] sm:$0xff] %v3288_v55  ;;  %v799_v12 = vmul.f32 %v3286_v4, %v3286_v4  ;;  %v801_v33 = vmul.f32 %v3288_v55, %v3288_v55  ;;  %v905_v43 = vadd.f32 %v904_v30, %v796_v45  ;;  %v979_v14 = vadd.f32 %v978_v53, %v798_v50 }
 0x126   :  { %v3298_v56 = vpop.f32.mrf.mxu0  ;;  %v3300_v7 = vpop.f32.mrf.mxu1  ;;  %v588_v42 = vadd.f32 %v587_v54, %v3286_v4  ;;  %v662_v5 = vadd.f32 %v661_v60, %v3288_v55  ;;  %2182 = vmatprep.subr.bf16.mxu1 %v2613_v3  ;;  %v2616_v3 = vld [vmem:[#allocation2 + $0xf4] ss:$8 sps:$4 sm:$0xff]  }
 0x127   :  { %4780 = vst [vmem:[#allocation61_spill] sm:$0xff] %v3300_v7  ;;  %v800_v9 = vmul.f32 %v3298_v56, %v3298_v56  ;;  %v802_v52 = vmul.f32 %v3300_v7, %v3300_v7  ;;  %v869_v44 = vadd.f32 %v868_v57, %v799_v12  ;;  %v625_v37 = vadd.f32 %v624_v35, %v3298_v56 }
 0x128   :  { %v3308_v58 = vpop.f32.mrf.mxu0  ;;  %v3310_v2 = vpop.f32.mrf.mxu1  ;;  %v699_v45 = vadd.f32 %v698_v48, %v3300_v7  ;;  %v943_v50 = vadd.f32 %v942_v17, %v801_v33  ;;  %2183 = vmatpush1.bf16.msra.mxu1 %v2611_v49  ;;  %v2619_v33 = vld [vmem:[#allocation2 + $0x1f4] ss:$8 sps:$4 sm:$0xff]   ;;  %1991 = vmatprep.subr.bf16.mxu0 %v2616_v3 }
 0x129   :  { %4781 = vst [vmem:[#allocation62_spill] sm:$0xff] %v3308_v58  ;;  %4782 = vst [vmem:[#allocation63_spill] sm:$0xff] %v3310_v2  ;;  %v803_v15 = vmul.f32 %v3308_v58, %v3308_v58  ;;  %v805_v63 = vmul.f32 %v3310_v2, %v3310_v2  ;;  %v906_v12 = vadd.f32 %v905_v43, %v800_v9  ;;  %v2617_v43 = vld [vmem:[#allocation2 + $0x1f0] ss:$8 sps:$4 sm:$0xff]   ;;  %2184 = vmatprep.subr.bf16.mxu1 %v2619_v33 }
 0x12a   :  { %v3322_v19 = vpop.f32.mrf.mxu0  ;;  %v3324_v34 = vpop.f32.mrf.mxu1  ;;  %v589_v53 = vadd.f32 %v588_v42, %v3308_v58  ;;  %v980_v54 = vadd.f32 %v979_v14, %v802_v52  ;;  %v663_v60 = vadd.f32 %v662_v5, %v3310_v2  ;;  %v2614_v5 = vld [vmem:[#allocation2 + $0xf0] ss:$8 sps:$4 sm:$0xff]  }
 0x12b   :  { %4783 = vst [vmem:[#allocation64_spill] sm:$0xff] %v3322_v19  ;;  %4784 = vst [vmem:[#allocation65_spill] sm:$0xff] %v3324_v34  ;;  %v804_v30 = vmul.f32 %v3322_v19, %v3322_v19  ;;  %v806_v35 = vmul.f32 %v3324_v34, %v3324_v34  ;;  %v870_v57 = vadd.f32 %v869_v44, %v803_v15  ;;  %1992 = vmatpush2.bf16.msra.mxu0 %v2614_v5 }
 0x12c   :  { %v3334_v8 = vpop.f32.mrf.mxu0  ;;  %v3336_v13 = vpop.f32.mrf.mxu1  ;;  %v626_v9 = vadd.f32 %v625_v37, %v3322_v19  ;;  %v700_v17 = vadd.f32 %v699_v45, %v3324_v34  ;;  %v944_v52 = vadd.f32 %v943_v50, %v805_v63  ;;  %2185 = vmatpush2.bf16.msra.mxu1 %v2617_v43 }
 0x12d   :  { %4785 = vst [vmem:[#allocation66_spill] sm:$0xff] %v3334_v8  ;;  %4786 = vst [vmem:[#allocation67_spill] sm:$0xff] %v3336_v13  ;;  %v807_v48 = vmul.f32 %v3334_v8, %v3334_v8  ;;  %v809_v49 = vmul.f32 %v3336_v13, %v3336_v13  ;;  %v907_v15 = vadd.f32 %v906_v12, %v804_v30 }
 0x12e   :  { %v3344_v20 = vpop.f32.mrf.mxu0  ;;  %v3346_v16 = vpop.f32.mrf.mxu1  ;;  %v590_v14 = vadd.f32 %v589_v53, %v3334_v8  ;;  %v981_v37 = vadd.f32 %v980_v54, %v806_v35  ;;  %v664_v45 = vadd.f32 %v663_v60, %v3336_v13  ;;  %v2622_v54 = vld [vmem:[#allocation2 + $0xe4] ss:$8 sps:$4 sm:$0xff]  }
 0x12f   :  { %4787 = vst [vmem:[#allocation68_spill] sm:$0xff] %v3344_v20  ;;  %4788 = vst [vmem:[#allocation69_spill] sm:$0xff] %v3346_v16  ;;  %v808_v44 = vmul.f32 %v3344_v20, %v3344_v20  ;;  %v810_v34 = vmul.f32 %v3346_v16, %v3346_v16  ;;  %v871_v63 = vadd.f32 %v870_v57, %v807_v48  ;;  %v2625_v60 = vld [vmem:[#allocation2 + $0x1e4] ss:$8 sps:$4 sm:$0xff]   ;;  %v2620_v48 = vld [vmem:[#allocation2 + $0xe0] ss:$8 sps:$4 sm:$0xff]   ;;  %1993 = vmatprep.subr.bf16.mxu0 %v2622_v54 }
 0x130   :  { %v3358_v6 = vpop.f32.mrf.mxu0  ;;  %v3360_v61 = vpop.f32.mrf.mxu1  ;;  %v627_v30 = vadd.f32 %v626_v9, %v3344_v20  ;;  %v945_v3 = vadd.f32 %v944_v52, %v809_v49  ;;  %v701_v5 = vadd.f32 %v700_v17, %v3346_v16  ;;  %v2623_v9 = vld [vmem:[#allocation2 + $0x1e0] ss:$8 sps:$4 sm:$0xff]   ;;  %2186 = vmatprep.subr.bf16.mxu1 %v2625_v60  ;;  %1994 = vmatpush2.bf16.msra.mxu0 %v2620_v48  ;;  %v2629_v54 = vld [vmem:[#allocation2 + $0x1d0] ss:$8 sps:$4 sm:$0xff]  }
 0x131   :  { %4789 = vst [vmem:[#allocation70_spill] sm:$0xff] %v3358_v6  ;;  %4790 = vst [vmem:[#allocation71_spill] sm:$0xff] %v3360_v61  ;;  %v811_v19 = vmul.f32 %v3358_v6, %v3358_v6  ;;  %v813_v50 = vmul.f32 %v3360_v61, %v3360_v61  ;;  %v908_v33 = vadd.f32 %v907_v15, %v808_v44  ;;  %2187 = vmatpush2.bf16.msra.mxu1 %v2623_v9 }
 0x132   :  { %v3370_v47 = vpop.f32.mrf.mxu0  ;;  %v3372_v36 = vpop.f32.mrf.mxu1  ;;  %v591_v57 = vadd.f32 %v590_v14, %v3358_v6  ;;  %v665_v13 = vadd.f32 %v664_v45, %v3360_v61  ;;  %v982_v49 = vadd.f32 %v981_v37, %v810_v34  ;;  %v2628_v34 = vld [vmem:[#allocation2 + $0xd4] ss:$8 sps:$4 sm:$0xff]  }
 0x133   :  { %4791 = vst [vmem:[#allocation72_spill] sm:$0xff] %v3372_v36  ;;  %v812_v12 = vmul.f32 %v3370_v47, %v3370_v47  ;;  %v814_v20 = vmul.f32 %v3372_v36, %v3372_v36  ;;  %v872_v17 = vadd.f32 %v871_v63, %v811_v19  ;;  %v628_v44 = vadd.f32 %v627_v30, %v3370_v47  ;;  %v2631_v19 = vld [vmem:[#allocation2 + $0x1d4] ss:$8 sps:$4 sm:$0xff]  }
 0x134   :  { %v3380_v7 = vpop.f32.mrf.mxu0  ;;  %v3382_v55 = vpop.f32.mrf.mxu1  ;;  %v946_v15 = vadd.f32 %v945_v3, %v813_v50  ;;  %v702_v45 = vadd.f32 %v701_v5, %v3372_v36  ;;  %1995 = vmatprep.subr.bf16.mxu0 %v2628_v34  ;;  %2188 = vmatprep.subr.bf16.mxu1 %v2631_v19 }
 0x135   :  { %4792 = vst [vmem:[#allocation73_spill] sm:$0xff] %v3382_v55  ;;  %v815_v8 = vmul.f32 %v3380_v7, %v3380_v7  ;;  %v817_v52 = vmul.f32 %v3382_v55, %v3382_v55  ;;  %v909_v14 = vadd.f32 %v908_v33, %v812_v12  ;;  %v592_v37 = vadd.f32 %v591_v57, %v3380_v7  ;;  %v2626_v12 = vld [vmem:[#allocation2 + $0xd0] ss:$8 sps:$4 sm:$0xff]  }
 0x136   :  { %v3391_v42 = vpop.f32.mrf.mxu0  ;;  %v3393_v2 = vpop.f32.mrf.mxu1  ;;  %v666_v63 = vadd.f32 %v665_v13, %v3382_v55  ;;  %v983_v60 = vadd.f32 %v982_v49, %v814_v20  ;;  %1996 = vmatpush2.bf16.msra.mxu0 %v2626_v12  ;;  %2189 = vmatpush2.bf16.msra.mxu1 %v2629_v54 }
 0x137   :  { %4793 = vst [vmem:[#allocation74_spill] sm:$0xff] %v3391_v42  ;;  %4794 = vst [vmem:[#allocation75_spill] sm:$0xff] %v3393_v2  ;;  %v816_v16 = vmul.f32 %v3391_v42, %v3391_v42  ;;  %v818_v30 = vmul.f32 %v3393_v2, %v3393_v2  ;;  %v873_v3 = vadd.f32 %v872_v17, %v815_v8 }
 0x138   :  { %v3405_v53 = vpop.f32.mrf.mxu0  ;;  %v3407_v35 = vpop.f32.mrf.mxu1  ;;  %v629_v33 = vadd.f32 %v628_v44, %v3391_v42  ;;  %v947_v57 = vadd.f32 %v946_v15, %v817_v52  ;;  %v703_v13 = vadd.f32 %v702_v45, %v3393_v2  ;;  %v2634_v15 = vld [vmem:[#allocation2 + $0xc4] ss:$8 sps:$4 sm:$0xff]  }
 0x139   :  { %4795 = vst [vmem:[#allocation76_spill] sm:$0xff] %v3405_v53  ;;  %4796 = vst [vmem:[#allocation77_spill] sm:$0xff] %v3407_v35  ;;  %v819_v50 = vmul.f32 %v3405_v53, %v3405_v53  ;;  %v821_v9 = vmul.f32 %v3407_v35, %v3407_v35  ;;  %v910_v20 = vadd.f32 %v909_v14, %v816_v16  ;;  %v2637_v45 = vld [vmem:[#allocation2 + $0x1c4] ss:$8 sps:$4 sm:$0xff]   ;;  %v2632_v14 = vld [vmem:[#allocation2 + $0xc0] ss:$8 sps:$4 sm:$0xff]   ;;  %1997 = vmatprep.subr.bf16.mxu0 %v2634_v15 }
 0x13a   :  { %v3416_v58 = vpop.f32.mrf.mxu0  ;;  %v3418_v43 = vpop.f32.mrf.mxu1  ;;  %v593_v8 = vadd.f32 %v592_v37, %v3405_v53  ;;  %v984_v34 = vadd.f32 %v983_v60, %v818_v30  ;;  %v667_v12 = vadd.f32 %v666_v63, %v3407_v35  ;;  %v2635_v37 = vld [vmem:[#allocation2 + $0x1c0] ss:$8 sps:$4 sm:$0xff]   ;;  %2190 = vmatprep.subr.bf16.mxu1 %v2637_v45  ;;  %1998 = vmatpush2.bf16.msra.mxu0 %v2632_v14  ;;  %v2641_v15 = vld [vmem:[#allocation2 + $0x1b0] ss:$8 sps:$4 sm:$0xff]  }
 0x13b   :  { %4797 = vst [vmem:[#allocation78_spill] sm:$0xff] %v3416_v58  ;;  %4798 = vst [vmem:[#allocation79_spill] sm:$0xff] %v3418_v43  ;;  %v820_v36 = vmul.f32 %v3416_v58, %v3416_v58  ;;  %v822_v49 = vmul.f32 %v3418_v43, %v3418_v43  ;;  %v874_v19 = vadd.f32 %v873_v3, %v819_v50  ;;  %2191 = vmatpush2.bf16.msra.mxu1 %v2635_v37 }
 0x13c   :  { %v3426_v61 = vpop.f32.mrf.mxu0  ;;  %v3428_v6 = vpop.f32.mrf.mxu1  ;;  %v630_v16 = vadd.f32 %v629_v33, %v3416_v58  ;;  %v704_v2 = vadd.f32 %v703_v13, %v3418_v43  ;;  %v948_v30 = vadd.f32 %v947_v57, %v821_v9  ;;  %v2640_v57 = vld [vmem:[#allocation2 + $0xb4] ss:$8 sps:$4 sm:$0xff]  }
 0x13d   :  { %4799 = vst [vmem:[#allocation80_spill] sm:$0xff] %v3428_v6  ;;  %v823_v17 = vmul.f32 %v3426_v61, %v3426_v61  ;;  %v825_v53 = vmul.f32 %v3428_v6, %v3428_v6  ;;  %v911_v63 = vadd.f32 %v910_v20, %v820_v36  ;;  %v594_v50 = vadd.f32 %v593_v8, %v3426_v61  ;;  %v2643_v36 = vld [vmem:[#allocation2 + $0x1b4] ss:$8 sps:$4 sm:$0xff]  }
 0x13e   :  { %v3437_v5 = vpop.f32.mrf.mxu0  ;;  %v3439_v48 = vpop.f32.mrf.mxu1  ;;  %v985_v3 = vadd.f32 %v984_v34, %v822_v49  ;;  %v668_v13 = vadd.f32 %v667_v12, %v3428_v6  ;;  %1999 = vmatprep.subr.bf16.mxu0 %v2640_v57  ;;  %2192 = vmatprep.subr.bf16.mxu1 %v2643_v36 }
 0x13f   :  { %4800 = vst [vmem:[#allocation81_spill] sm:$0xff] %v3439_v48  ;;  %v824_v55 = vmul.f32 %v3437_v5, %v3437_v5  ;;  %v826_v60 = vmul.f32 %v3439_v48, %v3439_v48  ;;  %v875_v33 = vadd.f32 %v874_v19, %v823_v17  ;;  %v631_v9 = vadd.f32 %v630_v16, %v3437_v5  ;;  %v2638_v17 = vld [vmem:[#allocation2 + $0xb0] ss:$8 sps:$4 sm:$0xff]  }
 0x140   :  { %v3451_v44 = vpop.f32.mrf.mxu0  ;;  %v3453_v52 = vpop.f32.mrf.mxu1  ;;  %v705_v20 = vadd.f32 %v704_v2, %v3439_v48  ;;  %v949_v45 = vadd.f32 %v948_v30, %v825_v53  ;;  %2000 = vmatpush2.bf16.msra.mxu0 %v2638_v17  ;;  %2193 = vmatpush2.bf16.msra.mxu1 %v2641_v15 }
 0x141   :  { %4801 = vst [vmem:[#allocation82_spill] sm:$0xff] %v3451_v44  ;;  %4802 = vst [vmem:[#allocation83_spill] sm:$0xff] %v3453_v52  ;;  %v827_v43 = vmul.f32 %v3451_v44, %v3451_v44  ;;  %v829_v8 = vmul.f32 %v3453_v52, %v3453_v52  ;;  %v912_v34 = vadd.f32 %v911_v63, %v824_v55 }
 0x142   :  { %v3462_v42 = vpop.f32.mrf.mxu0  ;;  %v3464_v54 = vpop.f32.mrf.mxu1  ;;  %v595_v19 = vadd.f32 %v594_v50, %v3451_v44  ;;  %v986_v16 = vadd.f32 %v985_v3, %v826_v60  ;;  %v669_v2 = vadd.f32 %v668_v13, %v3453_v52  ;;  %v2646_v3 = vld [vmem:[#allocation2 + $0xa4] ss:$8 sps:$4 sm:$0xff]  }
 0x143   :  { %4803 = vst [vmem:[#allocation84_spill] sm:$0xff] %v3462_v42  ;;  %4804 = vst [vmem:[#allocation85_spill] sm:$0xff] %v3464_v54  ;;  %v828_v49 = vmul.f32 %v3462_v42, %v3462_v42  ;;  %v830_v37 = vmul.f32 %v3464_v54, %v3464_v54  ;;  %v876_v53 = vadd.f32 %v875_v33, %v827_v43  ;;  %v2649_v13 = vld [vmem:[#allocation2 + $0x1a4] ss:$8 sps:$4 sm:$0xff]   ;;  %v2644_v33 = vld [vmem:[#allocation2 + $0xa0] ss:$8 sps:$4 sm:$0xff]   ;;  %2001 = vmatprep.subr.bf16.mxu0 %v2646_v3 }
 0x144   :  { %v3472_v35 = vpop.f32.mrf.mxu0  ;;  %v3474_v58 = vpop.f32.mrf.mxu1  ;;  %v632_v55 = vadd.f32 %v631_v9, %v3462_v42  ;;  %v950_v57 = vadd.f32 %v949_v45, %v829_v8  ;;  %v706_v17 = vadd.f32 %v705_v20, %v3464_v54  ;;  %v2647_v9 = vld [vmem:[#allocation2 + $0x1a0] ss:$8 sps:$4 sm:$0xff]   ;;  %2194 = vmatprep.subr.bf16.mxu1 %v2649_v13  ;;  %2002 = vmatpush2.bf16.msra.mxu0 %v2644_v33  ;;  %v2653_v3 = vld [vmem:[#allocation2 + $0x190] ss:$8 sps:$4 sm:$0xff]  }
 0x145   :  { %4805 = vst [vmem:[#allocation86_spill] sm:$0xff] %v3472_v35  ;;  %4806 = vst [vmem:[#allocation87_spill] sm:$0xff] %v3474_v58  ;;  %v831_v48 = vmul.f32 %v3472_v35, %v3472_v35  ;;  %v833_v30 = vmul.f32 %v3474_v58, %v3474_v58  ;;  %v913_v36 = vadd.f32 %v912_v34, %v828_v49  ;;  %2195 = vmatpush2.bf16.msra.mxu1 %v2647_v9 }
 0x146   :  { %v3483_v12 = vpop.f32.mrf.mxu0  ;;  %v3485_v14 = vpop.f32.mrf.mxu1  ;;  %v596_v43 = vadd.f32 %v595_v19, %v3472_v35  ;;  %v670_v52 = vadd.f32 %v669_v2, %v3474_v58  ;;  %v987_v8 = vadd.f32 %v986_v16, %v830_v37  ;;  %v2652_v16 = vld [vmem:[#allocation2 + $0x94] ss:$8 sps:$4 sm:$0xff]  }
 0x147   :  { %4807 = vst [vmem:[#allocation88_spill] sm:$0xff] %v3485_v14  ;;  %v832_v63 = vmul.f32 %v3483_v12, %v3483_v12  ;;  %v834_v42 = vmul.f32 %v3485_v14, %v3485_v14  ;;  %v877_v20 = vadd.f32 %v876_v53, %v831_v48  ;;  %v633_v49 = vadd.f32 %v632_v55, %v3483_v12  ;;  %v2655_v48 = vld [vmem:[#allocation2 + $0x194] ss:$8 sps:$4 sm:$0xff]  }
 0x148   :  { %v3497_v50 = vpop.f32.mrf.mxu0  ;;  %v3499_v60 = vpop.f32.mrf.mxu1  ;;  %v951_v34 = vadd.f32 %v950_v57, %v833_v30  ;;  %v707_v2 = vadd.f32 %v706_v17, %v3485_v14  ;;  %2003 = vmatprep.subr.bf16.mxu0 %v2652_v16  ;;  %2196 = vmatprep.subr.bf16.mxu1 %v2655_v48 }
 0x149   :  { %4808 = vst [vmem:[#allocation89_spill] sm:$0xff] %v3497_v50  ;;  %4809 = vst [vmem:[#allocation90_spill] sm:$0xff] %v3499_v60  ;;  %v835_v44 = vmul.f32 %v3497_v50, %v3497_v50  ;;  %v837_v45 = vmul.f32 %v3499_v60, %v3499_v60  ;;  %v914_v19 = vadd.f32 %v913_v36, %v832_v63  ;;  %v2650_v63 = vld [vmem:[#allocation2 + $0x90] ss:$8 sps:$4 sm:$0xff]   ;;  %2197 = vmatpush2.bf16.msra.mxu1 %v2653_v3 }
 0x14a   :  { %v3508_v6 = vpop.f32.mrf.mxu0  ;;  %v3510_v15 = vpop.f32.mrf.mxu1  ;;  %v597_v37 = vadd.f32 %v596_v43, %v3497_v50  ;;  %v671_v53 = vadd.f32 %v670_v52, %v3499_v60  ;;  %v988_v13 = vadd.f32 %v987_v8, %v834_v42  ;;  %2004 = vmatpush2.bf16.msra.mxu0 %v2650_v63 }
 0x14b   :  { %4810 = vst [vmem:[#allocation91_spill] sm:$0xff] %v3508_v6  ;;  %4811 = vst [vmem:[#allocation92_spill] sm:$0xff] %v3510_v15  ;;  %v836_v54 = vmul.f32 %v3508_v6, %v3508_v6  ;;  %v838_v55 = vmul.f32 %v3510_v15, %v3510_v15  ;;  %v878_v57 = vadd.f32 %v877_v20, %v835_v44 }
 0x14c   :  { %v3518_v58 = vpop.f32.mrf.mxu0  ;;  %v3520_v35 = vpop.f32.mrf.mxu1  ;;  %v952_v52 = vadd.f32 %v951_v34, %v837_v45  ;;  %v634_v43 = vadd.f32 %v633_v49, %v3508_v6  ;;  %v708_v9 = vadd.f32 %v707_v2, %v3510_v15  ;;  %v2658_v49 = vld [vmem:[#allocation2 + $0x84] ss:$8 sps:$4 sm:$0xff]  }
 0x14d   :  { %4812 = vst [vmem:[#allocation93_spill] sm:$0xff] %v3518_v58  ;;  %4813 = vst [vmem:[#allocation94_spill] sm:$0xff] %v3520_v35  ;;  %v839_v30 = vmul.f32 %v3518_v58, %v3518_v58  ;;  %v841_v36 = vmul.f32 %v3520_v35, %v3520_v35  ;;  %v915_v42 = vadd.f32 %v914_v19, %v836_v54  ;;  %v2661_v45 = vld [vmem:[#allocation2 + $0x184] ss:$8 sps:$4 sm:$0xff]   ;;  %v2656_v19 = vld [vmem:[#allocation2 + $0x80] ss:$8 sps:$4 sm:$0xff]   ;;  %2005 = vmatprep.subr.bf16.mxu0 %v2658_v49 }
 0x14e   :  { %v3530_v17 = vpop.f32.mrf.mxu0  ;;  %v3532_v33 = vpop.f32.mrf.mxu1  ;;  %v598_v44 = vadd.f32 %v597_v37, %v3518_v58  ;;  %v672_v8 = vadd.f32 %v671_v53, %v3520_v35  ;;  %v989_v34 = vadd.f32 %v988_v13, %v838_v55  ;;  %v2659_v37 = vld [vmem:[#allocation2 + $0x180] ss:$8 sps:$4 sm:$0xff]   ;;  %2198 = vmatprep.subr.bf16.mxu1 %v2661_v45  ;;  %2006 = vmatpush2.bf16.msra.mxu0 %v2656_v19 }
 0x14f   :  { %4814 = vst [vmem:[#allocation95_spill] sm:$0xff] %v3530_v17  ;;  %4815 = vst [vmem:[#allocation96_spill] sm:$0xff] %v3532_v33  ;;  %v840_v14 = vmul.f32 %v3530_v17, %v3530_v17  ;;  %v842_v20 = vmul.f32 %v3532_v33, %v3532_v33  ;;  %v879_v2 = vadd.f32 %v878_v57, %v839_v30  ;;  %2199 = vmatpush2.bf16.msra.mxu1 %v2659_v37 }
 0x150   :  { %v3542_v60 = vpop.f32.mrf.mxu0  ;;  %v3544_v16 = vpop.f32.mrf.mxu1  ;;  %v635_v48 = vadd.f32 %v634_v43, %v3530_v17  ;;  %v953_v53 = vadd.f32 %v952_v52, %v841_v36  ;;  %v709_v63 = vadd.f32 %v708_v9, %v3532_v33 }
 0x151   :  { %4816 = vst [vmem:[#allocation97_spill] sm:$0xff] %v3542_v60  ;;  %4817 = vst [vmem:[#allocation98_spill] sm:$0xff] %v3544_v16  ;;  %v843_v54 = vmul.f32 %v3542_v60, %v3542_v60  ;;  %v845_v15 = vmul.f32 %v3544_v16, %v3544_v16  ;;  %v916_v55 = vadd.f32 %v915_v42, %v840_v14 }
 0x152   :  { %v3552_v35 = vpop.f32.mrf.mxu0  ;;  %v3554_v3 = vpop.f32.mrf.mxu1  ;;  %v599_v30 = vadd.f32 %v598_v44, %v3542_v60  ;;  %v673_v13 = vadd.f32 %v672_v8, %v3544_v16  ;;  %v990_v36 = vadd.f32 %v989_v34, %v842_v20 }
 0x153   :  { %4818 = vst [vmem:[#allocation99_spill] sm:$0xff] %v3552_v35  ;;  %4819 = vst [vmem:[#allocation100_spill] sm:$0xff] %v3554_v3  ;;  %v844_v57 = vmul.f32 %v3552_v35, %v3552_v35  ;;  %v880_v52 = vadd.f32 %v879_v2, %v843_v54  ;;  %v636_v43 = vadd.f32 %v635_v48, %v3552_v35 }
 0x154   :  { %v846_v9 = vmul.f32 %v3554_v3, %v3554_v3  ;;  %v3563_v33 = vpop.f32.mrf.mxu0  ;;  %v3565_v49 = vpop.f32.mrf.mxu1  ;;  %v710_v14 = vadd.f32 %v709_v63, %v3554_v3  ;;  %v954_v20 = vadd.f32 %v953_v53, %v845_v15 }
 0x155   :  { %4820 = vst [vmem:[#allocation101_spill] sm:$0xff] %v3563_v33  ;;  %4821 = vst [vmem:[#allocation102_spill] sm:$0xff] %v3565_v49  ;;  %v600_v42 = vadd.f32 %v599_v30, %v3563_v33  ;;  %v847_v44 = vmul.f32 %v3563_v33, %v3563_v33  ;;  %v674_v8 = vadd.f32 %v673_v13, %v3565_v49 }
 0x156   :  { %v917_v45 = vadd.f32 %v916_v55, %v844_v57  ;;  %v991_v34 = vadd.f32 %v990_v36, %v846_v9  ;;  %v849_v2 = vmul.f32 %v3565_v49, %v3565_v49  ;;  %v3574_v48 = vpop.f32.mrf.mxu0  ;;  %v3576_v54 = vpop.f32.mrf.mxu1 }
 0x157   :  { %4822 = vst [vmem:[#allocation103_spill] sm:$0xff] %v3574_v48  ;;  %4823 = vst [vmem:[#allocation104_spill] sm:$0xff] %v3576_v54  ;;  %v601_v19 = vrot.slane %v600_v42, 4  ;;  %v881_v37 = vadd.f32 %v880_v52, %v847_v44  ;;  %v675_v63 = vrot.slane %v674_v8, 4  ;;  %v637_v30 = vadd.f32 %v636_v43, %v3574_v48 }
 0x158   :  { %v955_v3 = vadd.f32 %v954_v20, %v849_v2  ;;  %v848_v33 = vmul.f32 %v3574_v48, %v3574_v48  ;;  %v711_v15 = vadd.f32 %v710_v14, %v3576_v54  ;;  %v850_v53 = vmul.f32 %v3576_v54, %v3576_v54 }
 0x159   :  { %v602_v55 = vadd.f32 %v601_v19, %v600_v42  ;;  %v882_v13 = vrot.slane %v881_v37, 4  ;;  %v676_v57 = vadd.f32 %v675_v63, %v674_v8  ;;  %v638_v36 = vrot.slane %v637_v30, 4 }
 0x15a   :  { %v956_v9 = vrot.slane %v955_v3, 4  ;;  %v918_v49 = vadd.f32 %v917_v45, %v848_v33  ;;  %v712_v16 = vrot.slane %v711_v15, 4  ;;  %v992_v52 = vadd.f32 %v991_v34, %v850_v53 }
 0x15b   :  { %v603_v44 = vrot.slane %v602_v55, 2  ;;  %v883_v35 = vadd.f32 %v882_v13, %v881_v37  ;;  %v677_v43 = vrot.slane %v676_v57, 2  ;;  %v639_v20 = vadd.f32 %v638_v36, %v637_v30 }
 0x15c   :  { %v957_v2 = vadd.f32 %v956_v9, %v955_v3  ;;  %v919_v60 = vrot.slane %v918_v49, 4  ;;  %v713_v48 = vadd.f32 %v712_v16, %v711_v15  ;;  %v993_v17 = vrot.slane %v992_v52, 4 }
 0x15d   :  { %v604_v14 = vadd.f32 %v603_v44, %v602_v55  ;;  %v884_v58 = vrot.slane %v883_v35, 2  ;;  %v678_v6 = vadd.f32 %v677_v43, %v676_v57  ;;  %v640_v54 = vrot.slane %v639_v20, 2 }
 0x15e   :  { %v958_v42 = vrot.slane %v957_v2, 2  ;;  %v920_v19 = vadd.f32 %v919_v60, %v918_v49  ;;  %v714_v8 = vrot.slane %v713_v48, 2  ;;  %v994_v63 = vadd.f32 %v993_v17, %v992_v52 }
 0x15f   :  { %v605_v50 = vrot.slane %v604_v14, 1  ;;  %v885_v33 = vadd.f32 %v884_v58, %v883_v35  ;;  %v679_v45 = vrot.slane %v678_v6, 1  ;;  %v641_v34 = vadd.f32 %v640_v54, %v639_v20 }
 0x160   :  { %v959_v53 = vadd.f32 %v958_v42, %v957_v2  ;;  %v921_v37 = vrot.slane %v920_v19, 2  ;;  %v715_v13 = vadd.f32 %v714_v8, %v713_v48  ;;  %v995_v30 = vrot.slane %v994_v63, 2 }
 0x161   :  { %v606_v3 = vadd.f32 %v605_v50, %v604_v14  ;;  %v886_v36 = vrot.slane %v885_v33, 1  ;;  %v680_v16 = vadd.f32 %v679_v45, %v678_v6  ;;  %v642_v15 = vrot.slane %v641_v34, 1 }
 0x162   :  { %v960_v55 = vrot.slane %v959_v53, 1  ;;  %v922_v9 = vadd.f32 %v921_v37, %v920_v19  ;;  %v716_v57 = vrot.slane %v715_v13, 1  ;;  %v996_v44 = vadd.f32 %v995_v30, %v994_v63 }
 0x163   :  { %v719_v43 = vmul.f32 0.00390625, %v606_v3  ;;  %v887_v60 = vadd.f32 %v886_v36, %v885_v33  ;;  %v721_v49 = vmul.f32 0.00390625, %v680_v16  ;;  %v643_v17 = vadd.f32 %v642_v15, %v641_v34 }
 0x164   :  { %v961_v52 = vadd.f32 %v960_v55, %v959_v53  ;;  %v923_v58 = vrot.slane %v922_v9, 1  ;;  %v717_v35 = vadd.f32 %v716_v57, %v715_v13  ;;  %v997_v54 = vrot.slane %v996_v44, 1 }
 0x165   :  { %v999_v20 = vmul.f32 0.00390625, %v887_v60  ;;  %v1003_v2 = vmul.f32 %v719_v43, %v719_v43  ;;  %v1005_v48 = vmul.f32 %v721_v49, %v721_v49  ;;  %v720_v42 = vmul.f32 0.00390625, %v643_v17 }
 0x166   :  { %v1001_v50 = vmul.f32 0.00390625, %v961_v52  ;;  %v924_v14 = vadd.f32 %v923_v58, %v922_v9  ;;  %v722_v6 = vmul.f32 0.00390625, %v717_v35  ;;  %v998_v8 = vadd.f32 %v997_v54, %v996_v44 }
 0x167   :  { %v1007_v45 = vsub.f32 %v999_v20, %v1003_v2  ;;  %v1004_v19 = vmul.f32 %v720_v42, %v720_v42  ;;  %v2718_v9 = vmov 1966171168   ;;  %v1033_v17 = vlaneseq }
 0x168   :  { %v1009_v37 = vsub.f32 %v1001_v50, %v1005_v48  ;;  %v1000_v63 = vmul.f32 0.00390625, %v924_v14  ;;  %v1002_v30 = vmul.f32 0.00390625, %v998_v8  ;;  %v1006_v33 = vmul.f32 %v722_v6, %v722_v6 }
 0x169   :  { %v1011_v3 = vmax.f32 %v1007_v45, 0.0  ;;  %v1031_v44 = vunpack.c.l.s4 %v2718_v9  ;;  %v3584_v58 = vshrl.u32 %v1033_v17, 7 }
 0x16a   :  { %v1013_v34 = vmax.f32 %v1009_v37, 0.0  ;;  %v1008_v53 = vsub.f32 %v1000_v63, %v1004_v19  ;;  %v1010_v36 = vsub.f32 %v1002_v30, %v1006_v33  ;;  %v1023_v63 = vld [vmem:[%s4611_s2] sm:$0xf] }
 0x16b   :  { %v1015_v13 = vadd.f32 1e-05, %v1011_v3  ;;  %v1032_v52 = vunpack.c.0.s8 %v1031_v44  ;;  %v3591_v30 = vsub.s32 0, %v3584_v58  ;;  %v3594_v33 = vsub.s32 1, %v3584_v58 }
 0x16c   :  { %v1017_v16 = vadd.f32 1e-05, %v1013_v34  ;;  %v1012_v15 = vmax.f32 %v1008_v53, 0.0  ;;  %v1014_v55 = vmax.f32 %v1010_v36, 0.0  ;;  %v1066_v3 = vsub.s32 2, %v3584_v58 }
 0x16d   :  { %2662 = vrsqrt.f32 %v1015_v13  ;;  %v1035_v50 = vsub.s32 %v1032_v52, %v3584_v58  ;;  %4824 = vst [vmem:[#allocation105_spill] sm:$0xff] %v3591_v30  ;;  %4825 = vst [vmem:[#allocation106_spill] sm:$0xff] %v3594_v33  ;;  %v1070_v34 = vsub.s32 3, %v3584_v58 }
 0x16e   :  { %v1016_v57 = vadd.f32 1e-05, %v1012_v15  ;;  %v1018_v60 = vadd.f32 1e-05, %v1014_v55  ;;  %2664 = vrsqrt.f32 %v1017_v16 }
 0x170   :  { %2666 = vrsqrt.f32 %v1016_v57 }
 0x171   :  { %2668 = vrsqrt.f32 %v1018_v60 }
 0x17a   :  { %v2663_v35 = vpop.eup %2662 }
 0x17b   :  { %v2665_v54 = vpop.eup %2664 }
 0x17d   :  { %v2667_v20 = vpop.eup %2666 }
 0x17e   :  { %v2669_v2 = vpop.eup %2668  ;;  %v1028_v48 = vcombine.low %v2663_v35, %v2667_v20 }
 0x17f   :  { %v1029_v14 = vcombine.low %v2665_v54, %v2669_v2  ;;  %v4832_v2 = vld [vmem:[#allocation8_spill] sm:$0xff] }
 0x180   :  { %v1036_v8 = vrot.slane %v1028_v48, %v1035_v50 }
 0x181   :  { %v1043_v45 = vrot.slane %v1029_v14, %v1035_v50  ;;  %v4834_v14 = vld [vmem:[#allocation11_spill] sm:$0xff] }
 0x183   :  { %v1044_v19 = vcombine.low %v1036_v8, %v1043_v45  ;;  %v4836_v8 = vld [vmem:[#allocation10_spill] sm:$0xff]  ;;  %v4837_v45 = vld [vmem:[#allocation12_spill] sm:$0xff] }
 0x185   :  { %v1051_v37 = vrot.slane %v1044_v19, %v1035_v50 }
 0x187   :  { %v1053_v53 = vmul.f32 %v1051_v37, %v1023_v63  ;;  %v4839_v37 = vld [vmem:[#allocation13_spill] sm:$0xff] }
 0x189   :  { %v3599_v36 = vrot.slane %v1053_v53, %v3591_v30  ;;  %v3602_v13 = vrot.slane %v1053_v53, %v3594_v33  ;;  %v3604_v16 = vrot.slane %v1053_v53, %v1066_v3  ;;  %v3606_v15 = vrot.slane %v1053_v53, %v1070_v34  ;;  %v4840_v53 = vld [vmem:[#allocation14_spill] sm:$0xff] }
 0x18b   :  { %4826 = vst [vmem:[#allocation107_spill] sm:$0xff] %v3599_v36  ;;  %4827 = vst [vmem:[#allocation108_spill] sm:$0xff] %v3602_v13  ;;  %v1076_v55 = vmul.f32 %v3599_v36, %v719_v43  ;;  %v1077_v57 = vmul.f32 %v3602_v13, %v720_v42  ;;  %v1078_v60 = vmul.f32 %v3604_v16, %v721_v49 }
 0x18c   :  { %4828 = vst [vmem:[#allocation109_spill] sm:$0xff] %v3604_v16  ;;  %4829 = vst [vmem:[#allocation110_spill] sm:$0xff] %v3606_v15  ;;  %v1079_v9 = vmul.f32 %v3606_v15, %v722_v6  ;;  %v3614_v54 = vmul.f32 %v3599_v36, %v2944_v21  ;;  %v3618_v20 = vmul.f32 %v3602_v13, %v2948_v23 }
 0x18d   :  { %v1084_v44 = vcombine.low %v1076_v55, %v1077_v57  ;;  %v3622_v43 = vmul.f32 %v3604_v16, %v2946_v22  ;;  %v3626_v49 = vmul.f32 %v3606_v15, %v2950_v24  ;;  %v3630_v6 = vmul.f32 %v3599_v36, %v2952_v25  ;;  %v1054_v22 = vld [vmem:[%s4612_s3] sm:$0xf] }
 0x18e   :  { %v1085_v17 = vcombine.low %v1078_v60, %v1079_v9  ;;  %v3634_v21 = vmul.f32 %v3602_v13, %v2956_v27  ;;  %v3638_v23 = vmul.f32 %v3604_v16, %v2954_v26  ;;  %v3645_v24 = vmul.f32 %v3606_v15, %v2958_v28 }
 0x18f   :  { %v1092_v52 = vrot.slane %v1084_v44, %v1035_v50  ;;  %v3649_v25 = vmul.f32 %v3599_v36, %v2960_v29  ;;  %v3653_v27 = vmul.f32 %v3602_v13, %v2964_v31  ;;  %v3657_v26 = vmul.f32 %v3604_v16, %v4832_v2  ;;  %v4844_v44 = vld [vmem:[#allocation16_spill] sm:$0xff]  ;;  %v4854_v2 = vld [vmem:[#allocation19_spill] sm:$0xff] }
 0x190   :  { %v1099_v58 = vrot.slane %v1085_v17, %v1035_v50  ;;  %4830 = vst [vmem:[#allocation111_spill] sm:$0xff] %v3634_v21  ;;  %4831 = vst [vmem:[#allocation112_spill] sm:$0xff] %v3645_v24  ;;  %v3661_v48 = vmul.f32 %v3606_v15, %v2966_v32  ;;  %v3669_v29 = vmul.f32 %v3602_v13, %v4834_v14  ;;  %v4856_v14 = vld [vmem:[#allocation21_spill] sm:$0xff]  ;;  %v4933_v24 = vld [vmem:[#allocation80_spill] sm:$0xff] }
 0x191   :  { %v3673_v31 = vmul.f32 %v3604_v16, %v4836_v8  ;;  %v3677_v19 = vmul.f32 %v3606_v15, %v4837_v45  ;;  %v3681_v32 = vmul.f32 %v3599_v36, %v4839_v37  ;;  %v3685_v63 = vmul.f32 %v3602_v13, %v2980_v39  ;;  %v4859_v37 = vld [vmem:[#allocation23_spill] sm:$0xff]  ;;  %v4934_v21 = vld [vmem:[#allocation82_spill] sm:$0xff] }
 0x192   :  { %v1100_v35 = vcombine.low %v1092_v52, %v1099_v58  ;;  %4835 = vst [vmem:[#allocation8_spill] sm:$0xff] %v3669_v29  ;;  %v3689_v55 = vmul.f32 %v3604_v16, %v4840_v53  ;;  %v3693_v60 = vmul.f32 %v3606_v15, %v2982_v40  ;;  %v3697_v9 = vmul.f32 %v3599_v36, %v2984_v41  ;;  %v4846_v52 = vld [vmem:[#allocation15_spill] sm:$0xff]  ;;  %v4848_v58 = vld [vmem:[#allocation17_spill] sm:$0xff]  ;;  %v4931_v29 = vld [vmem:[#allocation78_spill] sm:$0xff] }
 0x193   :  { %v3701_v17 = vmul.f32 %v3602_v13, %v4844_v44  ;;  %v3705_v39 = vmul.f32 %v3604_v16, %v4846_v52  ;;  %v3725_v8 = vmul.f32 %v3606_v15, %v4856_v14  ;;  %v3729_v45 = vmul.f32 %v3599_v36, %v3000_v51  ;;  %v4861_v44 = vld [vmem:[#allocation22_spill] sm:$0xff] }
 0x194   :  { %v1107_v42 = vrot.slane %v1100_v35, %v1035_v50  ;;  %v4833_v50 = vld [vmem:[#allocation9_spill] sm:$0xff]  ;;  %4841 = vst [vmem:[#allocation11_spill] sm:$0xff] %v3689_v55  ;;  %4842 = vst [vmem:[#allocation10_spill] sm:$0xff] %v3693_v60  ;;  %v3709_v35 = vmul.f32 %v3606_v15, %v4848_v58  ;;  %v3733_v53 = vmul.f32 %v3602_v13, %v4859_v37  ;;  %v4863_v58 = vld [vmem:[#allocation24_spill] sm:$0xff] }
 0x195   :  { %v3665_v28 = vmul.f32 %v3599_v36, %v4833_v50  ;;  %4838 = vst [vmem:[#allocation9_spill] sm:$0xff] %v3677_v19  ;;  %4843 = vst [vmem:[#allocation12_spill] sm:$0xff] %v3697_v9  ;;  %v3721_v50 = vmul.f32 %v3604_v16, %v4854_v2  ;;  %v3737_v52 = vmul.f32 %v3604_v16, %v4861_v44  ;;  %v4869_v44 = vld [vmem:[#allocation26_spill] sm:$0xff]  ;;  %v4930_v19 = vld [vmem:[#allocation76_spill] sm:$0xff] }
 0x196   :  { %v1109_v57 = vsub.f32 %v1054_v22, %v1107_v42  ;;  %4845 = vst [vmem:[#allocation13_spill] sm:$0xff] %v3701_v17  ;;  %4847 = vst [vmem:[#allocation14_spill] sm:$0xff] %v3705_v39  ;;  %v4850_v42 = vld [vmem:[#allocation18_spill] sm:$0xff]  ;;  %v4852_v22 = vld [vmem:[#allocation20_spill] sm:$0xff]  ;;  %v3749_v51 = vmul.f32 %v3602_v13, %v3028_v1  ;;  %v3771_v1 = vmul.f32 %v3599_v36, %v3044_v11 }
 0x197   :  { %4849 = vst [vmem:[#allocation16_spill] sm:$0xff] %v3709_v35  ;;  %v3713_v40 = vmul.f32 %v3599_v36, %v4850_v42  ;;  %v3717_v41 = vmul.f32 %v3602_v13, %v4852_v22  ;;  %4855 = vst [vmem:[#allocation18_spill] sm:$0xff] %v3721_v50  ;;  %v3741_v42 = vmul.f32 %v3606_v15, %v4863_v58  ;;  %v4865_v22 = vld [vmem:[#allocation25_spill] sm:$0xff]  ;;  %v4871_v58 = vld [vmem:[#allocation27_spill] sm:$0xff] }
 0x198   :  { %4857 = vst [vmem:[#allocation20_spill] sm:$0xff] %v3725_v8  ;;  %4858 = vst [vmem:[#allocation19_spill] sm:$0xff] %v3729_v45  ;;  %v3745_v2 = vmul.f32 %v3599_v36, %v4865_v22  ;;  %v3752_v14 = vrot.slane %v1109_v57, %v3591_v30  ;;  %v3755_v37 = vrot.slane %v1109_v57, %v3594_v33  ;;  %v4875_v30 = vld [vmem:[#allocation29_spill] sm:$0xff]  ;;  %v4877_v17 = vld [vmem:[#allocation28_spill] sm:$0xff] }
 0x199   :  { %4851 = vst [vmem:[#allocation15_spill] sm:$0xff] %v3713_v40  ;;  %4853 = vst [vmem:[#allocation17_spill] sm:$0xff] %v3717_v41  ;;  %v3765_v22 = vrot.slane %v1109_v57, %v1066_v3  ;;  %v3767_v35 = vrot.slane %v1109_v57, %v1070_v34  ;;  %v3775_v33 = vmul.f32 %v3602_v13, %v4875_v30  ;;  %v4882_v34 = vld [vmem:[#allocation32_spill] sm:$0xff]  ;;  %v4884_v57 = vld [vmem:[#allocation31_spill] sm:$0xff] }
 0x19a   :  { %4860 = vst [vmem:[#allocation21_spill] sm:$0xff] %v3733_v53  ;;  %4862 = vst [vmem:[#allocation23_spill] sm:$0xff] %v3737_v52  ;;  %v3759_v53 = vmul.f32 %v3604_v16, %v4869_v44  ;;  %v3779_v44 = vmul.f32 %v3604_v16, %v4877_v17  ;;  %v3787_v3 = vmul.f32 %v3599_v36, %v3069_v0  ;;  %v4927_v52 = vld [vmem:[#allocation71_spill] sm:$0xff]  ;;  %v4928_v45 = vld [vmem:[#allocation74_spill] sm:$0xff] }
 0x19b   :  { %4864 = vst [vmem:[#allocation22_spill] sm:$0xff] %v3741_v42  ;;  %4866 = vst [vmem:[#allocation24_spill] sm:$0xff] %v3745_v2  ;;  %v3763_v42 = vmul.f32 %v3606_v15, %v4871_v58  ;;  %v3791_v11 = vmul.f32 %v3602_v13, %v4882_v34  ;;  %v3795_v30 = vmul.f32 %v3604_v16, %v4884_v57  ;;  %v4926_v2 = vld [vmem:[#allocation70_spill] sm:$0xff]  ;;  %v4929_v8 = vld [vmem:[#allocation73_spill] sm:$0xff] }
 0x19c   :  { %4867 = vst [vmem:[#allocation25_spill] sm:$0xff] %v3749_v51  ;;  %4868 = vst [vmem:[#allocation113_spill] sm:$0xff] %v3752_v14  ;;  %v4925_v51 = vld [vmem:[#allocation67_spill] sm:$0xff]  ;;  %v4932_v50 = vld [vmem:[#allocation77_spill] sm:$0xff] }
 0x19d   :  { %4870 = vst [vmem:[#allocation26_spill] sm:$0xff] %v3759_v53  ;;  %4872 = vst [vmem:[#allocation27_spill] sm:$0xff] %v3763_v42  ;;  %v4879_v53 = vld [vmem:[#allocation30_spill] sm:$0xff]  ;;  %v4924_v42 = vld [vmem:[#allocation68_spill] sm:$0xff] }
 0x19e   :  { %4873 = vst [vmem:[#allocation114_spill] sm:$0xff] %v3765_v22  ;;  %4874 = vst [vmem:[#allocation115_spill] sm:$0xff] %v3771_v1  ;;  %v3783_v58 = vmul.f32 %v3606_v15, %v4879_v53  ;;  %v3803_v53 = vmul.f32 %v3599_v36, %v3094_v59  ;;  %v4923_v1 = vld [vmem:[#allocation66_spill] sm:$0xff]  ;;  %v4935_v41 = vld [vmem:[#allocation84_spill] sm:$0xff] }
 0x19f   :  { %4876 = vst [vmem:[#allocation29_spill] sm:$0xff] %v3775_v33  ;;  %4878 = vst [vmem:[#allocation28_spill] sm:$0xff] %v3779_v44  ;;  %v4886_v33 = vld [vmem:[#allocation33_spill] sm:$0xff]  ;;  %v4922_v44 = vld [vmem:[#allocation63_spill] sm:$0xff] }
 0x1a0   :  { %4880 = vst [vmem:[#allocation30_spill] sm:$0xff] %v3783_v58  ;;  %4881 = vst [vmem:[#allocation116_spill] sm:$0xff] %v3787_v3  ;;  %v3799_v17 = vmul.f32 %v3606_v15, %v4886_v33  ;;  %v4889_v58 = vld [vmem:[#allocation35_spill] sm:$0xff]  ;;  %v4891_v3 = vld [vmem:[#allocation34_spill] sm:$0xff]  ;;  %v3819_v33 = vmul.f32 %v3599_v36, %v3117_v18 }
 0x1a1   :  { %4883 = vst [vmem:[#allocation32_spill] sm:$0xff] %v3791_v11  ;;  %4885 = vst [vmem:[#allocation31_spill] sm:$0xff] %v3795_v30  ;;  %v3807_v0 = vmul.f32 %v3602_v13, %v4889_v58  ;;  %v3811_v34 = vmul.f32 %v3604_v16, %v4891_v3  ;;  %v4893_v11 = vld [vmem:[#allocation36_spill] sm:$0xff]  ;;  %v4936_v40 = vld [vmem:[#allocation83_spill] sm:$0xff] }
 0x1a2   :  { %4887 = vst [vmem:[#allocation33_spill] sm:$0xff] %v3799_v17  ;;  %4888 = vst [vmem:[#allocation117_spill] sm:$0xff] %v3803_v53  ;;  %v3815_v57 = vmul.f32 %v3606_v15, %v4893_v11  ;;  %v4896_v17 = vld [vmem:[#allocation38_spill] sm:$0xff]  ;;  %v4898_v53 = vld [vmem:[#allocation37_spill] sm:$0xff]  ;;  %v3835_v11 = vmul.f32 %v3599_v36, %v3142_v62 }
 0x1a3   :  { %4890 = vst [vmem:[#allocation35_spill] sm:$0xff] %v3807_v0  ;;  %4892 = vst [vmem:[#allocation34_spill] sm:$0xff] %v3811_v34  ;;  %v3823_v59 = vmul.f32 %v3602_v13, %v4896_v17  ;;  %v3827_v58 = vmul.f32 %v3604_v16, %v4898_v53  ;;  %v4900_v0 = vld [vmem:[#allocation39_spill] sm:$0xff]  ;;  %v4920_v34 = vld [vmem:[#allocation62_spill] sm:$0xff] }
 0x1a4   :  { %4894 = vst [vmem:[#allocation36_spill] sm:$0xff] %v3815_v57  ;;  %4895 = vst [vmem:[#allocation118_spill] sm:$0xff] %v3819_v33  ;;  %v3831_v3 = vmul.f32 %v3606_v15, %v4900_v0  ;;  %v4903_v57 = vld [vmem:[#allocation41_spill] sm:$0xff]  ;;  %v4905_v33 = vld [vmem:[#allocation40_spill] sm:$0xff]  ;;  %v3851_v0 = vmul.f32 %v3602_v13, %v3178_v38 }
 0x1a5   :  { %4897 = vst [vmem:[#allocation38_spill] sm:$0xff] %v3823_v59  ;;  %4899 = vst [vmem:[#allocation37_spill] sm:$0xff] %v3827_v58  ;;  %v3839_v18 = vmul.f32 %v3602_v13, %v4903_v57  ;;  %v3843_v17 = vmul.f32 %v3604_v16, %v4905_v33  ;;  %v4907_v59 = vld [vmem:[#allocation42_spill] sm:$0xff]  ;;  %v4910_v58 = vld [vmem:[#allocation45_spill] sm:$0xff]  ;;  %v3859_v57 = vmul.f32 %v3602_v13, %v3200_v46 }
 0x1a6   :  { %4901 = vst [vmem:[#allocation39_spill] sm:$0xff] %v3831_v3  ;;  %4902 = vst [vmem:[#allocation119_spill] sm:$0xff] %v3835_v11  ;;  %v3847_v53 = vmul.f32 %v3606_v15, %v4907_v59  ;;  %v3855_v62 = vmul.f32 %v3606_v15, %v4910_v58  ;;  %v1174_v33 = vmul.f32 %v3599_v36, %v3214_v10  ;;  %v4914_v59 = vld [vmem:[#allocation52_spill] sm:$0xff]  ;;  %v4918_v46 = vld [vmem:[#allocation57_spill] sm:$0xff] }
 0x1a7   :  { %4904 = vst [vmem:[#allocation41_spill] sm:$0xff] %v3839_v18  ;;  %4906 = vst [vmem:[#allocation40_spill] sm:$0xff] %v3843_v17  ;;  %v4913_v17 = vld [vmem:[#allocation49_spill] sm:$0xff]  ;;  %v1186_v10 = vmul.f32 %v3599_v36, %v3286_v4  ;;  %v4919_v3 = vld [vmem:[#allocation60_spill] sm:$0xff]  ;;  %v1195_v4 = vmul.f32 %v3602_v13, %v4924_v42  ;;  %v1204_v42 = vmul.f32 %v3604_v16, %v4929_v8 }
 0x1a8   :  { %4908 = vst [vmem:[#allocation42_spill] sm:$0xff] %v3847_v53  ;;  %4909 = vst [vmem:[#allocation120_spill] sm:$0xff] %v3851_v0  ;;  %v1176_v11 = vmul.f32 %v3604_v16, %v4913_v17  ;;  %v1178_v53 = vmul.f32 %v3599_v36, %v4914_v59  ;;  %v4915_v18 = vld [vmem:[#allocation53_spill] sm:$0xff]  ;;  %v4916_v0 = vld [vmem:[#allocation56_spill] sm:$0xff]  ;;  %v1187_v17 = vmul.f32 %v3602_v13, %v3298_v56 }
 0x1a9   :  { %4911 = vst [vmem:[#allocation45_spill] sm:$0xff] %v3855_v62  ;;  %4912 = vst [vmem:[#allocation121_spill] sm:$0xff] %v3859_v57  ;;  %v1180_v38 = vmul.f32 %v3604_v16, %v4915_v18  ;;  %v1182_v58 = vmul.f32 %v3599_v36, %v4916_v0  ;;  %v4917_v62 = vld [vmem:[#allocation58_spill] sm:$0xff]  ;;  %v1184_v57 = vmul.f32 %v3604_v16, %v4918_v46  ;;  %v4921_v30 = vld [vmem:[#allocation64_spill] sm:$0xff] }
 0x1aa   :  { %v1183_v15 = vmul.f32 %v3602_v13, %v4917_v62  ;;  %v1188_v59 = vmul.f32 %v3604_v16, %v4919_v3  ;;  %v1190_v18 = vmul.f32 %v3599_v36, %v4920_v34  ;;  %v1191_v0 = vmul.f32 %v3602_v13, %v4921_v30  ;;  %v4937_v39 = vld [vmem:[#allocation86_spill] sm:$0xff]  ;;  %v4939_v9 = vld [vmem:[#allocation87_spill] sm:$0xff]  ;;  %v4940_v60 = vld [vmem:[#allocation89_spill] sm:$0xff] }
 0x1ab   :  { %v1192_v62 = vmul.f32 %v3604_v16, %v4922_v44  ;;  %v1194_v46 = vmul.f32 %v3599_v36, %v4923_v1  ;;  %v1196_v56 = vmul.f32 %v3604_v16, %v4925_v51  ;;  %v1198_v3 = vmul.f32 %v3599_v36, %v4926_v2  ;;  %v4941_v55 = vld [vmem:[#allocation91_spill] sm:$0xff] }
 0x1ac   :  { %v1199_v34 = vmul.f32 %v3602_v13, %v3370_v47  ;;  %v1200_v30 = vmul.f32 %v3604_v16, %v4927_v52  ;;  %v1202_v44 = vmul.f32 %v3599_v36, %v3380_v7  ;;  %v1203_v1 = vmul.f32 %v3602_v13, %v4928_v45 }
 0x1ad   :  { %v1206_v51 = vmul.f32 %v3599_v36, %v4930_v19  ;;  %v1207_v2 = vmul.f32 %v3602_v13, %v4931_v29  ;;  %v1208_v47 = vmul.f32 %v3604_v16, %v4932_v50  ;;  %v1210_v52 = vmul.f32 %v3599_v36, %v3426_v61 }
 0x1ae   :  { %v1211_v7 = vmul.f32 %v3602_v13, %v3437_v5  ;;  %v1212_v45 = vmul.f32 %v3604_v16, %v4933_v24  ;;  %v1214_v8 = vmul.f32 %v3599_v36, %v4934_v21  ;;  %v1215_v19 = vmul.f32 %v3602_v13, %v4935_v41 }
 0x1af   :  { %v1216_v29 = vmul.f32 %v3604_v16, %v4936_v40  ;;  %v1218_v50 = vmul.f32 %v3599_v36, %v4937_v39  ;;  %v1219_v61 = vmul.f32 %v3602_v13, %v3483_v12  ;;  %v3928_v5 = vadd.f32 %v3752_v14, %v1174_v33 }
 0x1b0   :  { %v3931_v24 = vadd.f32 %v3765_v22, %v1176_v11  ;;  %v1220_v21 = vmul.f32 %v3604_v16, %v4939_v9  ;;  %v1222_v41 = vmul.f32 %v3599_v36, %v4940_v60  ;;  %v3938_v40 = vadd.f32 %v3752_v14, %v1178_v53 }
 0x1b1   :  { %v3941_v39 = vadd.f32 %v3765_v22, %v1180_v38  ;;  %v1223_v12 = vmul.f32 %v3602_v13, %v4941_v55  ;;  %v3946_v33 = vadd.f32 %v3752_v14, %v1182_v58  ;;  %v3949_v11 = vadd.f32 %v3755_v37, %v1183_v15  ;;  %v4949_v58 = vld [vmem:[#allocation93_spill] sm:$0xff] }
 0x1b2   :  { %4938 = vst [vmem:[#allocation49_spill] sm:$0xff] %v3931_v24  ;;  %v3952_v9 = vadd.f32 %v3765_v22, %v1184_v57  ;;  %v4945_v24 = vld [vmem:[#allocation90_spill] sm:$0xff]  ;;  %v3957_v53 = vadd.f32 %v3752_v14, %v1186_v10  ;;  %v3960_v38 = vadd.f32 %v3755_v37, %v1187_v17  ;;  %v3963_v55 = vadd.f32 %v3765_v22, %v1188_v59  ;;  %v4953_v10 = vld [vmem:[#allocation95_spill] sm:$0xff] }
 0x1b3   :  { %4942 = vst [vmem:[#allocation52_spill] sm:$0xff] %v3946_v33  ;;  %4943 = vst [vmem:[#allocation53_spill] sm:$0xff] %v3949_v11  ;;  %v1224_v60 = vmul.f32 %v3604_v16, %v4945_v24  ;;  %v1226_v33 = vmul.f32 %v3599_v36, %v4949_v58  ;;  %v3968_v15 = vadd.f32 %v3752_v14, %v1190_v18  ;;  %v4957_v18 = vld [vmem:[#allocation94_spill] sm:$0xff]  ;;  %v4991_v11 = vld [vmem:[#allocation23_spill] sm:$0xff] }
 0x1b4   :  { %4944 = vst [vmem:[#allocation56_spill] sm:$0xff] %v3952_v9  ;;  %4946 = vst [vmem:[#allocation58_spill] sm:$0xff] %v3957_v53  ;;  %v3971_v57 = vadd.f32 %v3755_v37, %v1191_v0  ;;  %v3974_v24 = vadd.f32 %v3765_v22, %v1192_v62  ;;  %v1227_v9 = vmul.f32 %v3602_v13, %v4953_v10 }
 0x1b5   :  { %4947 = vst [vmem:[#allocation57_spill] sm:$0xff] %v3960_v38  ;;  %4948 = vst [vmem:[#allocation60_spill] sm:$0xff] %v3963_v55  ;;  %v3979_v17 = vadd.f32 %v3752_v14, %v1194_v46  ;;  %v3982_v59 = vadd.f32 %v3755_v37, %v1195_v4  ;;  %v3985_v58 = vadd.f32 %v3765_v22, %v1196_v56  ;;  %v4961_v46 = vld [vmem:[#allocation97_spill] sm:$0xff] }
 0x1b6   :  { %4950 = vst [vmem:[#allocation62_spill] sm:$0xff] %v3968_v15  ;;  %4951 = vst [vmem:[#allocation64_spill] sm:$0xff] %v3971_v57  ;;  %v1228_v15 = vmul.f32 %v3604_v16, %v4957_v18  ;;  %v3990_v0 = vadd.f32 %v3752_v14, %v1198_v3  ;;  %v3993_v62 = vadd.f32 %v3755_v37, %v1199_v34  ;;  %v4965_v3 = vld [vmem:[#allocation99_spill] sm:$0xff] }
 0x1b7   :  { %4952 = vst [vmem:[#allocation63_spill] sm:$0xff] %v3974_v24  ;;  %4954 = vst [vmem:[#allocation66_spill] sm:$0xff] %v3979_v17  ;;  %v3996_v10 = vadd.f32 %v3765_v22, %v1200_v30  ;;  %v1230_v24 = vmul.f32 %v3599_v36, %v4961_v46  ;;  %v4001_v4 = vadd.f32 %v3752_v14, %v1202_v44  ;;  %v4967_v44 = vld [vmem:[#allocation98_spill] sm:$0xff] }
 0x1b8   :  { %4955 = vst [vmem:[#allocation68_spill] sm:$0xff] %v3982_v59  ;;  %4956 = vst [vmem:[#allocation67_spill] sm:$0xff] %v3985_v58  ;;  %v4004_v56 = vadd.f32 %v3755_v37, %v1203_v1  ;;  %v4007_v18 = vadd.f32 %v3765_v22, %v1204_v42  ;;  %v4012_v34 = vadd.f32 %v3752_v14, %v1206_v51  ;;  %v4969_v51 = vld [vmem:[#allocation101_spill] sm:$0xff] }
 0x1b9   :  { %4958 = vst [vmem:[#allocation70_spill] sm:$0xff] %v3990_v0  ;;  %4959 = vst [vmem:[#allocation71_spill] sm:$0xff] %v3993_v62  ;;  %v1231_v0 = vmul.f32 %v3602_v13, %v4965_v3  ;;  %v4015_v30 = vadd.f32 %v3755_v37, %v1207_v2  ;;  %v4018_v46 = vadd.f32 %v3765_v22, %v1208_v47 }
 0x1ba   :  { %4960 = vst [vmem:[#allocation74_spill] sm:$0xff] %v3996_v10  ;;  %4962 = vst [vmem:[#allocation73_spill] sm:$0xff] %v4001_v4  ;;  %v1232_v10 = vmul.f32 %v3604_v16, %v4967_v44  ;;  %v4023_v1 = vadd.f32 %v3752_v14, %v1210_v52  ;;  %v4026_v42 = vadd.f32 %v3755_v37, %v1211_v7  ;;  %v4971_v52 = vld [vmem:[#allocation103_spill] sm:$0xff]  ;;  %v4985_v4 = vld [vmem:[#allocation112_spill] sm:$0xff] }
 0x1bb   :  { %4963 = vst [vmem:[#allocation76_spill] sm:$0xff] %v4004_v56  ;;  %4964 = vst [vmem:[#allocation78_spill] sm:$0xff] %v4007_v18  ;;  %v4029_v3 = vadd.f32 %v3765_v22, %v1212_v45  ;;  %v1234_v18 = vmul.f32 %v3599_v36, %v4969_v51  ;;  %v4034_v2 = vadd.f32 %v3752_v14, %v1214_v8  ;;  %v4973_v8 = vld [vmem:[#allocation102_spill] sm:$0xff] }
 0x1bc   :  { %4966 = vst [vmem:[#allocation77_spill] sm:$0xff] %v4015_v30  ;;  %4968 = vst [vmem:[#allocation80_spill] sm:$0xff] %v4026_v42  ;;  %v4037_v47 = vadd.f32 %v3755_v37, %v1215_v19  ;;  %v4040_v44 = vadd.f32 %v3765_v22, %v1216_v29  ;;  %v1235_v30 = vmul.f32 %v3602_v13, %v4971_v52  ;;  %v4980_v13 = vld [vmem:[#allocation12_spill] sm:$0xff]  ;;  %v4986_v56 = vld [vmem:[#allocation18_spill] sm:$0xff] }
 0x1bd   :  { %v4045_v7 = vadd.f32 %v3752_v14, %v1218_v50  ;;  %v4048_v45 = vadd.f32 %v3755_v37, %v1219_v61  ;;  %v4051_v51 = vadd.f32 %v3765_v22, %v1220_v21  ;;  %v1236_v36 = vmul.f32 %v3604_v16, %v4973_v8  ;;  %v4981_v16 = vld [vmem:[#allocation14_spill] sm:$0xff] }
 0x1be   :  { %4970 = vst [vmem:[#allocation82_spill] sm:$0xff] %v4037_v47  ;;  %v4056_v19 = vadd.f32 %v3752_v14, %v1222_v41  ;;  %v4059_v29 = vadd.f32 %v3755_v37, %v1223_v12  ;;  %v4062_v52 = vadd.f32 %v3765_v22, %v1224_v60  ;;  %v1259_v50 = vadd.f32 %v3752_v14, %v3614_v54  ;;  %v4984_v47 = vld [vmem:[#allocation111_spill] sm:$0xff] }
 0x1bf   :  { %4972 = vst [vmem:[#allocation84_spill] sm:$0xff] %v4048_v45  ;;  %v4067_v61 = vadd.f32 %v3752_v14, %v1226_v33  ;;  %v4070_v21 = vadd.f32 %v3755_v37, %v1227_v9  ;;  %v4073_v8 = vadd.f32 %v3765_v22, %v1228_v15  ;;  %v1260_v41 = vadd.f32 %v3755_v37, %v3618_v20  ;;  %v4983_v45 = vld [vmem:[#allocation17_spill] sm:$0xff] }
 0x1c0   :  { %4974 = vst [vmem:[#allocation83_spill] sm:$0xff] %v4059_v29  ;;  %v4078_v12 = vadd.f32 %v3752_v14, %v1230_v24  ;;  %v4081_v60 = vadd.f32 %v3755_v37, %v1231_v0  ;;  %v4084_v54 = vadd.f32 %v3765_v22, %v1232_v10  ;;  %v1261_v33 = vadd.f32 %v3765_v22, %v3622_v43 }
 0x1c1   :  { %4975 = vst [vmem:[#allocation86_spill] sm:$0xff] %v4070_v21  ;;  %v4089_v9 = vadd.f32 %v3752_v14, %v1234_v18  ;;  %v4092_v15 = vadd.f32 %v3755_v37, %v1235_v30  ;;  %v4095_v20 = vadd.f32 %v3765_v22, %v1236_v36  ;;  %v1262_v24 = vadd.f32 %v3767_v35, %v3626_v49 }
 0x1c2   :  { %4976 = vst [vmem:[#allocation87_spill] sm:$0xff] %v4081_v60  ;;  %v1263_v0 = vadd.f32 %v3752_v14, %v3630_v6  ;;  %v1265_v10 = vadd.f32 %v3765_v22, %v3638_v23  ;;  %v4105_v43 = vadd.f32 %v3752_v14, %v3649_v25  ;;  %v1268_v18 = vadd.f32 %v3755_v37, %v3653_v27 }
 0x1c3   :  { %4977 = vst [vmem:[#allocation89_spill] sm:$0xff] %v4092_v15  ;;  %v4111_v36 = vadd.f32 %v3765_v22, %v3657_v26  ;;  %v1270_v49 = vadd.f32 %v3767_v35, %v3661_v48  ;;  %v4117_v6 = vadd.f32 %v3752_v14, %v3665_v28  ;;  %v4121_v23 = vadd.f32 %v3765_v22, %v3673_v31  ;;  %v4978_v26 = vld [vmem:[#allocation11_spill] sm:$0xff]  ;;  %v4979_v48 = vld [vmem:[#allocation10_spill] sm:$0xff] }
 0x1c4   :  { %v4125_v25 = vadd.f32 %v3752_v14, %v3681_v32  ;;  %v4129_v27 = vadd.f32 %v3755_v37, %v3685_v63  ;;  %v4133_v30 = vadd.f32 %v3765_v22, %v4978_v26  ;;  %v4137_v28 = vadd.f32 %v3767_v35, %v4979_v48  ;;  %v4982_v15 = vld [vmem:[#allocation15_spill] sm:$0xff] }
 0x1c5   :  { %v4141_v31 = vadd.f32 %v3752_v14, %v4980_v13  ;;  %v4145_v32 = vadd.f32 %v3765_v22, %v4981_v16  ;;  %v4149_v63 = vadd.f32 %v3752_v14, %v4982_v15  ;;  %v1387_v60 = vmax.f32 %v1259_v50, 0.0  ;;  %v4987_v50 = vld [vmem:[#allocation8_spill] sm:$0xff] }
 0x1c6   :  { %v1389_v21 = vmax.f32 %v1261_v33, 0.0  ;;  %v1391_v26 = vmax.f32 %v1263_v0, 0.0  ;;  %v1393_v29 = vmax.f32 %v1265_v10, 0.0  ;;  %v4153_v48 = vadd.f32 %v3755_v37, %v4983_v45  ;;  %v4988_v0 = vld [vmem:[#allocation9_spill] sm:$0xff] }
 0x1c7   :  { %v1264_v13 = vadd.f32 %v3755_v37, %v4984_v47  ;;  %v1388_v42 = vmax.f32 %v1260_v41, 0.0  ;;  %v1266_v16 = vadd.f32 %v3767_v35, %v4985_v4  ;;  %v4161_v62 = vadd.f32 %v3765_v22, %v4986_v56  ;;  %v4989_v4 = vld [vmem:[#allocation20_spill] sm:$0xff]  ;;  %v4990_v56 = vld [vmem:[#allocation19_spill] sm:$0xff] }
 0x1c8   :  { %v1390_v15 = vmax.f32 %v1262_v24, 0.0  ;;  %v1272_v33 = vadd.f32 %v3755_v37, %v4987_v50  ;;  %v1274_v10 = vadd.f32 %v3767_v35, %v4988_v0  ;;  %v1396_v17 = vmax.f32 %v1268_v18, 0.0  ;;  %v4992_v18 = vld [vmem:[#allocation24_spill] sm:$0xff]  ;;  %v4997_v0 = vld [vmem:[#allocation27_spill] sm:$0xff] }
 0x1c9   :  { %v1392_v45 = vmax.f32 %v1264_v13, 0.0  ;;  %v1394_v58 = vmax.f32 %v1266_v16, 0.0  ;;  %v1398_v59 = vmax.f32 %v1270_v49, 0.0  ;;  %v1515_v47 = vpack.c.bf16 %v1391_v26, %v1387_v60  ;;  %v4994_v49 = vld [vmem:[#allocation13_spill] sm:$0xff] }
 0x1ca   :  { %v1517_v41 = vpack.c.bf16 %v1393_v29, %v1389_v21  ;;  %v1400_v57 = vmax.f32 %v1272_v33, 0.0  ;;  %v1402_v55 = vmax.f32 %v1274_v10, 0.0  ;;  %v4169_v53 = vadd.f32 %v3767_v35, %v4989_v4  ;;  %v4993_v29 = vld [vmem:[#allocation25_spill] sm:$0xff] }
 0x1cb   :  { %v4173_v24 = vadd.f32 %v3752_v14, %v4990_v56  ;;  %v1516_v50 = vpack.c.bf16 %v1392_v45, %v1388_v42  ;;  %v1518_v38 = vpack.c.bf16 %v1394_v58, %v1390_v15  ;;  %v4177_v13 = vadd.f32 %v3765_v22, %v4991_v11  ;;  %v4995_v58 = vld [vmem:[#allocation16_spill] sm:$0xff]  ;;  %v4996_v11 = vld [vmem:[#allocation26_spill] sm:$0xff]  ;;  %v4998_v45 = vld [vmem:[#allocation115_spill] sm:$0xff] }
 0x1cc   :  { %v4181_v60 = vadd.f32 %v3752_v14, %v4992_v18  ;;  %v4185_v21 = vadd.f32 %v3755_v37, %v4993_v29  ;;  %v1280_v26 = vadd.f32 %v3755_v37, %v4994_v49  ;;  %v1520_v16 = vpack.c.bf16 %v1400_v57, %v1396_v17  ;;  %v5000_v57 = vld [vmem:[#allocation28_spill] sm:$0xff] }
 0x1cd   :  { %2007 = vmatprep.mubr.bf16.mxu0 %v1516_v50  ;;  %2200 = vmatprep.mubr.bf16.mxu1 %v1518_v38  ;;  %v1522_v42 = vpack.c.bf16 %v1402_v55, %v1398_v59  ;;  %v1282_v15 = vadd.f32 %v3767_v35, %v4995_v58  ;;  %v4193_v33 = vadd.f32 %v3765_v22, %v4996_v11  ;;  %v4999_v38 = vld [vmem:[#allocation29_spill] sm:$0xff]  ;;  %v5001_v59 = vld [vmem:[#allocation30_spill] sm:$0xff]  ;;  %v1395_v50 = vmax.f32 %v4105_v43, 0.0  ;;  %v5005_v43 = vld [vmem:[#allocation31_spill] sm:$0xff] }
 0x1ce   :  { %v4197_v10 = vadd.f32 %v3767_v35, %v4997_v0  ;;  %v4201_v4 = vadd.f32 %v3752_v14, %v4998_v45  ;;  %2008 = vmatmul.mubr.bf16.vlgmr.msra.gmra.mxu0 %v1515_v47  ;;  %2201 = vmatmul.mubr.bf16.vlgmr.msra.gmra.mxu1 %v1517_v41  ;;  %v4205_v55 = vadd.f32 %v3755_v37, %v4999_v38  ;;  %v1399_v18 = vmax.f32 %v4117_v6, 0.0  ;;  %v5002_v0 = vld [vmem:[#allocation116_spill] sm:$0xff]  ;;  %v5011_v38 = vld [vmem:[#allocation34_spill] sm:$0xff] }
 0x1cf   :  { %v4209_v17 = vadd.f32 %v3765_v22, %v5000_v57  ;;  %v4213_v56 = vadd.f32 %v3767_v35, %v5001_v59  ;;  %2017 = vmatprep.mubr.bf16.mxu0 %v1520_v16  ;;  %2210 = vmatprep.mubr.bf16.mxu1 %v1522_v42  ;;  %v1397_v47 = vmax.f32 %v4111_v36, 0.0  ;;  %v1401_v41 = vmax.f32 %v4121_v23, 0.0  ;;  %v5004_v16 = vld [vmem:[#allocation32_spill] sm:$0xff]  ;;  %v5007_v36 = vld [vmem:[#allocation33_spill] sm:$0xff] }
 0x1d0   :  { %v1404_v29 = vmax.f32 %v4129_v27, 0.0  ;;  %v1408_v49 = vmax.f32 %v1280_v26, 0.0  ;;  %v1406_v58 = vmax.f32 %v4137_v28, 0.0  ;;  %v1410_v11 = vmax.f32 %v1282_v15, 0.0  ;;  %v5008_v27 = vld [vmem:[#allocation117_spill] sm:$0xff]  ;;  %v5010_v26 = vld [vmem:[#allocation35_spill] sm:$0xff] }
 0x1d1   :  { %v4223_v45 = vadd.f32 %v3752_v14, %v5002_v0  ;;  %v4227_v42 = vadd.f32 %v3755_v37, %v5004_v16  ;;  %v4231_v6 = vadd.f32 %v3765_v22, %v5005_v43  ;;  %v4235_v23 = vadd.f32 %v3767_v35, %v5007_v36  ;;  %v5013_v59 = vld [vmem:[#allocation36_spill] sm:$0xff]  ;;  %v5015_v16 = vld [vmem:[#allocation38_spill] sm:$0xff]  ;;  %v5017_v36 = vld [vmem:[#allocation39_spill] sm:$0xff] }
 0x1d2   :  { %v4239_v28 = vadd.f32 %v3752_v14, %v5008_v27  ;;  %v4243_v15 = vadd.f32 %v3755_v37, %v5010_v26  ;;  %v4247_v57 = vadd.f32 %v3765_v22, %v5011_v38  ;;  %v4251_v0 = vadd.f32 %v3767_v35, %v5013_v59  ;;  %v5019_v22 = vld [vmem:[#allocation22_spill] sm:$0xff]  ;;  %v5020_v59 = vld [vmem:[#allocation41_spill] sm:$0xff] }
 0x1d3   :  { %5003 = vst [vmem:[#allocation91_spill] sm:$0xff] %v4223_v45  ;;  %5006 = vst [vmem:[#allocation90_spill] sm:$0xff] %v4231_v6  ;;  %v4255_v43 = vadd.f32 %v3755_v37, %v5015_v16  ;;  %v4259_v27 = vadd.f32 %v3767_v35, %v5017_v36  ;;  %v1519_v14 = vpack.c.bf16 %v1399_v18, %v1395_v50  ;;  %v5018_v45 = vld [vmem:[#allocation21_spill] sm:$0xff]  ;;  %v5021_v16 = vld [vmem:[#allocation42_spill] sm:$0xff]  ;;  %v1483_v36 = vmax.f32 %v4012_v34, 0.0 }
 0x1d4   :  { %5009 = vst [vmem:[#allocation93_spill] sm:$0xff] %v4239_v28  ;;  %5012 = vst [vmem:[#allocation95_spill] sm:$0xff] %v4247_v57  ;;  %v1521_v6 = vpack.c.bf16 %v1401_v41, %v1397_v47  ;;  %v1524_v26 = vpack.c.bf16 %v1408_v49, %v1404_v29  ;;  %v1526_v28 = vpack.c.bf16 %v1410_v11, %v1406_v58  ;;  %v1485_v50 = vmax.f32 %v4018_v46, 0.0 }
 0x1d5   :  { %5014 = vst [vmem:[#allocation94_spill] sm:$0xff] %v4251_v0  ;;  %5016 = vst [vmem:[#allocation97_spill] sm:$0xff] %v4255_v43  ;;  %v1288_v38 = vadd.f32 %v3755_v37, %v5018_v45  ;;  %v1290_v57 = vadd.f32 %v3767_v35, %v5019_v22  ;;  %v4267_v0 = vadd.f32 %v3755_v37, %v5020_v59  ;;  %v1487_v18 = vmax.f32 %v4023_v1, 0.0 }
 0x1d6   :  { %v4271_v43 = vadd.f32 %v3767_v35, %v5021_v16  ;;  %2018 = vmatmul.mubr.bf16.gmra.mxu0 %v1519_v14  ;;  %2211 = vmatmul.mubr.bf16.gmra.mxu1 %v1521_v6  ;;  %v1489_v47 = vmax.f32 %v4029_v3, 0.0  ;;  %v1491_v22 = vmax.f32 %v4034_v2, 0.0  ;;  %v1403_v29 = vmax.f32 %v4125_v25, 0.0 }
 0x1d7   :  { %2027 = vmatprep.mubr.bf16.mxu0 %v1524_v26  ;;  %2220 = vmatprep.mubr.bf16.mxu1 %v1526_v28  ;;  %v1407_v49 = vmax.f32 %v4141_v31, 0.0  ;;  %v1405_v58 = vmax.f32 %v4133_v30, 0.0  ;;  %v1409_v11 = vmax.f32 %v4145_v32, 0.0  ;;  %v1412_v14 = vmax.f32 %v4153_v48, 0.0 }
 0x1d8   :  { %v1416_v45 = vmax.f32 %v1288_v38, 0.0  ;;  %v1414_v6 = vmax.f32 %v4169_v53, 0.0  ;;  %v1418_v59 = vmax.f32 %v1290_v57, 0.0  ;;  %v1411_v31 = vmax.f32 %v4149_v63, 0.0 }
 0x1d9   :  { %v1415_v30 = vmax.f32 %v4173_v24, 0.0  ;;  %v1413_v32 = vmax.f32 %v4161_v62, 0.0  ;;  %v1417_v48 = vmax.f32 %v4177_v13, 0.0  ;;  %v1523_v26 = vpack.c.bf16 %v1407_v49, %v1403_v29 }
 0x1da   :  { %v1525_v38 = vpack.c.bf16 %v1409_v11, %v1405_v58  ;;  %v1420_v53 = vmax.f32 %v4185_v21, 0.0  ;;  %v1424_v57 = vmax.f32 %v4205_v55, 0.0  ;;  %v1503_v41 = vmax.f32 %v4067_v61, 0.0 }
 0x1db   :  { %v1505_v28 = vmax.f32 %v4073_v8, 0.0  ;;  %v1528_v16 = vpack.c.bf16 %v1416_v45, %v1412_v14  ;;  %v1530_v25 = vpack.c.bf16 %v1418_v59, %v1414_v6  ;;  %v1422_v62 = vmax.f32 %v4197_v10, 0.0 }
 0x1dc   :  { %v1426_v13 = vmax.f32 %v4213_v56, 0.0  ;;  %v1527_v29 = vpack.c.bf16 %v1415_v30, %v1411_v31  ;;  %v1529_v49 = vpack.c.bf16 %v1417_v48, %v1413_v32  ;;  %v1532_v58 = vpack.c.bf16 %v1424_v57, %v1420_v53  ;;  %v5022_v56 = vld [vmem:[#allocation49_spill] sm:$0xff]  ;;  %v5026_v53 = vld [vmem:[#allocation58_spill] sm:$0xff] }
 0x1dd   :  { %v1419_v11 = vmax.f32 %v4181_v60, 0.0  ;;  %v1423_v14 = vmax.f32 %v4201_v4, 0.0  ;;  %v1451_v45 = vmax.f32 %v3928_v5, 0.0  ;;  %v1421_v6 = vmax.f32 %v4193_v33, 0.0  ;;  %v5024_v30 = vld [vmem:[#allocation57_spill] sm:$0xff]  ;;  %v5025_v33 = vld [vmem:[#allocation52_spill] sm:$0xff] }
 0x1de   :  { %2028 = vmatmul.mubr.bf16.gmra.mxu0 %v1523_v26  ;;  %2221 = vmatmul.mubr.bf16.gmra.mxu1 %v1525_v38  ;;  %v1455_v10 = vmax.f32 %v3938_v40, 0.0  ;;  %v1453_v59 = vmax.f32 %v5022_v56, 0.0  ;;  %v1457_v26 = vmax.f32 %v3941_v39, 0.0  ;;  %v1534_v38 = vpack.c.bf16 %v1426_v13, %v1422_v62  ;;  %v5027_v39 = vld [vmem:[#allocation56_spill] sm:$0xff] }
 0x1df   :  { %2037 = vmatprep.mubr.bf16.mxu0 %v1528_v16  ;;  %2230 = vmatprep.mubr.bf16.mxu1 %v1530_v25  ;;  %v1425_v16 = vmax.f32 %v4209_v17, 0.0  ;;  %v5023_v25 = vld [vmem:[#allocation53_spill] sm:$0xff]  ;;  %v1464_v32 = vmax.f32 %v5024_v30, 0.0  ;;  %v1428_v60 = vmax.f32 %v4227_v42, 0.0  ;;  %v1459_v48 = vmax.f32 %v5025_v33, 0.0  ;;  %v5028_v13 = vld [vmem:[#allocation60_spill] sm:$0xff] }
 0x1e0   :  { %v1460_v31 = vmax.f32 %v5023_v25, 0.0  ;;  %v4314_v4 = vpack.c.bf16 %v1455_v10, %v1451_v45  ;;  %v4316_v5 = vpack.c.bf16 %v1457_v26, %v1453_v59  ;;  %v1463_v57 = vmax.f32 %v5026_v53, 0.0  ;;  %v5029_v30 = vld [vmem:[#allocation64_spill] sm:$0xff] }
 0x1e1   :  { %v1461_v62 = vmax.f32 %v5027_v39, 0.0  ;;  %v1465_v17 = vmax.f32 %v5028_v13, 0.0  ;;  %v1432_v56 = vmax.f32 %v4243_v15, 0.0  ;;  %v1430_v25 = vmax.f32 %v4235_v23, 0.0  ;;  %v5030_v45 = vld [vmem:[#allocation68_spill] sm:$0xff]  ;;  %v5032_v15 = vld [vmem:[#allocation66_spill] sm:$0xff] }
 0x1e2   :  { %v4319_v40 = vpack.c.bf16 %v1464_v32, %v1460_v31  ;;  %v1468_v42 = vmax.f32 %v5029_v30, 0.0  ;;  %v1472_v10 = vmax.f32 %v5030_v45, 0.0  ;;  %v1531_v59 = vpack.c.bf16 %v1423_v14, %v1419_v11  ;;  %v5031_v32 = vld [vmem:[#allocation62_spill] sm:$0xff]  ;;  %v5033_v23 = vld [vmem:[#allocation63_spill] sm:$0xff] }
 0x1e3   :  { %v4328_v26 = vpack.c.bf16 %v1463_v57, %v1459_v48  ;;  %v4330_v31 = vpack.c.bf16 %v1465_v17, %v1461_v62  ;;  %v1467_v33 = vmax.f32 %v5031_v32, 0.0  ;;  %v1471_v39 = vmax.f32 %v5032_v15, 0.0  ;;  %v5034_v30 = vld [vmem:[#allocation67_spill] sm:$0xff]  ;;  %v5037_v48 = vld [vmem:[#allocation76_spill] sm:$0xff]  ;;  %v5040_v15 = vld [vmem:[#allocation73_spill] sm:$0xff] }
 0x1e4   :  { %v4333_v53 = vpack.c.bf16 %v1472_v10, %v1468_v42  ;;  %v1469_v13 = vmax.f32 %v5033_v23, 0.0  ;;  %v1473_v55 = vmax.f32 %v5034_v30, 0.0  ;;  %v1533_v45 = vpack.c.bf16 %v1425_v16, %v1421_v6  ;;  %v5036_v11 = vld [vmem:[#allocation71_spill] sm:$0xff]  ;;  %v5041_v30 = vld [vmem:[#allocation74_spill] sm:$0xff] }
 0x1e5   :  { %v1476_v14 = vmax.f32 %v5036_v11, 0.0  ;;  %v1480_v57 = vmax.f32 %v5037_v48, 0.0  ;;  %v5038_v62 = vld [vmem:[#allocation91_spill] sm:$0xff]  ;;  %v4342_v32 = vpack.c.bf16 %v1471_v39, %v1467_v33  ;;  %v1479_v23 = vmax.f32 %v5040_v15, 0.0  ;;  %v5042_v16 = vld [vmem:[#allocation78_spill] sm:$0xff]  ;;  %v5043_v11 = vld [vmem:[#allocation93_spill] sm:$0xff] }
 0x1e6   :  { %2038 = vmatmul.mubr.bf16.gmra.mxu0 %v1527_v29  ;;  %2231 = vmatmul.mubr.bf16.gmra.mxu1 %v1529_v49  ;;  %v5035_v29 = vld [vmem:[#allocation94_spill] sm:$0xff]  ;;  %v1427_v17 = vmax.f32 %v5038_v62, 0.0  ;;  %v1477_v6 = vmax.f32 %v5041_v30, 0.0  ;;  %v1536_v24 = vpack.c.bf16 %v1432_v56, %v1428_v60  ;;  %v1431_v21 = vmax.f32 %v5043_v11, 0.0  ;;  %v5044_v48 = vld [vmem:[#allocation77_spill] sm:$0xff]  ;;  %v5045_v62 = vld [vmem:[#allocation80_spill] sm:$0xff] }
 0x1e7   :  { %2047 = vmatprep.mubr.bf16.mxu0 %v1532_v58  ;;  %2240 = vmatprep.mubr.bf16.mxu1 %v1534_v38  ;;  %v1434_v49 = vmax.f32 %v5035_v29, 0.0  ;;  %v4344_v58 = vpack.c.bf16 %v1473_v55, %v1469_v13  ;;  %v5039_v38 = vld [vmem:[#allocation70_spill] sm:$0xff]  ;;  %v4347_v10 = vpack.c.bf16 %v1480_v57, %v1476_v14  ;;  %v1481_v29 = vmax.f32 %v5042_v16, 0.0  ;;  %v5049_v15 = vld [vmem:[#allocation95_spill] sm:$0xff] }
 0x1e8   :  { %v1475_v42 = vmax.f32 %v5039_v38, 0.0  ;;  %v1484_v63 = vmax.f32 %v5044_v48, 0.0  ;;  %v1488_v33 = vmax.f32 %v5045_v62, 0.0  ;;  %v4363_v14 = vpack.c.bf16 %v1487_v18, %v1483_v36  ;;  %v5046_v56 = vld [vmem:[#allocation82_spill] sm:$0xff]  ;;  %v5050_v36 = vld [vmem:[#allocation97_spill] sm:$0xff]  ;;  %v5058_v11 = vld [vmem:[#allocation87_spill] sm:$0xff] }
 0x1e9   :  { %v1538_v39 = vpack.c.bf16 %v1434_v49, %v1430_v25  ;;  %v4357_v13 = vpack.c.bf16 %v1481_v29, %v1477_v6  ;;  %v4371_v60 = vpack.c.bf16 %v1489_v47, %v1485_v50  ;;  %v1492_v25 = vmax.f32 %v5046_v56, 0.0  ;;  %v5047_v49 = vld [vmem:[#allocation84_spill] sm:$0xff]  ;;  %v5055_v30 = vld [vmem:[#allocation86_spill] sm:$0xff]  ;;  %v5059_v48 = vld [vmem:[#allocation89_spill] sm:$0xff] }
 0x1ea   :  { %v4355_v55 = vpack.c.bf16 %v1479_v23, %v1475_v42  ;;  %v4365_v57 = vpack.c.bf16 %v1488_v33, %v1484_v63  ;;  %v1496_v38 = vmax.f32 %v5047_v49, 0.0  ;;  %v5048_v42 = vld [vmem:[#allocation90_spill] sm:$0xff]  ;;  %v1433_v1 = vmax.f32 %v5049_v15, 0.0  ;;  %v5060_v62 = vld [vmem:[#allocation48_spill] sm:$0xff] }
 0x1eb   :  { %v1429_v34 = vmax.f32 %v5048_v42, 0.0  ;;  %v1436_v18 = vmax.f32 %v5050_v36, 0.0  ;;  %v5051_v46 = vmax.f32 %v4045_v7, 0.0  ;;  %v5052_v50 = vmax.f32 %v4040_v44, 0.0  ;;  %v5065_v56 = vld [vmem:[#allocation114_spill] sm:$0xff]  ;;  %v5069_v42 = vld [vmem:[#allocation40_spill] sm:$0xff] }
 0x1ec   :  { %v4384_v3 = vpack.c.bf16 %v1496_v38, %v1492_v25  ;;  %v5053_v47 = vmax.f32 %v4051_v51, 0.0  ;;  %v1504_v6 = vmax.f32 %v5055_v30, 0.0  ;;  %v1440_v2 = vmax.f32 %v4267_v0, 0.0 }
 0x1ed   :  { %v4382_v63 = vpack.c.bf16 %v5051_v46, %v1491_v22  ;;  %v1438_v7 = vmax.f32 %v4259_v27, 0.0  ;;  %v1442_v22 = vmax.f32 %v4271_v43, 0.0  ;;  %v5057_v51 = vmax.f32 %v4062_v52, 0.0  ;;  %v5061_v43 = vld [vmem:[#allocation110_spill] sm:$0xff] }
 0x1ee   :  { %2048 = vmatmul.mubr.bf16.gmra.mxu0 %v1531_v59  ;;  %2241 = vmatmul.mubr.bf16.gmra.mxu1 %v1533_v45  ;;  %v4390_v59 = vpack.c.bf16 %v5053_v47, %v5052_v50  ;;  %v5054_v45 = vld [vmem:[#allocation83_spill] sm:$0xff]  ;;  %v1508_v0 = vmax.f32 %v5058_v11, 0.0  ;;  %v1512_v27 = vmax.f32 %v5059_v48, 0.0  ;;  %v1173_v33 = vmul.f32 %v5061_v43, %v5060_v62  ;;  %v5077_v62 = vld [vmem:[#allocation44_spill] sm:$0xff] }
 0x1ef   :  { %2057 = vmatprep.mubr.bf16.mxu0 %v1536_v24  ;;  %2250 = vmatprep.mubr.bf16.mxu1 %v1538_v39  ;;  %v1500_v23 = vmax.f32 %v5054_v45, 0.0  ;;  %v5056_v24 = vmax.f32 %v4056_v19, 0.0  ;;  %v4409_v29 = vpack.c.bf16 %v1505_v28, %v5057_v51  ;;  %v5062_v19 = vld [vmem:[#allocation118_spill] sm:$0xff]  ;;  %v5063_v39 = vld [vmem:[#allocation113_spill] sm:$0xff]  ;;  %v5066_v49 = vmax.f32 %v4078_v12, 0.0  ;;  %v5068_v28 = vld [vmem:[#allocation119_spill] sm:$0xff] }
 0x1f0   :  { %v1307_v61 = vadd.f32 %v5063_v39, %v5062_v19  ;;  %v5067_v52 = vmax.f32 %v4089_v9, 0.0  ;;  %v1311_v38 = vadd.f32 %v5063_v39, %v5068_v28  ;;  %v1313_v15 = vadd.f32 %v5065_v56, %v5069_v42  ;;  %v5072_v45 = vld [vmem:[#allocation120_spill] sm:$0xff]  ;;  %v5073_v9 = vld [vmem:[#allocation45_spill] sm:$0xff]  ;;  %v5081_v42 = vld [vmem:[#allocation50_spill] sm:$0xff] }
 0x1f1   :  { %v4401_v16 = vpack.c.bf16 %v1503_v41, %v5056_v24  ;;  %v4403_v44 = vpack.c.bf16 %v1504_v6, %v1500_v23  ;;  %v5064_v41 = vld [vmem:[#allocation37_spill] sm:$0xff]  ;;  %v4429_v36 = vpack.c.bf16 %v1512_v27, %v1508_v0  ;;  %v5070_v46 = vmax.f32 %v4084_v54, 0.0  ;;  %v5075_v54 = vld [vmem:[#allocation43_spill] sm:$0xff] }
 0x1f2   :  { %v1309_v25 = vadd.f32 %v5065_v56, %v5064_v41  ;;  %v4423_v8 = vpack.c.bf16 %v5067_v52, %v5066_v49  ;;  %v5071_v50 = vmax.f32 %v4095_v20, 0.0  ;;  %v1316_v12 = vadd.f32 %v3755_v37, %v5072_v45  ;;  %v5074_v24 = vld [vmem:[#allocation121_spill] sm:$0xff]  ;;  %v5076_v27 = vld [vmem:[#allocation107_spill] sm:$0xff]  ;;  %v5079_v49 = vld [vmem:[#allocation46_spill] sm:$0xff] }
 0x1f3   :  { %v1318_v23 = vadd.f32 %v3767_v35, %v5073_v9  ;;  %v1535_v30 = vpack.c.bf16 %v1431_v21, %v1427_v17  ;;  %v1537_v6 = vpack.c.bf16 %v1433_v1, %v1429_v34  ;;  %v1320_v51 = vadd.f32 %v3755_v37, %v5074_v24  ;;  %v5078_v19 = vld [vmem:[#allocation109_spill] sm:$0xff]  ;;  %v5080_v21 = vld [vmem:[#allocation47_spill] sm:$0xff] }
 0x1f4   :  { %v4435_v47 = vpack.c.bf16 %v5071_v50, %v5070_v46  ;;  %v1322_v11 = vadd.f32 %v3767_v35, %v1173_v33  ;;  %v1540_v0 = vpack.c.bf16 %v1440_v2, %v1436_v18  ;;  %v1542_v48 = vpack.c.bf16 %v1442_v22, %v1438_v7  ;;  %v5082_v46 = vld [vmem:[#allocation108_spill] sm:$0xff]  ;;  %v5083_v45 = vld [vmem:[#allocation51_spill] sm:$0xff] }
 0x1f5   :  { %v1166_v20 = vmul.f32 %v5076_v27, %v5075_v54  ;;  %v1168_v41 = vmul.f32 %v5078_v19, %v5077_v62  ;;  %v1170_v52 = vmul.f32 %v5076_v27, %v5079_v49  ;;  %v1172_v17 = vmul.f32 %v5078_v19, %v5080_v21  ;;  %v5085_v24 = vld [vmem:[#allocation55_spill] sm:$0xff] }
 0x1f6   :  { %2058 = vmatmul.mubr.bf16.gmra.mxu0 %v1535_v30  ;;  %2251 = vmatmul.mubr.bf16.gmra.mxu1 %v1537_v6  ;;  %v1435_v34 = vmax.f32 %v1307_v61, 0.0  ;;  %v1439_v1 = vmax.f32 %v1311_v38, 0.0  ;;  %v1437_v18 = vmax.f32 %v1309_v25, 0.0  ;;  %v1441_v2 = vmax.f32 %v1313_v15, 0.0  ;;  %v5084_v30 = vld [vmem:[#allocation54_spill] sm:$0xff] }
 0x1f7   :  { %2067 = vmatprep.mubr.bf16.mxu0 %v1540_v0  ;;  %2260 = vmatprep.mubr.bf16.mxu1 %v1542_v48  ;;  %v1444_v7 = vmax.f32 %v1316_v12, 0.0  ;;  %v1448_v22 = vmax.f32 %v1320_v51, 0.0  ;;  %v1446_v33 = vmax.f32 %v1318_v23, 0.0  ;;  %v1450_v28 = vmax.f32 %v1322_v11, 0.0 }
 0x1f8   :  { %v1175_v50 = vmul.f32 %v5082_v46, %v5081_v42  ;;  %v1177_v9 = vmul.f32 %v5061_v43, %v5083_v45  ;;  %v1179_v6 = vmul.f32 %v5082_v46, %v5084_v30  ;;  %v1181_v0 = vmul.f32 %v5061_v43, %v5085_v24 }
 0x1f9   :  { %v1315_v61 = vadd.f32 %v5063_v39, %v1166_v20  ;;  %v1317_v25 = vadd.f32 %v5065_v56, %v1168_v41  ;;  %v1319_v38 = vadd.f32 %v5063_v39, %v1170_v52  ;;  %v1321_v15 = vadd.f32 %v5065_v56, %v1172_v17  ;;  %v5086_v17 = vld [vmem:[#allocation59_spill] sm:$0xff] }
 0x1fa   :  { %v1324_v12 = vadd.f32 %v3755_v37, %v1175_v50  ;;  %v1326_v23 = vadd.f32 %v3767_v35, %v1177_v9  ;;  %v1539_v51 = vpack.c.bf16 %v1439_v1, %v1435_v34  ;;  %v1541_v11 = vpack.c.bf16 %v1441_v2, %v1437_v18  ;;  %v5088_v50 = vld [vmem:[#allocation65_spill] sm:$0xff] }
 0x1fb   :  { %v1328_v48 = vadd.f32 %v3755_v37, %v1179_v6  ;;  %v1330_v54 = vadd.f32 %v3767_v35, %v1181_v0  ;;  %v1544_v27 = vpack.c.bf16 %v1448_v22, %v1444_v7  ;;  %v1546_v62 = vpack.c.bf16 %v1450_v28, %v1446_v33  ;;  %v5087_v37 = vld [vmem:[#allocation61_spill] sm:$0xff] }
 0x1fc   :  { %v1443_v20 = vmax.f32 %v1315_v61, 0.0  ;;  %v1447_v39 = vmax.f32 %v1319_v38, 0.0  ;;  %v1445_v19 = vmax.f32 %v1317_v25, 0.0  ;;  %v1449_v56 = vmax.f32 %v1321_v15, 0.0  ;;  %v5089_v9 = vld [vmem:[#allocation69_spill] sm:$0xff]  ;;  %v5090_v38 = vld [vmem:[#allocation72_spill] sm:$0xff] }
 0x1fd   :  { %v1452_v41 = vmax.f32 %v1324_v12, 0.0  ;;  %v1456_v49 = vmax.f32 %v1328_v48, 0.0  ;;  %v1454_v52 = vmax.f32 %v1326_v23, 0.0  ;;  %v1458_v21 = vmax.f32 %v1330_v54, 0.0  ;;  %v5091_v12 = vld [vmem:[#allocation75_spill] sm:$0xff] }
 0x1fe   :  { %2068 = vmatmul.mubr.bf16.gmra.mxu0 %v1539_v51  ;;  %2261 = vmatmul.mubr.bf16.gmra.mxu1 %v1541_v11  ;;  %v1185_v34 = vmul.f32 %v5061_v43, %v5086_v17  ;;  %v1189_v1 = vmul.f32 %v5061_v43, %v5087_v37  ;;  %v1543_v18 = vpack.c.bf16 %v1447_v39, %v1443_v20  ;;  %v5097_v37 = vld [vmem:[#allocation96_spill] sm:$0xff] }
 0x1ff   :  { %2077 = vmatprep.mubr.bf16.mxu0 %v1544_v27  ;;  %2270 = vmatprep.mubr.bf16.mxu1 %v1546_v62  ;;  %v1545_v2 = vpack.c.bf16 %v1449_v56, %v1445_v19  ;;  %v1548_v33 = vpack.c.bf16 %v1456_v49, %v1452_v41  ;;  %v1550_v28 = vpack.c.bf16 %v1458_v21, %v1454_v52  ;;  %v5093_v27 = vld [vmem:[#allocation81_spill] sm:$0xff]  ;;  %v5095_v41 = vld [vmem:[#allocation88_spill] sm:$0xff] }
 0x200   :  { %v1334_v7 = vadd.f32 %v3767_v35, %v1185_v34  ;;  %v1338_v22 = vadd.f32 %v3767_v35, %v1189_v1  ;;  %v1193_v45 = vmul.f32 %v5061_v43, %v5088_v50  ;;  %v1197_v30 = vmul.f32 %v5061_v43, %v5089_v9 }
 0x201   :  { %v1201_v15 = vmul.f32 %v5061_v43, %v5090_v38  ;;  %v1205_v23 = vmul.f32 %v5061_v43, %v5091_v12  ;;  %v1213_v62 = vmul.f32 %v5061_v43, %v5093_v27  ;;  %v1221_v49 = vmul.f32 %v5061_v43, %v5095_v41 }
 0x202   :  { %v1462_v42 = vmax.f32 %v1334_v7, 0.0  ;;  %v1466_v46 = vmax.f32 %v1338_v22, 0.0  ;;  %v1342_v6 = vadd.f32 %v3767_v35, %v1193_v45  ;;  %v1346_v24 = vadd.f32 %v3767_v35, %v1197_v30 }
 0x203   :  { %v1350_v51 = vadd.f32 %v3767_v35, %v1201_v15  ;;  %v1354_v11 = vadd.f32 %v3767_v35, %v1205_v23  ;;  %v1362_v39 = vadd.f32 %v3767_v35, %v1213_v62  ;;  %v1370_v21 = vadd.f32 %v3767_v35, %v1221_v49 }
 0x204   :  { %v1554_v0 = vpack.c.bf16 %v1466_v46, %v1462_v42  ;;  %v1470_v61 = vmax.f32 %v1342_v6, 0.0  ;;  %v1474_v25 = vmax.f32 %v1346_v24, 0.0  ;;  %v1229_v1 = vmul.f32 %v5061_v43, %v5097_v37 }
 0x206   :  { %2078 = vmatmul.mubr.bf16.gmra.mxu0 %v1543_v18  ;;  %2271 = vmatmul.mubr.bf16.gmra.mxu1 %v1545_v2  ;;  %v1558_v48 = vpack.c.bf16 %v1474_v25, %v1470_v61  ;;  %v1378_v2 = vadd.f32 %v3767_v35, %v1229_v1 }
 0x207   :  { %2087 = vmatprep.mubr.bf16.mxu0 %v1548_v33  ;;  %2280 = vmatprep.mubr.bf16.mxu1 %v1550_v28  ;;  %v5099_v33 = vld [vmem:[#allocation100_spill] sm:$0xff] }
 0x208   :  { %v1233_v28 = vmul.f32 %v5061_v43, %v5099_v33 }
 0x20a   :  { %v1382_v46 = vadd.f32 %v3767_v35, %v1233_v28 }
 0x20e   :  { %2088 = vmatmul.mubr.bf16.gmra.mxu0 %v4314_v4  ;;  %2281 = vmatmul.mubr.bf16.gmra.mxu1 %v4316_v5  ;;  %v1478_v4 = vmax.f32 %v1350_v51, 0.0  ;;  %v1482_v5 = vmax.f32 %v1354_v11, 0.0 }
 0x20f   :  { %2097 = vmatprep.mubr.bf16.mxu0 %v4319_v40  ;;  %2290 = vmatprep.mubr.bf16.mxu1 %v1554_v0  ;;  %v5092_v40 = vld [vmem:[#allocation79_spill] sm:$0xff] }
 0x210   :  { %v1209_v54 = vmul.f32 %v5061_v43, %v5092_v40  ;;  %v1562_v19 = vpack.c.bf16 %v1482_v5, %v1478_v4 }
 0x212   :  { %v1358_v20 = vadd.f32 %v3767_v35, %v1209_v54 }
 0x216   :  { %2098 = vmatmul.mubr.bf16.gmra.mxu0 %v4328_v26  ;;  %2291 = vmatmul.mubr.bf16.gmra.mxu1 %v4330_v31  ;;  %v1486_v26 = vmax.f32 %v1358_v20, 0.0  ;;  %v1490_v31 = vmax.f32 %v1362_v39, 0.0 }
 0x217   :  { %2107 = vmatprep.mubr.bf16.mxu0 %v4333_v53  ;;  %2300 = vmatprep.mubr.bf16.mxu1 %v1558_v48  ;;  %v5094_v53 = vld [vmem:[#allocation85_spill] sm:$0xff] }
 0x218   :  { %v1217_v56 = vmul.f32 %v5061_v43, %v5094_v53  ;;  %v1566_v17 = vpack.c.bf16 %v1490_v31, %v1486_v26 }
 0x21a   :  { %v1366_v52 = vadd.f32 %v3767_v35, %v1217_v56 }
 0x21e   :  { %2108 = vmatmul.mubr.bf16.gmra.mxu0 %v4342_v32  ;;  %2301 = vmatmul.mubr.bf16.gmra.mxu1 %v4344_v58  ;;  %v1494_v32 = vmax.f32 %v1366_v52, 0.0  ;;  %v1498_v58 = vmax.f32 %v1370_v21, 0.0 }
 0x21f   :  { %2117 = vmatprep.mubr.bf16.mxu0 %v4347_v10  ;;  %2310 = vmatprep.mubr.bf16.mxu1 %v1562_v19  ;;  %v5096_v10 = vld [vmem:[#allocation92_spill] sm:$0xff] }
 0x220   :  { %v1225_v34 = vmul.f32 %v5061_v43, %v5096_v10  ;;  %v1570_v7 = vpack.c.bf16 %v1498_v58, %v1494_v32 }
 0x222   :  { %v1374_v18 = vadd.f32 %v3767_v35, %v1225_v34 }
 0x226   :  { %2118 = vmatmul.mubr.bf16.gmra.mxu0 %v4355_v55  ;;  %2311 = vmatmul.mubr.bf16.gmra.mxu1 %v4357_v13  ;;  %v1502_v55 = vmax.f32 %v1374_v18, 0.0  ;;  %v1506_v13 = vmax.f32 %v1378_v2, 0.0 }
 0x227   :  { %2127 = vmatprep.mubr.bf16.mxu0 %v4365_v57  ;;  %2320 = vmatprep.mubr.bf16.mxu1 %v1566_v17  ;;  %v5098_v57 = vld [vmem:[#allocation104_spill] sm:$0xff] }
 0x228   :  { %v1237_v22 = vmul.f32 %v5061_v43, %v5098_v57  ;;  %v1574_v50 = vpack.c.bf16 %v1506_v13, %v1502_v55 }
 0x22a   :  { %v1386_v42 = vadd.f32 %v3767_v35, %v1237_v22  ;;  %v1643_v35 = vld [vmem:[%s4614_s5] sm:$0x3]  ;;  %s2719_s5 = smov [#allocation5]  }
 0x22b   :  { %s2430_s9 = sshll.u32 %s2719_s5, 4  ;;  %s2431_s9 = int_to_ptr.vmem [resolvable:$true] %s2430_s9 }
 0x22c   :  { %s2690_s4 = scalar_lea.vmem %s2431_s9, 8192  ;;  %p2695_p6 = scmp.lt.s32.totalorder %s2431_s9, %s2431_s9 }
 0x22d   :  { %p2691_p5 = scmp.ne.s32.totalorder %s2431_s9, %s2690_s4  ;;  %p2696_p7 = scmp.lt.s32.totalorder %s2690_s4, %s2690_s4 }
 0x22e   :  { %2128 = vmatmul.mubr.bf16.gmra.mxu0 %v4363_v14  ;;  %2321 = vmatmul.mubr.bf16.gmra.mxu1 %v4371_v60  ;;  %v1510_v14 = vmax.f32 %v1382_v46, 0.0  ;;  %v1514_v60 = vmax.f32 %v1386_v42, 0.0 }
 0x22f   :  { %2137 = vmatprep.mubr.bf16.mxu0 %v4384_v3  ;;  %2330 = vmatprep.mubr.bf16.mxu1 %v1570_v7  ;;  %p2697_p8 = por %p2696_p7, %p2695_p6 }
 0x230   :  { %v1578_v3 = vpack.c.bf16 %v1514_v60, %v1510_v14 }
 0x231   :  { %p2698_p9 = pnand %p2697_p8, %p2691_p5 }
 0x236   :  { %2138 = vmatmul.mubr.bf16.gmra.mxu0 %v4382_v63  ;;  %2331 = vmatmul.mubr.bf16.gmra.mxu1 %v4390_v59  ;;  %v5100_v63 = vld [vmem:[#allocation105_spill] sm:$0xff] }
 0x237   :  { %2147 = vmatprep.mubr.bf16.mxu0 %v4403_v44  ;;  %2340 = vmatprep.mubr.bf16.mxu1 %v1574_v50  ;;  %v4537_v59 = vrot.slane %v1643_v35, %v5100_v63  ;;  %v5101_v44 = vld [vmem:[#allocation106_spill] sm:$0xff] }
 0x238   :  { %v4540_v43 = vrot.slane %v1643_v35, %v5101_v44 }
 0x23e   :  { %2148 = vmatmul.mubr.bf16.gmra.mxu0 %v4401_v16  ;;  %2341 = vmatmul.mubr.bf16.gmra.mxu1 %v4409_v29 }
 0x23f   :  { %2157 = vmatprep.mubr.bf16.mxu0 %v4429_v36  ;;  %2350 = vmatprep.mubr.bf16.mxu1 %v1578_v3 }
 0x246   :  { %2158 = vmatmul.mubr.bf16.gmra.mxu0 %v4423_v8  ;;  %2351 = vmatmul.mubr.bf16.gmra.mxu1 %v4435_v47 }
 0x28e   :  { %v2009_v16 = vpop.f32.mrf.mxu0  ;;  %v2202_v45 = vpop.f32.mrf.mxu1 }
 0x28f   :  { %v2010_v29 = vadd.f32 %v2009_v16, %v4537_v59 }
 0x290   :  { %v2011_v36 = vpop.f32.mrf.mxu0  ;;  %v2204_v9 = vpop.f32.mrf.mxu1 }
 0x291   :  { %v2203_v30 = vadd.f32 %v2202_v45, %v2010_v29  ;;  %v2012_v8 = vadd.f32 %v2011_v36, %v4540_v43 }
 0x292   :  { %v2013_v47 = vpop.f32.mrf.mxu0  ;;  %v2206_v6 = vpop.f32.mrf.mxu1 }
 0x293   :  { %2361 = vst [vmem:[#allocation5] sm:$0xff] %v2203_v30  ;;  %v2205_v24 = vadd.f32 %v2204_v9, %v2012_v8  ;;  %v2014_v0 = vadd.f32 %v2013_v47, %v4537_v59 }
 0x294   :  { %v2015_v61 = vpop.f32.mrf.mxu0  ;;  %v2208_v25 = vpop.f32.mrf.mxu1 }
 0x295   :  { %2362 = vst [vmem:[#allocation5 + $0x8] sm:$0xff] %v2205_v24  ;;  %v2207_v38 = vadd.f32 %v2206_v6, %v2014_v0  ;;  %v2016_v15 = vadd.f32 %v2015_v61, %v4540_v43 }
 0x296   :  { %v2019_v12 = vpop.f32.mrf.mxu0  ;;  %v2212_v23 = vpop.f32.mrf.mxu1 }
 0x297   :  { %2363 = vst [vmem:[#allocation5 + $0x10] sm:$0xff] %v2207_v38  ;;  %v2209_v51 = vadd.f32 %v2208_v25, %v2016_v15  ;;  %v2020_v11 = vadd.f32 %v2019_v12, %v4537_v59 }
 0x298   :  { %v2021_v48 = vpop.f32.mrf.mxu0  ;;  %v2214_v4 = vpop.f32.mrf.mxu1 }
 0x299   :  { %2364 = vst [vmem:[#allocation5 + $0x18] sm:$0xff] %v2209_v51  ;;  %v2213_v5 = vadd.f32 %v2212_v23, %v2020_v11  ;;  %v2022_v40 = vadd.f32 %v2021_v48, %v4540_v43 }
 0x29a   :  { %v2023_v54 = vpop.f32.mrf.mxu0  ;;  %v2216_v27 = vpop.f32.mrf.mxu1 }
 0x29b   :  { %2365 = vst [vmem:[#allocation5 + $0x20] sm:$0xff] %v2213_v5  ;;  %v2215_v62 = vadd.f32 %v2214_v4, %v2022_v40  ;;  %v2024_v20 = vadd.f32 %v2023_v54, %v4537_v59 }
 0x29c   :  { %v2025_v39 = vpop.f32.mrf.mxu0  ;;  %v2218_v19 = vpop.f32.mrf.mxu1 }
 0x29d   :  { %2366 = vst [vmem:[#allocation5 + $0x28] sm:$0xff] %v2215_v62  ;;  %v2217_v26 = vadd.f32 %v2216_v27, %v2024_v20  ;;  %v2026_v31 = vadd.f32 %v2025_v39, %v4540_v43 }
 0x29e   :  { %v2029_v53 = vpop.f32.mrf.mxu0  ;;  %v2222_v56 = vpop.f32.mrf.mxu1 }
 0x29f   :  { %2367 = vst [vmem:[#allocation5 + $0x30] sm:$0xff] %v2217_v26  ;;  %v2219_v41 = vadd.f32 %v2218_v19, %v2026_v31  ;;  %v2030_v49 = vadd.f32 %v2029_v53, %v4537_v59 }
 0x2a0   :  { %v2031_v52 = vpop.f32.mrf.mxu0  ;;  %v2224_v21 = vpop.f32.mrf.mxu1 }
 0x2a1   :  { %2368 = vst [vmem:[#allocation5 + $0x38] sm:$0xff] %v2219_v41  ;;  %v2223_v17 = vadd.f32 %v2222_v56, %v2030_v49  ;;  %v2032_v32 = vadd.f32 %v2031_v52, %v4540_v43 }
 0x2a2   :  { %v2033_v58 = vpop.f32.mrf.mxu0  ;;  %v2226_v10 = vpop.f32.mrf.mxu1 }
 0x2a3   :  { %2369 = vst [vmem:[#allocation5 + $0x40] sm:$0xff] %v2223_v17  ;;  %v2225_v34 = vadd.f32 %v2224_v21, %v2032_v32  ;;  %v2034_v37 = vadd.f32 %v2033_v58, %v4537_v59 }
 0x2a4   :  { %v2035_v1 = vpop.f32.mrf.mxu0  ;;  %v2228_v18 = vpop.f32.mrf.mxu1 }
 0x2a5   :  { %2370 = vst [vmem:[#allocation5 + $0x48] sm:$0xff] %v2225_v34  ;;  %v2227_v2 = vadd.f32 %v2226_v10, %v2034_v37  ;;  %v2036_v7 = vadd.f32 %v2035_v1, %v4540_v43 }
 0x2a6   :  { %v2039_v55 = vpop.f32.mrf.mxu0  ;;  %v2232_v13 = vpop.f32.mrf.mxu1 }
 0x2a7   :  { %2371 = vst [vmem:[#allocation5 + $0x50] sm:$0xff] %v2227_v2  ;;  %v2229_v57 = vadd.f32 %v2228_v18, %v2036_v7  ;;  %v2040_v22 = vadd.f32 %v2039_v55, %v4537_v59 }
 0x2a8   :  { %v2041_v33 = vpop.f32.mrf.mxu0  ;;  %v2234_v28 = vpop.f32.mrf.mxu1 }
 0x2a9   :  { %2372 = vst [vmem:[#allocation5 + $0x58] sm:$0xff] %v2229_v57  ;;  %v2233_v42 = vadd.f32 %v2232_v13, %v2040_v22  ;;  %v2042_v46 = vadd.f32 %v2041_v33, %v4540_v43 }
 0x2aa   :  { %v2043_v50 = vpop.f32.mrf.mxu0  ;;  %v2236_v14 = vpop.f32.mrf.mxu1 }
 0x2ab   :  { %2373 = vst [vmem:[#allocation5 + $0x60] sm:$0xff] %v2233_v42  ;;  %v2235_v60 = vadd.f32 %v2234_v28, %v2042_v46  ;;  %v2044_v3 = vadd.f32 %v2043_v50, %v4537_v59 }
 0x2ac   :  { %v2045_v35 = vpop.f32.mrf.mxu0  ;;  %v2238_v63 = vpop.f32.mrf.mxu1 }
 0x2ad   :  { %2374 = vst [vmem:[#allocation5 + $0x68] sm:$0xff] %v2235_v60  ;;  %v2237_v44 = vadd.f32 %v2236_v14, %v2044_v3  ;;  %v2046_v16 = vadd.f32 %v2045_v35, %v4540_v43 }
 0x2ae   :  { %v2049_v45 = vpop.f32.mrf.mxu0  ;;  %v2242_v29 = vpop.f32.mrf.mxu1 }
 0x2af   :  { %2375 = vst [vmem:[#allocation5 + $0x70] sm:$0xff] %v2237_v44  ;;  %v2239_v36 = vadd.f32 %v2238_v63, %v2046_v16  ;;  %v2050_v9 = vadd.f32 %v2049_v45, %v4537_v59 }
 0x2b0   :  { %v2051_v30 = vpop.f32.mrf.mxu0  ;;  %v2244_v8 = vpop.f32.mrf.mxu1 }
 0x2b1   :  { %2376 = vst [vmem:[#allocation5 + $0x78] sm:$0xff] %v2239_v36  ;;  %v2243_v47 = vadd.f32 %v2242_v29, %v2050_v9  ;;  %v2052_v6 = vadd.f32 %v2051_v30, %v4540_v43 }
 0x2b2   :  { %v2053_v24 = vpop.f32.mrf.mxu0  ;;  %v2246_v0 = vpop.f32.mrf.mxu1 }
 0x2b3   :  { %2377 = vst [vmem:[#allocation5 + $0x80] sm:$0xff] %v2243_v47  ;;  %v2245_v61 = vadd.f32 %v2244_v8, %v2052_v6  ;;  %v2054_v25 = vadd.f32 %v2053_v24, %v4537_v59 }
 0x2b4   :  { %v2055_v38 = vpop.f32.mrf.mxu0  ;;  %v2248_v15 = vpop.f32.mrf.mxu1 }
 0x2b5   :  { %2378 = vst [vmem:[#allocation5 + $0x88] sm:$0xff] %v2245_v61  ;;  %v2247_v12 = vadd.f32 %v2246_v0, %v2054_v25  ;;  %v2056_v23 = vadd.f32 %v2055_v38, %v4540_v43 }
 0x2b6   :  { %v2059_v51 = vpop.f32.mrf.mxu0  ;;  %v2252_v11 = vpop.f32.mrf.mxu1 }
 0x2b7   :  { %2379 = vst [vmem:[#allocation5 + $0x90] sm:$0xff] %v2247_v12  ;;  %v2249_v48 = vadd.f32 %v2248_v15, %v2056_v23  ;;  %v2060_v4 = vadd.f32 %v2059_v51, %v4537_v59 }
 0x2b8   :  { %v2061_v5 = vpop.f32.mrf.mxu0  ;;  %v2254_v40 = vpop.f32.mrf.mxu1 }
 0x2b9   :  { %2380 = vst [vmem:[#allocation5 + $0x98] sm:$0xff] %v2249_v48  ;;  %v2253_v54 = vadd.f32 %v2252_v11, %v2060_v4  ;;  %v2062_v27 = vadd.f32 %v2061_v5, %v4540_v43 }
 0x2ba   :  { %v2063_v62 = vpop.f32.mrf.mxu0  ;;  %v2256_v20 = vpop.f32.mrf.mxu1 }
 0x2bb   :  { %2381 = vst [vmem:[#allocation5 + $0xa0] sm:$0xff] %v2253_v54  ;;  %v2255_v39 = vadd.f32 %v2254_v40, %v2062_v27  ;;  %v2064_v19 = vadd.f32 %v2063_v62, %v4537_v59 }
 0x2bc   :  { %v2065_v26 = vpop.f32.mrf.mxu0  ;;  %v2258_v31 = vpop.f32.mrf.mxu1 }
 0x2bd   :  { %2382 = vst [vmem:[#allocation5 + $0xa8] sm:$0xff] %v2255_v39  ;;  %v2257_v53 = vadd.f32 %v2256_v20, %v2064_v19  ;;  %v2066_v56 = vadd.f32 %v2065_v26, %v4540_v43 }
 0x2be   :  { %v2069_v41 = vpop.f32.mrf.mxu0  ;;  %v2262_v49 = vpop.f32.mrf.mxu1 }
 0x2bf   :  { %2383 = vst [vmem:[#allocation5 + $0xb0] sm:$0xff] %v2257_v53  ;;  %v2259_v52 = vadd.f32 %v2258_v31, %v2066_v56  ;;  %v2070_v21 = vadd.f32 %v2069_v41, %v4537_v59 }
 0x2c0   :  { %v2071_v17 = vpop.f32.mrf.mxu0  ;;  %v2264_v32 = vpop.f32.mrf.mxu1 }
 0x2c1   :  { %2384 = vst [vmem:[#allocation5 + $0xb8] sm:$0xff] %v2259_v52  ;;  %v2263_v58 = vadd.f32 %v2262_v49, %v2070_v21  ;;  %v2072_v10 = vadd.f32 %v2071_v17, %v4540_v43 }
 0x2c2   :  { %v2073_v34 = vpop.f32.mrf.mxu0  ;;  %v2266_v37 = vpop.f32.mrf.mxu1 }
 0x2c3   :  { %2385 = vst [vmem:[#allocation5 + $0xc0] sm:$0xff] %v2263_v58  ;;  %v2265_v1 = vadd.f32 %v2264_v32, %v2072_v10  ;;  %v2074_v18 = vadd.f32 %v2073_v34, %v4537_v59 }
 0x2c4   :  { %v2075_v2 = vpop.f32.mrf.mxu0  ;;  %v2268_v7 = vpop.f32.mrf.mxu1 }
 0x2c5   :  { %2386 = vst [vmem:[#allocation5 + $0xc8] sm:$0xff] %v2265_v1  ;;  %v2267_v55 = vadd.f32 %v2266_v37, %v2074_v18  ;;  %v2076_v13 = vadd.f32 %v2075_v2, %v4540_v43 }
 0x2c6   :  { %v2079_v57 = vpop.f32.mrf.mxu0  ;;  %v2272_v22 = vpop.f32.mrf.mxu1 }
 0x2c7   :  { %2387 = vst [vmem:[#allocation5 + $0xd0] sm:$0xff] %v2267_v55  ;;  %v2269_v33 = vadd.f32 %v2268_v7, %v2076_v13  ;;  %v2080_v28 = vadd.f32 %v2079_v57, %v4537_v59 }
 0x2c8   :  { %v2081_v42 = vpop.f32.mrf.mxu0  ;;  %v2274_v46 = vpop.f32.mrf.mxu1 }
 0x2c9   :  { %2388 = vst [vmem:[#allocation5 + $0xd8] sm:$0xff] %v2269_v33  ;;  %v2273_v50 = vadd.f32 %v2272_v22, %v2080_v28  ;;  %v2082_v14 = vadd.f32 %v2081_v42, %v4540_v43 }
 0x2ca   :  { %v2083_v60 = vpop.f32.mrf.mxu0  ;;  %v2276_v3 = vpop.f32.mrf.mxu1 }
 0x2cb   :  { %2389 = vst [vmem:[#allocation5 + $0xe0] sm:$0xff] %v2273_v50  ;;  %v2275_v35 = vadd.f32 %v2274_v46, %v2082_v14  ;;  %v2084_v63 = vadd.f32 %v2083_v60, %v4537_v59 }
 0x2cc   :  { %v2085_v44 = vpop.f32.mrf.mxu0  ;;  %v2278_v16 = vpop.f32.mrf.mxu1 }
 0x2cd   :  { %2390 = vst [vmem:[#allocation5 + $0xe8] sm:$0xff] %v2275_v35  ;;  %v2277_v45 = vadd.f32 %v2276_v3, %v2084_v63  ;;  %v2086_v29 = vadd.f32 %v2085_v44, %v4540_v43 }
 0x2ce   :  { %v2089_v36 = vpop.f32.mrf.mxu0  ;;  %v2282_v9 = vpop.f32.mrf.mxu1 }
 0x2cf   :  { %2391 = vst [vmem:[#allocation5 + $0xf0] sm:$0xff] %v2277_v45  ;;  %v2279_v30 = vadd.f32 %v2278_v16, %v2086_v29  ;;  %v2090_v8 = vadd.f32 %v2089_v36, %v4537_v59 }
 0x2d0   :  { %v2091_v47 = vpop.f32.mrf.mxu0  ;;  %v2284_v6 = vpop.f32.mrf.mxu1 }
 0x2d1   :  { %2392 = vst [vmem:[#allocation5 + $0xf8] sm:$0xff] %v2279_v30  ;;  %v2283_v24 = vadd.f32 %v2282_v9, %v2090_v8  ;;  %v2092_v0 = vadd.f32 %v2091_v47, %v4540_v43 }
 0x2d2   :  { %v2093_v61 = vpop.f32.mrf.mxu0  ;;  %v2286_v25 = vpop.f32.mrf.mxu1 }
 0x2d3   :  { %2393 = vst [vmem:[#allocation5 + $0x100] sm:$0xff] %v2283_v24  ;;  %v2285_v38 = vadd.f32 %v2284_v6, %v2092_v0  ;;  %v2094_v15 = vadd.f32 %v2093_v61, %v4537_v59 }
 0x2d4   :  { %v2095_v12 = vpop.f32.mrf.mxu0  ;;  %v2288_v23 = vpop.f32.mrf.mxu1 }
 0x2d5   :  { %2394 = vst [vmem:[#allocation5 + $0x108] sm:$0xff] %v2285_v38  ;;  %v2287_v51 = vadd.f32 %v2286_v25, %v2094_v15  ;;  %v2096_v11 = vadd.f32 %v2095_v12, %v4540_v43 }
 0x2d6   :  { %v2099_v48 = vpop.f32.mrf.mxu0  ;;  %v2292_v4 = vpop.f32.mrf.mxu1 }
 0x2d7   :  { %2395 = vst [vmem:[#allocation5 + $0x110] sm:$0xff] %v2287_v51  ;;  %v2289_v5 = vadd.f32 %v2288_v23, %v2096_v11  ;;  %v2100_v40 = vadd.f32 %v2099_v48, %v4537_v59 }
 0x2d8   :  { %v2101_v54 = vpop.f32.mrf.mxu0  ;;  %v2294_v27 = vpop.f32.mrf.mxu1 }
 0x2d9   :  { %2396 = vst [vmem:[#allocation5 + $0x118] sm:$0xff] %v2289_v5  ;;  %v2293_v62 = vadd.f32 %v2292_v4, %v2100_v40  ;;  %v2102_v20 = vadd.f32 %v2101_v54, %v4540_v43 }
 0x2da   :  { %v2103_v39 = vpop.f32.mrf.mxu0  ;;  %v2296_v19 = vpop.f32.mrf.mxu1 }
 0x2db   :  { %2397 = vst [vmem:[#allocation5 + $0x120] sm:$0xff] %v2293_v62  ;;  %v2295_v26 = vadd.f32 %v2294_v27, %v2102_v20  ;;  %v2104_v31 = vadd.f32 %v2103_v39, %v4537_v59 }
 0x2dc   :  { %v2105_v53 = vpop.f32.mrf.mxu0  ;;  %v2298_v56 = vpop.f32.mrf.mxu1 }
 0x2dd   :  { %2398 = vst [vmem:[#allocation5 + $0x128] sm:$0xff] %v2295_v26  ;;  %v2297_v41 = vadd.f32 %v2296_v19, %v2104_v31  ;;  %v2106_v49 = vadd.f32 %v2105_v53, %v4540_v43 }
 0x2de   :  { %v2109_v52 = vpop.f32.mrf.mxu0  ;;  %v2302_v21 = vpop.f32.mrf.mxu1 }
 0x2df   :  { %2399 = vst [vmem:[#allocation5 + $0x130] sm:$0xff] %v2297_v41  ;;  %v2299_v17 = vadd.f32 %v2298_v56, %v2106_v49  ;;  %v2110_v32 = vadd.f32 %v2109_v52, %v4537_v59 }
 0x2e0   :  { %v2111_v58 = vpop.f32.mrf.mxu0  ;;  %v2304_v10 = vpop.f32.mrf.mxu1 }
 0x2e1   :  { %2400 = vst [vmem:[#allocation5 + $0x138] sm:$0xff] %v2299_v17  ;;  %v2303_v34 = vadd.f32 %v2302_v21, %v2110_v32  ;;  %v2112_v37 = vadd.f32 %v2111_v58, %v4540_v43 }
 0x2e2   :  { %v2113_v1 = vpop.f32.mrf.mxu0  ;;  %v2306_v18 = vpop.f32.mrf.mxu1 }
 0x2e3   :  { %2401 = vst [vmem:[#allocation5 + $0x140] sm:$0xff] %v2303_v34  ;;  %v2305_v2 = vadd.f32 %v2304_v10, %v2112_v37  ;;  %v2114_v7 = vadd.f32 %v2113_v1, %v4537_v59 }
 0x2e4   :  { %v2115_v55 = vpop.f32.mrf.mxu0  ;;  %v2308_v13 = vpop.f32.mrf.mxu1 }
 0x2e5   :  { %2402 = vst [vmem:[#allocation5 + $0x148] sm:$0xff] %v2305_v2  ;;  %v2307_v57 = vadd.f32 %v2306_v18, %v2114_v7  ;;  %v2116_v22 = vadd.f32 %v2115_v55, %v4540_v43 }
 0x2e6   :  { %v2119_v33 = vpop.f32.mrf.mxu0  ;;  %v2312_v28 = vpop.f32.mrf.mxu1 }
 0x2e7   :  { %2403 = vst [vmem:[#allocation5 + $0x150] sm:$0xff] %v2307_v57  ;;  %v2309_v42 = vadd.f32 %v2308_v13, %v2116_v22  ;;  %v2120_v46 = vadd.f32 %v2119_v33, %v4537_v59 }
 0x2e8   :  { %v2121_v50 = vpop.f32.mrf.mxu0  ;;  %v2314_v14 = vpop.f32.mrf.mxu1 }
 0x2e9   :  { %2404 = vst [vmem:[#allocation5 + $0x158] sm:$0xff] %v2309_v42  ;;  %v2313_v60 = vadd.f32 %v2312_v28, %v2120_v46  ;;  %v2122_v3 = vadd.f32 %v2121_v50, %v4540_v43 }
 0x2ea   :  { %v2123_v35 = vpop.f32.mrf.mxu0  ;;  %v2316_v63 = vpop.f32.mrf.mxu1 }
 0x2eb   :  { %2405 = vst [vmem:[#allocation5 + $0x160] sm:$0xff] %v2313_v60  ;;  %v2315_v44 = vadd.f32 %v2314_v14, %v2122_v3  ;;  %v2124_v16 = vadd.f32 %v2123_v35, %v4537_v59 }
 0x2ec   :  { %v2125_v45 = vpop.f32.mrf.mxu0  ;;  %v2318_v29 = vpop.f32.mrf.mxu1 }
 0x2ed   :  { %2406 = vst [vmem:[#allocation5 + $0x168] sm:$0xff] %v2315_v44  ;;  %v2317_v36 = vadd.f32 %v2316_v63, %v2124_v16  ;;  %v2126_v9 = vadd.f32 %v2125_v45, %v4540_v43 }
 0x2ee   :  { %v2129_v30 = vpop.f32.mrf.mxu0  ;;  %v2322_v8 = vpop.f32.mrf.mxu1 }
 0x2ef   :  { %2407 = vst [vmem:[#allocation5 + $0x170] sm:$0xff] %v2317_v36  ;;  %v2319_v47 = vadd.f32 %v2318_v29, %v2126_v9  ;;  %v2130_v6 = vadd.f32 %v2129_v30, %v4537_v59 }
 0x2f0   :  { %v2131_v24 = vpop.f32.mrf.mxu0  ;;  %v2324_v0 = vpop.f32.mrf.mxu1 }
 0x2f1   :  { %2408 = vst [vmem:[#allocation5 + $0x178] sm:$0xff] %v2319_v47  ;;  %v2323_v61 = vadd.f32 %v2322_v8, %v2130_v6  ;;  %v2132_v25 = vadd.f32 %v2131_v24, %v4540_v43 }
 0x2f2   :  { %v2133_v38 = vpop.f32.mrf.mxu0  ;;  %v2326_v15 = vpop.f32.mrf.mxu1 }
 0x2f3   :  { %2409 = vst [vmem:[#allocation5 + $0x180] sm:$0xff] %v2323_v61  ;;  %v2325_v12 = vadd.f32 %v2324_v0, %v2132_v25  ;;  %v2134_v23 = vadd.f32 %v2133_v38, %v4537_v59 }
 0x2f4   :  { %v2135_v51 = vpop.f32.mrf.mxu0  ;;  %v2328_v11 = vpop.f32.mrf.mxu1 }
 0x2f5   :  { %2410 = vst [vmem:[#allocation5 + $0x188] sm:$0xff] %v2325_v12  ;;  %v2327_v48 = vadd.f32 %v2326_v15, %v2134_v23  ;;  %v2136_v4 = vadd.f32 %v2135_v51, %v4540_v43 }
 0x2f6   :  { %v2139_v5 = vpop.f32.mrf.mxu0  ;;  %v2332_v40 = vpop.f32.mrf.mxu1 }
 0x2f7   :  { %2411 = vst [vmem:[#allocation5 + $0x190] sm:$0xff] %v2327_v48  ;;  %v2329_v54 = vadd.f32 %v2328_v11, %v2136_v4  ;;  %v2140_v27 = vadd.f32 %v2139_v5, %v4537_v59 }
 0x2f8   :  { %v2141_v62 = vpop.f32.mrf.mxu0  ;;  %v2334_v20 = vpop.f32.mrf.mxu1 }
 0x2f9   :  { %2412 = vst [vmem:[#allocation5 + $0x198] sm:$0xff] %v2329_v54  ;;  %v2333_v39 = vadd.f32 %v2332_v40, %v2140_v27  ;;  %v2142_v19 = vadd.f32 %v2141_v62, %v4540_v43 }
 0x2fa   :  { %v2143_v26 = vpop.f32.mrf.mxu0  ;;  %v2336_v31 = vpop.f32.mrf.mxu1 }
 0x2fb   :  { %2413 = vst [vmem:[#allocation5 + $0x1a0] sm:$0xff] %v2333_v39  ;;  %v2335_v53 = vadd.f32 %v2334_v20, %v2142_v19  ;;  %v2144_v56 = vadd.f32 %v2143_v26, %v4537_v59 }
 0x2fc   :  { %v2145_v41 = vpop.f32.mrf.mxu0  ;;  %v2338_v49 = vpop.f32.mrf.mxu1 }
 0x2fd   :  { %2414 = vst [vmem:[#allocation5 + $0x1a8] sm:$0xff] %v2335_v53  ;;  %v2337_v52 = vadd.f32 %v2336_v31, %v2144_v56  ;;  %v2146_v21 = vadd.f32 %v2145_v41, %v4540_v43 }
 0x2fe   :  { %v2149_v17 = vpop.f32.mrf.mxu0  ;;  %v2342_v32 = vpop.f32.mrf.mxu1 }
 0x2ff   :  { %2415 = vst [vmem:[#allocation5 + $0x1b0] sm:$0xff] %v2337_v52  ;;  %v2339_v58 = vadd.f32 %v2338_v49, %v2146_v21  ;;  %v2150_v10 = vadd.f32 %v2149_v17, %v4537_v59 }
 0x300   :  { %v2151_v34 = vpop.f32.mrf.mxu0  ;;  %v2344_v37 = vpop.f32.mrf.mxu1 }
 0x301   :  { %2416 = vst [vmem:[#allocation5 + $0x1b8] sm:$0xff] %v2339_v58  ;;  %v2343_v1 = vadd.f32 %v2342_v32, %v2150_v10  ;;  %v2152_v18 = vadd.f32 %v2151_v34, %v4540_v43 }
 0x302   :  { %v2153_v2 = vpop.f32.mrf.mxu0  ;;  %v2346_v7 = vpop.f32.mrf.mxu1 }
 0x303   :  { %2417 = vst [vmem:[#allocation5 + $0x1c0] sm:$0xff] %v2343_v1  ;;  %v2345_v55 = vadd.f32 %v2344_v37, %v2152_v18  ;;  %v2154_v13 = vadd.f32 %v2153_v2, %v4537_v59 }
 0x304   :  { %v2155_v57 = vpop.f32.mrf.mxu0  ;;  %v2348_v22 = vpop.f32.mrf.mxu1 }
 0x305   :  { %2418 = vst [vmem:[#allocation5 + $0x1c8] sm:$0xff] %v2345_v55  ;;  %v2347_v33 = vadd.f32 %v2346_v7, %v2154_v13  ;;  %v2156_v28 = vadd.f32 %v2155_v57, %v4540_v43 }
 0x306   :  { %v2159_v42 = vpop.f32.mrf.mxu0  ;;  %v2352_v46 = vpop.f32.mrf.mxu1 }
 0x307   :  { %2419 = vst [vmem:[#allocation5 + $0x1d0] sm:$0xff] %v2347_v33  ;;  %v2349_v50 = vadd.f32 %v2348_v22, %v2156_v28  ;;  %v2160_v14 = vadd.f32 %v2159_v42, %v4537_v59 }
 0x308   :  { %v2161_v60 = vpop.f32.mrf.mxu0  ;;  %v2354_v3 = vpop.f32.mrf.mxu1 }
 0x309   :  { %2420 = vst [vmem:[#allocation5 + $0x1d8] sm:$0xff] %v2349_v50  ;;  %v2353_v35 = vadd.f32 %v2352_v46, %v2160_v14  ;;  %v2162_v63 = vadd.f32 %v2161_v60, %v4540_v43 }
 0x30a   :  { %v2163_v44 = vpop.f32.mrf.mxu0  ;;  %v2356_v16 = vpop.f32.mrf.mxu1 }
 0x30b   :  { %2421 = vst [vmem:[#allocation5 + $0x1e0] sm:$0xff] %v2353_v35  ;;  %v2355_v45 = vadd.f32 %v2354_v3, %v2162_v63  ;;  %v2164_v29 = vadd.f32 %v2163_v44, %v4537_v59 }
 0x30c   :  { %v2165_v36 = vpop.f32.mrf.mxu0  ;;  %v2358_v8 = vpop.f32.mrf.mxu1 }
 0x30d   :  { %2422 = vst [vmem:[#allocation5 + $0x1e8] sm:$0xff] %v2355_v45  ;;  %v2357_v9 = vadd.f32 %v2356_v16, %v2164_v29  ;;  %v2166_v30 = vadd.f32 %v2165_v36, %v4540_v43 }
 0x30f   :  { %2423 = vst [vmem:[#allocation5 + $0x1f0] sm:$0xff] %v2357_v9  ;;  %v2359_v47 = vadd.f32 %v2358_v8, %v2166_v30 }
 0x311   :  { %2424 = vst [vmem:[#allocation5 + $0x1f8] sm:$0xff] %v2359_v47 }
 0x312   :  { %2701 = shalt.err (!%p2698_p9)
}
 0x313   :  { %s2720_s10 = smov 256   ;;  %s2721_s11 = smov 16  }
 0x314   :  { %2436 = dma.vmem_to_hbm [thread:$0]  %s2431_s9, 8192, %s4615_s6, [#allocation4], %s2720_s10, %s2720_s10, %s2721_s11  }
 0x315   :  { %2712 = dma.done.wait [#allocation4], 8192  }
 0x316   :  { %2713 = vsyncadd [#allocation4], 4294959104 }
 0x317   :  { %2440 = vsyncpa [#allocation3], 1 }
 0x318   :  { %2441 = vsyncpa [#allocation4], 1 }

</bundles_post_ra>
